<compile_context>
chip_gen: v7x
topology: tpu7x:2x2x1
jax: 0.10.0
libtpu: 0.0.40
codegen_flags: <defaults>
</compile_context>

<pallas_src>
import numpy as np

import jax
import jax.numpy as jnp
from jax.experimental import pallas as pl
from jax.experimental.pallas import tpu as pltpu


# ----------------------------------------------------------------------------
# Fused Pallas chain kernel: sequence of 1x1-conv layers on one sample's
# (HW, C) feature map, fully resident in VMEM.
#   layer kind ("gn_relu",)      : Conv1x1(bias=False) -> GroupNorm(4) -> ReLU
#   layer kind ("bias", sigmoid) : Conv1x1 + bias [+ sigmoid]
# ----------------------------------------------------------------------------
def _make_chain_kernel(layer_kinds, groups, eps):
    def kernel(*refs):
        x_ref, o_ref = refs[0], refs[-1]
        prm = refs[1:-1]
        h = x_ref[0]                                    # (HW, Cin) bf16
        pi = 0
        for kind in layer_kinds:
            if kind[0] == "gn_relu":
                w = prm[pi][...]
                gamma = prm[pi + 1][...]
                beta = prm[pi + 2][...]
                proj = prm[pi + 3][...]                 # (C, C) group projector
                pi += 4
                acc = jnp.dot(h.astype(jnp.bfloat16), w,
                              preferred_element_type=jnp.float32)   # (HW, C)
                hw, c = acc.shape
                inv_n = 1.0 / float(hw * (c // groups))
                # Per-channel sums, then group-mix across lanes via matmul
                # (avoids lane-splitting reshapes / transposes in-kernel).
                s1 = jnp.sum(acc, axis=0, keepdims=True)             # (1, C)
                s2 = jnp.sum(acc * acc, axis=0, keepdims=True)       # (1, C)
                mean_c = jnp.dot(s1, proj,
                                 preferred_element_type=jnp.float32) * inv_n
                ex2_c = jnp.dot(s2, proj,
                                preferred_element_type=jnp.float32) * inv_n
                var_c = ex2_c - mean_c * mean_c
                acc = (acc - mean_c) * jax.lax.rsqrt(var_c + eps) * gamma + beta
                h = jnp.maximum(acc, 0.0).astype(jnp.bfloat16)
            else:
                w = prm[pi][...]
                b = prm[pi + 1][...]
                pi += 2
                acc = jnp.dot(h.astype(jnp.bfloat16), w,
                              preferred_element_type=jnp.float32) + b
                if kind[1]:
                    acc = 1.0 / (1.0 + jnp.exp(-acc))   # sigmoid via EUP exp
                h = acc
        o_ref[0] = h.astype(o_ref.dtype)
    return kernel


def _group_proj(c, groups):
    """(C, C) f32 matrix with P[i, j] = 1 iff channels i, j share a group."""
    gs = c // groups
    idx = np.arange(c)
    return ((idx[:, None] // gs) == (idx[None, :] // gs)).astype(np.float32)


def _gn_layer(p):
    return {"kind": "gn_relu", "w": p["w"],
            "gamma": p["gn_gamma"], "beta": p["gn_beta"]}


def _bias_layer(p, sigmoid=False):
    return {"kind": "bias", "w": p["w"], "b": p["b"], "sigmoid": sigmoid}


def pointwise_chain(x, layers, out_dtype, groups=4, eps=1e-5):
    """Fused chain of 1x1-conv layers on an NHWC feature map (Pallas).

    One pallas_call per chain; grid over batch (marked "parallel" so both v7x
    TensorCores are used); the whole per-sample (H*W, C) map stays in VMEM.
    """
    B, H, W, cin = x.shape
    HW = H * W
    xr = x.reshape(B, HW, cin).astype(jnp.bfloat16)

    args = [xr]
    in_specs = [pl.BlockSpec((1, HW, cin), lambda b: (b, 0, 0))]
    kinds = []
    cout = cin
    for layer in layers:
        w = layer["w"].astype(jnp.bfloat16)
        cout = w.shape[1]
        wspec = pl.BlockSpec(w.shape, lambda b: (0, 0))
        rowspec = pl.BlockSpec((1, cout), lambda b: (0, 0))
        if layer["kind"] == "gn_relu":
            args += [w,
                     layer["gamma"].reshape(1, cout).astype(jnp.float32),
                     layer["beta"].reshape(1, cout).astype(jnp.float32),
                     _group_proj(cout, groups)]
            in_specs += [wspec, rowspec, rowspec,
                         pl.BlockSpec((cout, cout), lambda b: (0, 0))]
            kinds.append(("gn_relu",))
        else:
            args += [w, layer["b"].reshape(1, cout).astype(jnp.float32)]
            in_specs += [wspec, rowspec]
            kinds.append(("bias", bool(layer.get("sigmoid", False))))

    # Explicit VMEM budget: double-buffered activation blocks + parameters.
    est = 2 * HW * (cin * 2 + cout * jnp.dtype(out_dtype).itemsize)
    est += 2 * sum(int(a.size) * a.dtype.itemsize for a in args[1:])
    vmem_limit = int(min(48 * 2**20, max(8 * 2**20, 4 * est)))

    out = pl.pallas_call(
        _make_chain_kernel(tuple(kinds), groups, eps),
        out_shape=jax.ShapeDtypeStruct((B, HW, cout), out_dtype),
        grid_spec=pltpu.PrefetchScalarGridSpec(
            num_scalar_prefetch=0,
            grid=(B,),
            in_specs=in_specs,
            out_specs=pl.BlockSpec((1, HW, cout), lambda b: (b, 0, 0))),
        compiler_params=pltpu.CompilerParams(
            dimension_semantics=("parallel",),
            vmem_limit_bytes=vmem_limit),
    )(*args)
    return out.reshape(B, H, W, cout)


# ----------------------------------------------------------------------------
# Spatial convolutions (3x3 / 7x7): lax.conv_general_dilated -- no im2col
# materialization in HBM.  bf16 inputs/weights, f32 accumulation.
# ----------------------------------------------------------------------------
def conv_xla(x, w, stride=1):
    k = w.shape[0]
    pad = k // 2
    return jax.lax.conv_general_dilated(
        x.astype(jnp.bfloat16), w,
        window_strides=(stride, stride),
        padding=[(pad, pad), (pad, pad)],
        dimension_numbers=("NHWC", "HWIO", "NHWC"),
        preferred_element_type=jnp.float32)


def group_norm_xla(y, gamma, beta, groups=4, eps=1e-5):
    B, H, W, C = y.shape
    yg = y.reshape(B, H * W, groups, C // groups)
    mean = yg.mean(axis=(1, 3), keepdims=True)
    var = ((yg - mean) ** 2).mean(axis=(1, 3), keepdims=True)
    yn = ((yg - mean) * jax.lax.rsqrt(var + eps)).reshape(B, H, W, C)
    return yn * gamma + beta


def conv_gn_relu(x, p, stride=1):
    """BasicLayer with a 3x3 kernel: Conv(bias=False) -> GroupNorm(4) -> ReLU.
    Dropout2d is identity at inference.  Returns bf16 activations."""
    y = conv_xla(x, p["w"], stride)
    y = group_norm_xla(y, p["gn_gamma"], p["gn_beta"])
    return jnp.maximum(y, 0.0).astype(jnp.bfloat16)


# ----------------------------------------------------------------------------
# Misc building blocks (small, plain JAX)
# ----------------------------------------------------------------------------
def bilinear_resize(x, out_h, out_w):
    """F.interpolate(mode='bilinear', align_corners=False) equivalent (NHWC)."""
    B, H, W, C = x.shape
    ys = jnp.maximum((jnp.arange(out_h) + 0.5) * (H / out_h) - 0.5, 0.0)
    xs = jnp.maximum((jnp.arange(out_w) + 0.5) * (W / out_w) - 0.5, 0.0)
    y0 = jnp.floor(ys).astype(jnp.int32)
    x0 = jnp.floor(xs).astype(jnp.int32)
    y1 = jnp.minimum(y0 + 1, H - 1)
    x1 = jnp.minimum(x0 + 1, W - 1)
    wy = (ys - y0)[None, :, None, None]
    wx = (xs - x0)[None, None, :, None]
    r0 = x[:, y0, :, :]
    r1 = x[:, y1, :, :]
    top = r0[:, :, x0, :] * (1 - wx) + r0[:, :, x1, :] * wx
    bot = r1[:, :, x0, :] * (1 - wx) + r1[:, :, x1, :] * wx
    return top * (1 - wy) + bot * wy


def unfold2d(x, ws=8):
    """PyTorch _unfold2d: output channel index = c*ws*ws + dy*ws + dx (NHWC)."""
    B, H, W, C = x.shape
    x = x.reshape(B, H // ws, ws, W // ws, ws, C)
    x = jnp.transpose(x, (0, 1, 3, 5, 2, 4))     # B, H/ws, W/ws, C, dy, dx
    return x.reshape(B, H // ws, W // ws, C * ws * ws)


def cbam(x, params):
    """CBAM(channels=64, reduction=16, kernel_size=7) on NHWC f32 input."""
    w1 = params["cbam_mlp1"]["w"]                 # (64, 4)  f32
    w2 = params["cbam_mlp2"]["w"]                 # (4, 64)  f32

    def shared_mlp(v):                            # (B, 64) -> (B, 64)
        return jnp.maximum(jnp.dot(v, w1), 0.0) @ w2

    avg = x.mean(axis=(1, 2))
    mx = x.max(axis=(1, 2))
    channel_att = jax.nn.sigmoid(shared_mlp(avg) + shared_mlp(mx))
    x = x * channel_att[:, None, None, :]

    sp_in = jnp.concatenate([x.mean(axis=3, keepdims=True),
                             x.max(axis=3, keepdims=True)], axis=3)
    sp = conv_xla(sp_in, params["cbam_spatial"]["w"], stride=1)   # 7x7, 2->1
    return x * jax.nn.sigmoid(sp)


# ----------------------------------------------------------------------------
# Deterministic synthetic parameters.
# NOTE: if real PyTorch weights (cout, cin, kh, kw) were loaded, they must be
# permuted to (kh, kw, cin, cout) [spatial convs] / (cin, cout) [1x1 convs].
# ----------------------------------------------------------------------------
class ParamGen:
    def __init__(self, seed=0):
        self._key = jax.random.PRNGKey(seed)

    def key(self):
        self._key, sub = jax.random.split(self._key)
        return sub

    def conv_hwio(self, k, cin, cout):            # spatial conv + GN params
        w = jax.random.normal(self.key(), (k, k, cin, cout), jnp.float32)
        w = (w / jnp.sqrt(float(k * k * cin))).astype(jnp.bfloat16)
        return {"w": w,
                "gn_gamma": jnp.ones((cout,), jnp.float32),
                "gn_beta": jnp.zeros((cout,), jnp.float32)}

    def conv_hwio_plain(self, k, cin, cout):      # spatial conv, no bias/GN
        w = jax.random.normal(self.key(), (k, k, cin, cout), jnp.float32)
        return {"w": (w / jnp.sqrt(float(k * k * cin))).astype(jnp.bfloat16)}

    def pw_gn(self, cin, cout):                   # 1x1 conv + GN params
        w = jax.random.normal(self.key(), (cin, cout), jnp.float32)
        w = (w / jnp.sqrt(float(cin))).astype(jnp.bfloat16)
        return {"w": w,
                "gn_gamma": jnp.ones((cout,), jnp.float32),
                "gn_beta": jnp.zeros((cout,), jnp.float32)}

    def pw_bias(self, cin, cout):                 # 1x1 conv with bias
        w = jax.random.normal(self.key(), (cin, cout), jnp.float32)
        b = jax.random.normal(self.key(), (cout,), jnp.float32) * 0.01
        return {"w": (w / jnp.sqrt(float(cin))).astype(jnp.bfloat16), "b": b}

    def dense_f32(self, cin, cout):               # CBAM MLP (tiny, XLA)
        w = jax.random.normal(self.key(), (cin, cout), jnp.float32)
        return {"w": w / jnp.sqrt(float(cin))}


def init_params():
    g = ParamGen(0)
    p = {}
    p["norm"] = {"gamma": jnp.ones((1,), jnp.float32),
                 "beta": jnp.zeros((1,), jnp.float32),
                 "mean": jnp.zeros((1,), jnp.float32),
                 "var": jnp.ones((1,), jnp.float32)}
    p["skip1"] = g.pw_bias(1, 24)
    p["block1"] = [g.conv_hwio(3, 1, 4), g.conv_hwio(3, 4, 8),
                   g.conv_hwio(3, 8, 8), g.conv_hwio(3, 8, 24)]
    p["block2"] = [g.conv_hwio(3, 24, 24), g.conv_hwio(3, 24, 24)]
    p["block3"] = [g.conv_hwio(3, 24, 64), g.conv_hwio(3, 64, 64),
                   g.pw_gn(64, 64)]
    p["block4"] = [g.conv_hwio(3, 64, 64) for _ in range(3)]
    p["block5"] = [g.conv_hwio(3, 64, 128), g.conv_hwio(3, 128, 128),
                   g.conv_hwio(3, 128, 128), g.pw_gn(128, 64)]
    p["fusion"] = [g.conv_hwio(3, 64, 64), g.conv_hwio(3, 64, 64)]
    p["fusion_conv"] = g.pw_bias(64, 64)
    p["cbam_mlp1"] = g.dense_f32(64, 4)           # reduction = 16
    p["cbam_mlp2"] = g.dense_f32(4, 64)
    p["cbam_spatial"] = g.conv_hwio_plain(7, 2, 1)
    p["heatmap"] = [g.pw_gn(64, 64) for _ in range(2)]
    p["heatmap_conv"] = g.pw_bias(64, 1)
    p["keypoint"] = [g.pw_gn(64, 64) for _ in range(3)]
    p["keypoint_conv"] = g.pw_bias(64, 65)
    # TODO(synk): fine_matcher (Linear/BatchNorm1d stack) is never used in
    # forward(), so it is not instantiated here.
    return p


# ----------------------------------------------------------------------------
# Full XFeat forward
# ----------------------------------------------------------------------------
def xfeat_forward(params, x_nchw):
    # NCHW (PyTorch) -> NHWC (pipeline layout)
    x = jnp.transpose(x_nchw, (0, 2, 3, 1)).astype(jnp.float32)
    B, H, W, _ = x.shape
    assert H % 32 == 0 and W % 32 == 0, "input H, W must be divisible by 32"

    # x.mean(dim=1, keepdim=True) ; BatchNorm2d(1) inference
    x = jnp.mean(x, axis=3, keepdims=True)
    n = params["norm"]
    x = (x - n["mean"]) * jax.lax.rsqrt(n["var"] + 1e-5) * n["gamma"] + n["beta"]
    xb = x.astype(jnp.bfloat16)

    # block1 (3x3 convs, strides 1,2,1,2)
    x1 = xb
    for p, s in zip(params["block1"], (1, 2, 1, 2)):
        x1 = conv_gn_relu(x1, p, s)

    # skip1: AvgPool2d(4,4) + Conv2d(1, 24, 1, bias)  (tiny -> plain JAX)
    skip = x.reshape(B, H // 4, 4, W // 4, 4, 1).mean(axis=(2, 4))
    skip = (jnp.dot(skip, params["skip1"]["w"].astype(jnp.float32))
            + params["skip1"]["b"])

    # block2 .. block5
    x2 = (x1.astype(jnp.float32) + skip).astype(jnp.bfloat16)
    for p in params["block2"]:
        x2 = conv_gn_relu(x2, p, 1)
    x3 = conv_gn_relu(x2, params["block3"][0], 2)
    x3 = conv_gn_relu(x3, params["block3"][1], 1)
    x3 = pointwise_chain(x3, [_gn_layer(params["block3"][2])], jnp.bfloat16)
    x4 = x3
    for p, s in zip(params["block4"], (2, 1, 1)):
        x4 = conv_gn_relu(x4, p, s)
    x5 = x4
    for p, s in zip(params["block5"][:3], (2, 1, 1)):
        x5 = conv_gn_relu(x5, p, s)
    x5 = pointwise_chain(x5, [_gn_layer(params["block5"][3])], jnp.bfloat16)

    # bilinear upsample x4, x5 to x3 resolution and fuse
    Ho, Wo = x3.shape[1], x3.shape[2]
    x4u = bilinear_resize(x4.astype(jnp.float32), Ho, Wo)
    x5u = bilinear_resize(x5.astype(jnp.float32), Ho, Wo)
    fused = (x3.astype(jnp.float32) + x4u + x5u).astype(jnp.bfloat16)
    f = conv_gn_relu(fused, params["fusion"][0], 1)
    f = conv_gn_relu(f, params["fusion"][1], 1)
    feats = pointwise_chain(f, [_bias_layer(params["fusion_conv"])],
                            jnp.float32)
    feats = cbam(feats, params)

    # heatmap head: fused Pallas chain (2x [1x1+GN+ReLU] + 1x1+bias + sigmoid)
    hm_layers = ([_gn_layer(p) for p in params["heatmap"]]
                 + [_bias_layer(params["heatmap_conv"], sigmoid=True)])
    heatmap = pointwise_chain(feats.astype(jnp.bfloat16), hm_layers,
                              jnp.float32)

    # keypoint head on unfolded (ws=8) normalized input: fused Pallas chain
    kp_in = unfold2d(x, ws=8).astype(jnp.bfloat16)
    kp_layers = ([_gn_layer(p) for p in params["keypoint"]]
                 + [_bias_layer(params["keypoint_conv"])])
    keypoints = pointwise_chain(kp_in, kp_layers, jnp.float32)

    to_nchw = lambda t: jnp.transpose(t, (0, 3, 1, 2)).astype(jnp.float32)
    return to_nchw(feats), to_nchw(keypoints), to_nchw(heatmap)


# Single jit over the whole forward collapses all per-layer dispatches.
xfeat_forward_jit = jax.jit(xfeat_forward)


# ----------------------------------------------------------------------------
if __name__ == "__main__":
    key = jax.random.PRNGKey(0)
    x = jax.random.normal(key, (2, 3, 32, 32), jnp.float32)   # B, C, H, W

    params = init_params()
    feats, keypoints, heatmap = xfeat_forward_jit(params, x)
    feats, keypoints, heatmap = jax.block_until_ready(
        (feats, keypoints, heatmap))

    assert feats.shape == (2, 64, 4, 4), feats.shape
    assert keypoints.shape == (2, 65, 4, 4), keypoints.shape
    assert heatmap.shape == (2, 1, 4, 4), heatmap.shape
    assert bool(jnp.all(jnp.isfinite(feats)))
    assert bool(jnp.all(jnp.isfinite(keypoints)))
    assert bool(jnp.all(jnp.isfinite(heatmap)))
    assert bool(jnp.all(heatmap >= 0.0)) and bool(jnp.all(heatmap <= 1.0))
    print("KERNEL_OK")
</pallas_src>

<mosaic_0001>
module attributes {stable_mosaic.version = 11 : i64} {
  func.func @kernel(%arg0: i32, %arg1: memref<1x16x64xbf16, #tpu.memory_space<vmem>>, %arg2: memref<64x64xbf16, #tpu.memory_space<vmem>>, %arg3: memref<1x64xf32, #tpu.memory_space<vmem>>, %arg4: memref<1x64xf32, #tpu.memory_space<vmem>>, %arg5: memref<64x64xf32, #tpu.memory_space<vmem>>, %arg6: memref<1x16x64xbf16, #tpu.memory_space<vmem>>) attributes {dimension_semantics = [#tpu.dimension_semantics<parallel>], iteration_bounds = array<i64: 2>, scalar_prefetch = 0 : i64, scratch_operands = 0 : i64, tpu.core_type = #tpu.core_type<tc>, window_params = [{transform_indices = @transform_0, window_bounds = array<i64: 1, 16, 64>}, {pipeline_mode = #tpu.pipeline_mode<synchronous>, transform_indices = @transform_1, window_bounds = array<i64: 64, 64>}, {pipeline_mode = #tpu.pipeline_mode<synchronous>, transform_indices = @transform_2, window_bounds = array<i64: 1, 64>}, {pipeline_mode = #tpu.pipeline_mode<synchronous>, transform_indices = @transform_3, window_bounds = array<i64: 1, 64>}, {pipeline_mode = #tpu.pipeline_mode<synchronous>, transform_indices = @transform_4, window_bounds = array<i64: 64, 64>}, {transform_indices = @transform_5, window_bounds = array<i64: 1, 16, 64>}]} {
    %c0 = arith.constant 0 : index
    %c0_0 = arith.constant 0 : index
    %c0_1 = arith.constant 0 : index
    %0 = vector.load %arg1[%c0, %c0_0, %c0_1] : memref<1x16x64xbf16, #tpu.memory_space<vmem>>, vector<1x16x64xbf16>
    %1 = vector.shape_cast %0 : vector<1x16x64xbf16> to vector<16x64xbf16>
    %c0_2 = arith.constant 0 : index
    %c0_3 = arith.constant 0 : index
    %2 = vector.load %arg2[%c0_2, %c0_3] : memref<64x64xbf16, #tpu.memory_space<vmem>>, vector<64x64xbf16>
    %c0_4 = arith.constant 0 : index
    %c0_5 = arith.constant 0 : index
    %3 = vector.load %arg3[%c0_4, %c0_5] : memref<1x64xf32, #tpu.memory_space<vmem>>, vector<1x64xf32>
    %c0_6 = arith.constant 0 : index
    %c0_7 = arith.constant 0 : index
    %4 = vector.load %arg4[%c0_6, %c0_7] : memref<1x64xf32, #tpu.memory_space<vmem>>, vector<1x64xf32>
    %c0_8 = arith.constant 0 : index
    %c0_9 = arith.constant 0 : index
    %5 = vector.load %arg5[%c0_8, %c0_9] : memref<64x64xf32, #tpu.memory_space<vmem>>, vector<64x64xf32>
    %cst = arith.constant dense<0.000000e+00> : vector<16x64xf32>
    %6 = tpu.matmul %1, %2, %cst {dimension_numbers = #tpu.dot_dimension_numbers<[1], [0], [0], [1], [0, 0, 1, 1], [], []>} : vector<16x64xbf16>, vector<64x64xbf16>, vector<16x64xf32> -> vector<16x64xf32>
    %cst_10 = arith.constant dense<0.000000e+00> : vector<64xf32>
    %7 = vector.multi_reduction <add>, %6, %cst_10 [0] : vector<16x64xf32> to vector<64xf32>
    %8 = vector.shape_cast %7 : vector<64xf32> to vector<1x64xf32>
    %9 = arith.mulf %6, %6 : vector<16x64xf32>
    %cst_11 = arith.constant dense<0.000000e+00> : vector<64xf32>
    %10 = vector.multi_reduction <add>, %9, %cst_11 [0] : vector<16x64xf32> to vector<64xf32>
    %11 = vector.shape_cast %10 : vector<64xf32> to vector<1x64xf32>
    %cst_12 = arith.constant dense<0.000000e+00> : vector<1x64xf32>
    %12 = tpu.matmul %8, %5, %cst_12 {dimension_numbers = #tpu.dot_dimension_numbers<[1], [0], [0], [1], [0, 0, 1, 1], [], []>} : vector<1x64xf32>, vector<64x64xf32>, vector<1x64xf32> -> vector<1x64xf32>
    %cst_13 = arith.constant 3.906250e-03 : f32
    %13 = vector.broadcast %cst_13 : f32 to vector<1x64xf32>
    %14 = arith.mulf %12, %13 : vector<1x64xf32>
    %cst_14 = arith.constant dense<0.000000e+00> : vector<1x64xf32>
    %15 = tpu.matmul %11, %5, %cst_14 {dimension_numbers = #tpu.dot_dimension_numbers<[1], [0], [0], [1], [0, 0, 1, 1], [], []>} : vector<1x64xf32>, vector<64x64xf32>, vector<1x64xf32> -> vector<1x64xf32>
    %cst_15 = arith.constant 3.906250e-03 : f32
    %16 = vector.broadcast %cst_15 : f32 to vector<1x64xf32>
    %17 = arith.mulf %15, %16 : vector<1x64xf32>
    %18 = arith.mulf %14, %14 : vector<1x64xf32>
    %19 = arith.subf %17, %18 : vector<1x64xf32>
    %20 = vector.broadcast %14 : vector<1x64xf32> to vector<16x64xf32>
    %21 = arith.subf %6, %20 : vector<16x64xf32>
    %cst_16 = arith.constant 9.99999974E-6 : f32
    %22 = vector.broadcast %cst_16 : f32 to vector<1x64xf32>
    %23 = arith.addf %19, %22 : vector<1x64xf32>
    %24 = math.rsqrt %23 : vector<1x64xf32>
    %25 = vector.broadcast %24 : vector<1x64xf32> to vector<16x64xf32>
    %26 = arith.mulf %21, %25 : vector<16x64xf32>
    %27 = vector.broadcast %3 : vector<1x64xf32> to vector<16x64xf32>
    %28 = arith.mulf %26, %27 : vector<16x64xf32>
    %29 = vector.broadcast %4 : vector<1x64xf32> to vector<16x64xf32>
    %30 = arith.addf %28, %29 : vector<16x64xf32>
    %cst_17 = arith.constant 0.000000e+00 : f32
    %31 = vector.broadcast %cst_17 : f32 to vector<16x64xf32>
    %32 = arith.maximumf %30, %31 : vector<16x64xf32>
    %33 = arith.truncf %32 : vector<16x64xf32> to vector<16x64xbf16>
    %c0_18 = arith.constant 0 : index
    %c0_19 = arith.constant 0 : index
    %c0_20 = arith.constant 0 : index
    %34 = vector.load %arg6[%c0_18, %c0_19, %c0_20] : memref<1x16x64xbf16, #tpu.memory_space<vmem>>, vector<1x16x64xbf16>
    %35 = vector.shape_cast %34 : vector<1x16x64xbf16> to vector<16x64xbf16>
    %36 = vector.shape_cast %33 : vector<16x64xbf16> to vector<1x16x64xbf16>
    tpu.vector_store %arg6[%c0_18, %c0_19, %c0_20], %36 {strides = array<i32>} : memref<1x16x64xbf16, #tpu.memory_space<vmem>>, vector<1x16x64xbf16>,
    return
  }
  func.func @transform_0(%arg0: i32) -> (i32, i32, i32) {
    %c0_i32 = arith.constant 0 : i32
    %c0_i32_0 = arith.constant 0 : i32
    %c0_i32_1 = arith.constant 0 : i32
    return %arg0, %c0_i32, %c0_i32_0 : i32, i32, i32
  }
  func.func @transform_1(%arg0: i32) -> (i32, i32) {
    %c0_i32 = arith.constant 0 : i32
    %c0_i32_0 = arith.constant 0 : i32
    %c0_i32_1 = arith.constant 0 : i32
    return %c0_i32, %c0_i32_0 : i32, i32
  }
  func.func @transform_2(%arg0: i32) -> (i32, i32) {
    %c0_i32 = arith.constant 0 : i32
    %c0_i32_0 = arith.constant 0 : i32
    %c0_i32_1 = arith.constant 0 : i32
    return %c0_i32, %c0_i32_0 : i32, i32
  }
  func.func @transform_3(%arg0: i32) -> (i32, i32) {
    %c0_i32 = arith.constant 0 : i32
    %c0_i32_0 = arith.constant 0 : i32
    %c0_i32_1 = arith.constant 0 : i32
    return %c0_i32, %c0_i32_0 : i32, i32
  }
  func.func @transform_4(%arg0: i32) -> (i32, i32) {
    %c0_i32 = arith.constant 0 : i32
    %c0_i32_0 = arith.constant 0 : i32
    %c0_i32_1 = arith.constant 0 : i32
    return %c0_i32, %c0_i32_0 : i32, i32
  }
  func.func @transform_5(%arg0: i32) -> (i32, i32, i32) {
    %c0_i32 = arith.constant 0 : i32
    %c0_i32_0 = arith.constant 0 : i32
    %c0_i32_1 = arith.constant 0 : i32
    return %arg0, %c0_i32, %c0_i32_0 : i32, i32, i32
  }
}

module attributes {stable_mosaic.version = 11 : i64} {
  func.func @kernel(%arg0: i32, %arg1: memref<1x1x128xbf16, #tpu.memory_space<vmem>>, %arg2: memref<128x64xbf16, #tpu.memory_space<vmem>>, %arg3: memref<1x64xf32, #tpu.memory_space<vmem>>, %arg4: memref<1x64xf32, #tpu.memory_space<vmem>>, %arg5: memref<64x64xf32, #tpu.memory_space<vmem>>, %arg6: memref<1x1x64xbf16, #tpu.memory_space<vmem>>) attributes {dimension_semantics = [#tpu.dimension_semantics<parallel>], iteration_bounds = array<i64: 2>, scalar_prefetch = 0 : i64, scratch_operands = 0 : i64, tpu.core_type = #tpu.core_type<tc>, window_params = [{transform_indices = @transform_0, window_bounds = array<i64: 1, 1, 128>}, {pipeline_mode = #tpu.pipeline_mode<synchronous>, transform_indices = @transform_1, window_bounds = array<i64: 128, 64>}, {pipeline_mode = #tpu.pipeline_mode<synchronous>, transform_indices = @transform_2, window_bounds = array<i64: 1, 64>}, {pipeline_mode = #tpu.pipeline_mode<synchronous>, transform_indices = @transform_3, window_bounds = array<i64: 1, 64>}, {pipeline_mode = #tpu.pipeline_mode<synchronous>, transform_indices = @transform_4, window_bounds = array<i64: 64, 64>}, {transform_indices = @transform_5, window_bounds = array<i64: 1, 1, 64>}]} {
    %c0 = arith.constant 0 : index
    %c0_0 = arith.constant 0 : index
    %c0_1 = arith.constant 0 : index
    %0 = vector.load %arg1[%c0, %c0_0, %c0_1] : memref<1x1x128xbf16, #tpu.memory_space<vmem>>, vector<1x1x128xbf16>
    %1 = vector.shape_cast %0 : vector<1x1x128xbf16> to vector<1x128xbf16>
    %c0_2 = arith.constant 0 : index
    %c0_3 = arith.constant 0 : index
    %2 = vector.load %arg2[%c0_2, %c0_3] : memref<128x64xbf16, #tpu.memory_space<vmem>>, vector<128x64xbf16>
    %c0_4 = arith.constant 0 : index
    %c0_5 = arith.constant 0 : index
    %3 = vector.load %arg3[%c0_4, %c0_5] : memref<1x64xf32, #tpu.memory_space<vmem>>, vector<1x64xf32>
    %c0_6 = arith.constant 0 : index
    %c0_7 = arith.constant 0 : index
    %4 = vector.load %arg4[%c0_6, %c0_7] : memref<1x64xf32, #tpu.memory_space<vmem>>, vector<1x64xf32>
    %c0_8 = arith.constant 0 : index
    %c0_9 = arith.constant 0 : index
    %5 = vector.load %arg5[%c0_8, %c0_9] : memref<64x64xf32, #tpu.memory_space<vmem>>, vector<64x64xf32>
    %cst = arith.constant dense<0.000000e+00> : vector<1x64xf32>
    %6 = tpu.matmul %1, %2, %cst {dimension_numbers = #tpu.dot_dimension_numbers<[1], [0], [0], [1], [0, 0, 1, 1], [], []>} : vector<1x128xbf16>, vector<128x64xbf16>, vector<1x64xf32> -> vector<1x64xf32>
    %cst_10 = arith.constant dense<0.000000e+00> : vector<64xf32>
    %7 = vector.multi_reduction <add>, %6, %cst_10 [0] : vector<1x64xf32> to vector<64xf32>
    %8 = vector.shape_cast %7 : vector<64xf32> to vector<1x64xf32>
    %9 = arith.mulf %6, %6 : vector<1x64xf32>
    %cst_11 = arith.constant dense<0.000000e+00> : vector<64xf32>
    %10 = vector.multi_reduction <add>, %9, %cst_11 [0] : vector<1x64xf32> to vector<64xf32>
    %11 = vector.shape_cast %10 : vector<64xf32> to vector<1x64xf32>
    %cst_12 = arith.constant dense<0.000000e+00> : vector<1x64xf32>
    %12 = tpu.matmul %8, %5, %cst_12 {dimension_numbers = #tpu.dot_dimension_numbers<[1], [0], [0], [1], [0, 0, 1, 1], [], []>} : vector<1x64xf32>, vector<64x64xf32>, vector<1x64xf32> -> vector<1x64xf32>
    %cst_13 = arith.constant 6.250000e-02 : f32
    %13 = vector.broadcast %cst_13 : f32 to vector<1x64xf32>
    %14 = arith.mulf %12, %13 : vector<1x64xf32>
    %cst_14 = arith.constant dense<0.000000e+00> : vector<1x64xf32>
    %15 = tpu.matmul %11, %5, %cst_14 {dimension_numbers = #tpu.dot_dimension_numbers<[1], [0], [0], [1], [0, 0, 1, 1], [], []>} : vector<1x64xf32>, vector<64x64xf32>, vector<1x64xf32> -> vector<1x64xf32>
    %cst_15 = arith.constant 6.250000e-02 : f32
    %16 = vector.broadcast %cst_15 : f32 to vector<1x64xf32>
    %17 = arith.mulf %15, %16 : vector<1x64xf32>
    %18 = arith.mulf %14, %14 : vector<1x64xf32>
    %19 = arith.subf %17, %18 : vector<1x64xf32>
    %20 = arith.subf %6, %14 : vector<1x64xf32>
    %cst_16 = arith.constant 9.99999974E-6 : f32
    %21 = vector.broadcast %cst_16 : f32 to vector<1x64xf32>
    %22 = arith.addf %19, %21 : vector<1x64xf32>
    %23 = math.rsqrt %22 : vector<1x64xf32>
    %24 = arith.mulf %20, %23 : vector<1x64xf32>
    %25 = arith.mulf %24, %3 : vector<1x64xf32>
    %26 = arith.addf %25, %4 : vector<1x64xf32>
    %cst_17 = arith.constant 0.000000e+00 : f32
    %27 = vector.broadcast %cst_17 : f32 to vector<1x64xf32>
    %28 = arith.maximumf %26, %27 : vector<1x64xf32>
    %29 = arith.truncf %28 : vector<1x64xf32> to vector<1x64xbf16>
    %c0_18 = arith.constant 0 : index
    %c0_19 = arith.constant 0 : index
    %c0_20 = arith.constant 0 : index
    %30 = vector.load %arg6[%c0_18, %c0_19, %c0_20] : memref<1x1x64xbf16, #tpu.memory_space<vmem>>, vector<1x1x64xbf16>
    %31 = vector.shape_cast %30 : vector<1x1x64xbf16> to vector<1x64xbf16>
    %32 = vector.shape_cast %29 : vector<1x64xbf16> to vector<1x1x64xbf16>
    tpu.vector_store %arg6[%c0_18, %c0_19, %c0_20], %32 {strides = array<i32>} : memref<1x1x64xbf16, #tpu.memory_space<vmem>>, vector<1x1x64xbf16>,
    return
  }
  func.func @transform_0(%arg0: i32) -> (i32, i32, i32) {
    %c0_i32 = arith.constant 0 : i32
    %c0_i32_0 = arith.constant 0 : i32
    %c0_i32_1 = arith.constant 0 : i32
    return %arg0, %c0_i32, %c0_i32_0 : i32, i32, i32
  }
  func.func @transform_1(%arg0: i32) -> (i32, i32) {
    %c0_i32 = arith.constant 0 : i32
    %c0_i32_0 = arith.constant 0 : i32
    %c0_i32_1 = arith.constant 0 : i32
    return %c0_i32, %c0_i32_0 : i32, i32
  }
  func.func @transform_2(%arg0: i32) -> (i32, i32) {
    %c0_i32 = arith.constant 0 : i32
    %c0_i32_0 = arith.constant 0 : i32
    %c0_i32_1 = arith.constant 0 : i32
    return %c0_i32, %c0_i32_0 : i32, i32
  }
  func.func @transform_3(%arg0: i32) -> (i32, i32) {
    %c0_i32 = arith.constant 0 : i32
    %c0_i32_0 = arith.constant 0 : i32
    %c0_i32_1 = arith.constant 0 : i32
    return %c0_i32, %c0_i32_0 : i32, i32
  }
  func.func @transform_4(%arg0: i32) -> (i32, i32) {
    %c0_i32 = arith.constant 0 : i32
    %c0_i32_0 = arith.constant 0 : i32
    %c0_i32_1 = arith.constant 0 : i32
    return %c0_i32, %c0_i32_0 : i32, i32
  }
  func.func @transform_5(%arg0: i32) -> (i32, i32, i32) {
    %c0_i32 = arith.constant 0 : i32
    %c0_i32_0 = arith.constant 0 : i32
    %c0_i32_1 = arith.constant 0 : i32
    return %arg0, %c0_i32, %c0_i32_0 : i32, i32, i32
  }
}

module attributes {stable_mosaic.version = 11 : i64} {
  func.func @kernel(%arg0: i32, %arg1: memref<1x16x64xbf16, #tpu.memory_space<vmem>>, %arg2: memref<64x64xbf16, #tpu.memory_space<vmem>>, %arg3: memref<1x64xf32, #tpu.memory_space<vmem>>, %arg4: memref<1x16x64xf32, #tpu.memory_space<vmem>>) attributes {dimension_semantics = [#tpu.dimension_semantics<parallel>], iteration_bounds = array<i64: 2>, scalar_prefetch = 0 : i64, scratch_operands = 0 : i64, tpu.core_type = #tpu.core_type<tc>, window_params = [{transform_indices = @transform_0, window_bounds = array<i64: 1, 16, 64>}, {pipeline_mode = #tpu.pipeline_mode<synchronous>, transform_indices = @transform_1, window_bounds = array<i64: 64, 64>}, {pipeline_mode = #tpu.pipeline_mode<synchronous>, transform_indices = @transform_2, window_bounds = array<i64: 1, 64>}, {transform_indices = @transform_3, window_bounds = array<i64: 1, 16, 64>}]} {
    %c0 = arith.constant 0 : index
    %c0_0 = arith.constant 0 : index
    %c0_1 = arith.constant 0 : index
    %0 = vector.load %arg1[%c0, %c0_0, %c0_1] : memref<1x16x64xbf16, #tpu.memory_space<vmem>>, vector<1x16x64xbf16>
    %1 = vector.shape_cast %0 : vector<1x16x64xbf16> to vector<16x64xbf16>
    %c0_2 = arith.constant 0 : index
    %c0_3 = arith.constant 0 : index
    %2 = vector.load %arg2[%c0_2, %c0_3] : memref<64x64xbf16, #tpu.memory_space<vmem>>, vector<64x64xbf16>
    %c0_4 = arith.constant 0 : index
    %c0_5 = arith.constant 0 : index
    %3 = vector.load %arg3[%c0_4, %c0_5] : memref<1x64xf32, #tpu.memory_space<vmem>>, vector<1x64xf32>
    %cst = arith.constant dense<0.000000e+00> : vector<16x64xf32>
    %4 = tpu.matmul %1, %2, %cst {dimension_numbers = #tpu.dot_dimension_numbers<[1], [0], [0], [1], [0, 0, 1, 1], [], []>} : vector<16x64xbf16>, vector<64x64xbf16>, vector<16x64xf32> -> vector<16x64xf32>
    %5 = vector.broadcast %3 : vector<1x64xf32> to vector<16x64xf32>
    %6 = arith.addf %4, %5 : vector<16x64xf32>
    %c0_6 = arith.constant 0 : index
    %c0_7 = arith.constant 0 : index
    %c0_8 = arith.constant 0 : index
    %7 = vector.load %arg4[%c0_6, %c0_7, %c0_8] : memref<1x16x64xf32, #tpu.memory_space<vmem>>, vector<1x16x64xf32>
    %8 = vector.shape_cast %7 : vector<1x16x64xf32> to vector<16x64xf32>
    %9 = vector.shape_cast %6 : vector<16x64xf32> to vector<1x16x64xf32>
    tpu.vector_store %arg4[%c0_6, %c0_7, %c0_8], %9 {strides = array<i32>} : memref<1x16x64xf32, #tpu.memory_space<vmem>>, vector<1x16x64xf32>,
    return
  }
  func.func @transform_0(%arg0: i32) -> (i32, i32, i32) {
    %c0_i32 = arith.constant 0 : i32
    %c0_i32_0 = arith.constant 0 : i32
    %c0_i32_1 = arith.constant 0 : i32
    return %arg0, %c0_i32, %c0_i32_0 : i32, i32, i32
  }
  func.func @transform_1(%arg0: i32) -> (i32, i32) {
    %c0_i32 = arith.constant 0 : i32
    %c0_i32_0 = arith.constant 0 : i32
    %c0_i32_1 = arith.constant 0 : i32
    return %c0_i32, %c0_i32_0 : i32, i32
  }
  func.func @transform_2(%arg0: i32) -> (i32, i32) {
    %c0_i32 = arith.constant 0 : i32
    %c0_i32_0 = arith.constant 0 : i32
    %c0_i32_1 = arith.constant 0 : i32
    return %c0_i32, %c0_i32_0 : i32, i32
  }
  func.func @transform_3(%arg0: i32) -> (i32, i32, i32) {
    %c0_i32 = arith.constant 0 : i32
    %c0_i32_0 = arith.constant 0 : i32
    %c0_i32_1 = arith.constant 0 : i32
    return %arg0, %c0_i32, %c0_i32_0 : i32, i32, i32
  }
}

module attributes {stable_mosaic.version = 11 : i64} {
  func.func @kernel(%arg0: i32, %arg1: memref<1x16x64xbf16, #tpu.memory_space<vmem>>, %arg2: memref<64x64xbf16, #tpu.memory_space<vmem>>, %arg3: memref<1x64xf32, #tpu.memory_space<vmem>>, %arg4: memref<1x64xf32, #tpu.memory_space<vmem>>, %arg5: memref<64x64xf32, #tpu.memory_space<vmem>>, %arg6: memref<64x64xbf16, #tpu.memory_space<vmem>>, %arg7: memref<1x64xf32, #tpu.memory_space<vmem>>, %arg8: memref<1x64xf32, #tpu.memory_space<vmem>>, %arg9: memref<64x64xf32, #tpu.memory_space<vmem>>, %arg10: memref<64x1xbf16, #tpu.memory_space<vmem>>, %arg11: memref<1x1xf32, #tpu.memory_space<vmem>>, %arg12: memref<1x16x1xf32, #tpu.memory_space<vmem>>) attributes {dimension_semantics = [#tpu.dimension_semantics<parallel>], iteration_bounds = array<i64: 2>, scalar_prefetch = 0 : i64, scratch_operands = 0 : i64, tpu.core_type = #tpu.core_type<tc>, window_params = [{transform_indices = @transform_0, window_bounds = array<i64: 1, 16, 64>}, {pipeline_mode = #tpu.pipeline_mode<synchronous>, transform_indices = @transform_1, window_bounds = array<i64: 64, 64>}, {pipeline_mode = #tpu.pipeline_mode<synchronous>, transform_indices = @transform_2, window_bounds = array<i64: 1, 64>}, {pipeline_mode = #tpu.pipeline_mode<synchronous>, transform_indices = @transform_3, window_bounds = array<i64: 1, 64>}, {pipeline_mode = #tpu.pipeline_mode<synchronous>, transform_indices = @transform_4, window_bounds = array<i64: 64, 64>}, {pipeline_mode = #tpu.pipeline_mode<synchronous>, transform_indices = @transform_5, window_bounds = array<i64: 64, 64>}, {pipeline_mode = #tpu.pipeline_mode<synchronous>, transform_indices = @transform_6, window_bounds = array<i64: 1, 64>}, {pipeline_mode = #tpu.pipeline_mode<synchronous>, transform_indices = @transform_7, window_bounds = array<i64: 1, 64>}, {pipeline_mode = #tpu.pipeline_mode<synchronous>, transform_indices = @transform_8, window_bounds = array<i64: 64, 64>}, {pipeline_mode = #tpu.pipeline_mode<synchronous>, transform_indices = @transform_9, window_bounds = array<i64: 64, 1>}, {pipeline_mode = #tpu.pipeline_mode<synchronous>, transform_indices = @transform_10, window_bounds = array<i64: 1, 1>}, {transform_indices = @transform_11, window_bounds = array<i64: 1, 16, 1>}]} {
    %c0 = arith.constant 0 : index
    %c0_0 = arith.constant 0 : index
    %c0_1 = arith.constant 0 : index
    %0 = vector.load %arg1[%c0, %c0_0, %c0_1] : memref<1x16x64xbf16, #tpu.memory_space<vmem>>, vector<1x16x64xbf16>
    %1 = vector.shape_cast %0 : vector<1x16x64xbf16> to vector<16x64xbf16>
    %c0_2 = arith.constant 0 : index
    %c0_3 = arith.constant 0 : index
    %2 = vector.load %arg2[%c0_2, %c0_3] : memref<64x64xbf16, #tpu.memory_space<vmem>>, vector<64x64xbf16>
    %c0_4 = arith.constant 0 : index
    %c0_5 = arith.constant 0 : index
    %3 = vector.load %arg3[%c0_4, %c0_5] : memref<1x64xf32, #tpu.memory_space<vmem>>, vector<1x64xf32>
    %c0_6 = arith.constant 0 : index
    %c0_7 = arith.constant 0 : index
    %4 = vector.load %arg4[%c0_6, %c0_7] : memref<1x64xf32, #tpu.memory_space<vmem>>, vector<1x64xf32>
    %c0_8 = arith.constant 0 : index
    %c0_9 = arith.constant 0 : index
    %5 = vector.load %arg5[%c0_8, %c0_9] : memref<64x64xf32, #tpu.memory_space<vmem>>, vector<64x64xf32>
    %cst = arith.constant dense<0.000000e+00> : vector<16x64xf32>
    %6 = tpu.matmul %1, %2, %cst {dimension_numbers = #tpu.dot_dimension_numbers<[1], [0], [0], [1], [0, 0, 1, 1], [], []>} : vector<16x64xbf16>, vector<64x64xbf16>, vector<16x64xf32> -> vector<16x64xf32>
    %cst_10 = arith.constant dense<0.000000e+00> : vector<64xf32>
    %7 = vector.multi_reduction <add>, %6, %cst_10 [0] : vector<16x64xf32> to vector<64xf32>
    %8 = vector.shape_cast %7 : vector<64xf32> to vector<1x64xf32>
    %9 = arith.mulf %6, %6 : vector<16x64xf32>
    %cst_11 = arith.constant dense<0.000000e+00> : vector<64xf32>
    %10 = vector.multi_reduction <add>, %9, %cst_11 [0] : vector<16x64xf32> to vector<64xf32>
    %11 = vector.shape_cast %10 : vector<64xf32> to vector<1x64xf32>
    %cst_12 = arith.constant dense<0.000000e+00> : vector<1x64xf32>
    %12 = tpu.matmul %8, %5, %cst_12 {dimension_numbers = #tpu.dot_dimension_numbers<[1], [0], [0], [1], [0, 0, 1, 1], [], []>} : vector<1x64xf32>, vector<64x64xf32>, vector<1x64xf32> -> vector<1x64xf32>
    %cst_13 = arith.constant 3.906250e-03 : f32
    %13 = vector.broadcast %cst_13 : f32 to vector<1x64xf32>
    %14 = arith.mulf %12, %13 : vector<1x64xf32>
    %cst_14 = arith.constant dense<0.000000e+00> : vector<1x64xf32>
    %15 = tpu.matmul %11, %5, %cst_14 {dimension_numbers = #tpu.dot_dimension_numbers<[1], [0], [0], [1], [0, 0, 1, 1], [], []>} : vector<1x64xf32>, vector<64x64xf32>, vector<1x64xf32> -> vector<1x64xf32>
    %cst_15 = arith.constant 3.906250e-03 : f32
    %16 = vector.broadcast %cst_15 : f32 to vector<1x64xf32>
    %17 = arith.mulf %15, %16 : vector<1x64xf32>
    %18 = arith.mulf %14, %14 : vector<1x64xf32>
    %19 = arith.subf %17, %18 : vector<1x64xf32>
    %20 = vector.broadcast %14 : vector<1x64xf32> to vector<16x64xf32>
    %21 = arith.subf %6, %20 : vector<16x64xf32>
    %cst_16 = arith.constant 9.99999974E-6 : f32
    %22 = vector.broadcast %cst_16 : f32 to vector<1x64xf32>
    %23 = arith.addf %19, %22 : vector<1x64xf32>
    %24 = math.rsqrt %23 : vector<1x64xf32>
    %25 = vector.broadcast %24 : vector<1x64xf32> to vector<16x64xf32>
    %26 = arith.mulf %21, %25 : vector<16x64xf32>
    %27 = vector.broadcast %3 : vector<1x64xf32> to vector<16x64xf32>
    %28 = arith.mulf %26, %27 : vector<16x64xf32>
    %29 = vector.broadcast %4 : vector<1x64xf32> to vector<16x64xf32>
    %30 = arith.addf %28, %29 : vector<16x64xf32>
    %cst_17 = arith.constant 0.000000e+00 : f32
    %31 = vector.broadcast %cst_17 : f32 to vector<16x64xf32>
    %32 = arith.maximumf %30, %31 : vector<16x64xf32>
    %33 = arith.truncf %32 : vector<16x64xf32> to vector<16x64xbf16>
    %c0_18 = arith.constant 0 : index
    %c0_19 = arith.constant 0 : index
    %34 = vector.load %arg6[%c0_18, %c0_19] : memref<64x64xbf16, #tpu.memory_space<vmem>>, vector<64x64xbf16>
    %c0_20 = arith.constant 0 : index
    %c0_21 = arith.constant 0 : index
    %35 = vector.load %arg7[%c0_20, %c0_21] : memref<1x64xf32, #tpu.memory_space<vmem>>, vector<1x64xf32>
    %c0_22 = arith.constant 0 : index
    %c0_23 = arith.constant 0 : index
    %36 = vector.load %arg8[%c0_22, %c0_23] : memref<1x64xf32, #tpu.memory_space<vmem>>, vector<1x64xf32>
    %c0_24 = arith.constant 0 : index
    %c0_25 = arith.constant 0 : index
    %37 = vector.load %arg9[%c0_24, %c0_25] : memref<64x64xf32, #tpu.memory_space<vmem>>, vector<64x64xf32>
    %cst_26 = arith.constant dense<0.000000e+00> : vector<16x64xf32>
    %38 = tpu.matmul %33, %34, %cst_26 {dimension_numbers = #tpu.dot_dimension_numbers<[1], [0], [0], [1], [0, 0, 1, 1], [], []>} : vector<16x64xbf16>, vector<64x64xbf16>, vector<16x64xf32> -> vector<16x64xf32>
    %cst_27 = arith.constant dense<0.000000e+00> : vector<64xf32>
    %39 = vector.multi_reduction <add>, %38, %cst_27 [0] : vector<16x64xf32> to vector<64xf32>
    %40 = vector.shape_cast %39 : vector<64xf32> to vector<1x64xf32>
    %41 = arith.mulf %38, %38 : vector<16x64xf32>
    %cst_28 = arith.constant dense<0.000000e+00> : vector<64xf32>
    %42 = vector.multi_reduction <add>, %41, %cst_28 [0] : vector<16x64xf32> to vector<64xf32>
    %43 = vector.shape_cast %42 : vector<64xf32> to vector<1x64xf32>
    %cst_29 = arith.constant dense<0.000000e+00> : vector<1x64xf32>
    %44 = tpu.matmul %40, %37, %cst_29 {dimension_numbers = #tpu.dot_dimension_numbers<[1], [0], [0], [1], [0, 0, 1, 1], [], []>} : vector<1x64xf32>, vector<64x64xf32>, vector<1x64xf32> -> vector<1x64xf32>
    %cst_30 = arith.constant 3.906250e-03 : f32
    %45 = vector.broadcast %cst_30 : f32 to vector<1x64xf32>
    %46 = arith.mulf %44, %45 : vector<1x64xf32>
    %cst_31 = arith.constant dense<0.000000e+00> : vector<1x64xf32>
    %47 = tpu.matmul %43, %37, %cst_31 {dimension_numbers = #tpu.dot_dimension_numbers<[1], [0], [0], [1], [0, 0, 1, 1], [], []>} : vector<1x64xf32>, vector<64x64xf32>, vector<1x64xf32> -> vector<1x64xf32>
    %cst_32 = arith.constant 3.906250e-03 : f32
    %48 = vector.broadcast %cst_32 : f32 to vector<1x64xf32>
    %49 = arith.mulf %47, %48 : vector<1x64xf32>
    %50 = arith.mulf %46, %46 : vector<1x64xf32>
    %51 = arith.subf %49, %50 : vector<1x64xf32>
    %52 = vector.broadcast %46 : vector<1x64xf32> to vector<16x64xf32>
    %53 = arith.subf %38, %52 : vector<16x64xf32>
    %cst_33 = arith.constant 9.99999974E-6 : f32
    %54 = vector.broadcast %cst_33 : f32 to vector<1x64xf32>
    %55 = arith.addf %51, %54 : vector<1x64xf32>
    %56 = math.rsqrt %55 : vector<1x64xf32>
    %57 = vector.broadcast %56 : vector<1x64xf32> to vector<16x64xf32>
    %58 = arith.mulf %53, %57 : vector<16x64xf32>
    %59 = vector.broadcast %35 : vector<1x64xf32> to vector<16x64xf32>
    %60 = arith.mulf %58, %59 : vector<16x64xf32>
    %61 = vector.broadcast %36 : vector<1x64xf32> to vector<16x64xf32>
    %62 = arith.addf %60, %61 : vector<16x64xf32>
    %cst_34 = arith.constant 0.000000e+00 : f32
    %63 = vector.broadcast %cst_34 : f32 to vector<16x64xf32>
    %64 = arith.maximumf %62, %63 : vector<16x64xf32>
    %65 = arith.truncf %64 : vector<16x64xf32> to vector<16x64xbf16>
    %c0_35 = arith.constant 0 : index
    %c0_36 = arith.constant 0 : index
    %66 = vector.load %arg10[%c0_35, %c0_36] : memref<64x1xbf16, #tpu.memory_space<vmem>>, vector<64x1xbf16>
    %c0_37 = arith.constant 0 : index
    %c0_38 = arith.constant 0 : index
    %67 = vector.load %arg11[%c0_37, %c0_38] : memref<1x1xf32, #tpu.memory_space<vmem>>, vector<1x1xf32>
    %cst_39 = arith.constant dense<0.000000e+00> : vector<16x1xf32>
    %68 = tpu.matmul %65, %66, %cst_39 {dimension_numbers = #tpu.dot_dimension_numbers<[1], [0], [0], [1], [0, 0, 1, 1], [], []>} : vector<16x64xbf16>, vector<64x1xbf16>, vector<16x1xf32> -> vector<16x1xf32>
    %69 = vector.broadcast %67 : vector<1x1xf32> to vector<16x1xf32>
    %70 = arith.addf %68, %69 : vector<16x1xf32>
    %cst_40 = arith.constant 0.000000e+00 : f32
    %71 = vector.broadcast %cst_40 : f32 to vector<16x1xf32>
    %72 = arith.subf %71, %70 : vector<16x1xf32>
    %73 = math.exp %72 : vector<16x1xf32>
    %cst_41 = arith.constant 1.000000e+00 : f32
    %74 = vector.broadcast %cst_41 : f32 to vector<16x1xf32>
    %75 = arith.addf %74, %73 : vector<16x1xf32>
    %cst_42 = arith.constant 1.000000e+00 : f32
    %76 = vector.broadcast %cst_42 : f32 to vector<16x1xf32>
    %77 = arith.divf %76, %75 : vector<16x1xf32>
    %c0_43 = arith.constant 0 : index
    %c0_44 = arith.constant 0 : index
    %c0_45 = arith.constant 0 : index
    %78 = vector.load %arg12[%c0_43, %c0_44, %c0_45] : memref<1x16x1xf32, #tpu.memory_space<vmem>>, vector<1x16x1xf32>
    %79 = vector.shape_cast %78 : vector<1x16x1xf32> to vector<16x1xf32>
    %80 = vector.shape_cast %77 : vector<16x1xf32> to vector<1x16x1xf32>
    tpu.vector_store %arg12[%c0_43, %c0_44, %c0_45], %80 {strides = array<i32>} : memref<1x16x1xf32, #tpu.memory_space<vmem>>, vector<1x16x1xf32>,
    return
  }
  func.func @transform_0(%arg0: i32) -> (i32, i32, i32) {
    %c0_i32 = arith.constant 0 : i32
    %c0_i32_0 = arith.constant 0 : i32
    %c0_i32_1 = arith.constant 0 : i32
    return %arg0, %c0_i32, %c0_i32_0 : i32, i32, i32
  }
  func.func @transform_1(%arg0: i32) -> (i32, i32) {
    %c0_i32 = arith.constant 0 : i32
    %c0_i32_0 = arith.constant 0 : i32
    %c0_i32_1 = arith.constant 0 : i32
    return %c0_i32, %c0_i32_0 : i32, i32
  }
  func.func @transform_2(%arg0: i32) -> (i32, i32) {
    %c0_i32 = arith.constant 0 : i32
    %c0_i32_0 = arith.constant 0 : i32
    %c0_i32_1 = arith.constant 0 : i32
    return %c0_i32, %c0_i32_0 : i32, i32
  }
  func.func @transform_3(%arg0: i32) -> (i32, i32) {
    %c0_i32 = arith.constant 0 : i32
    %c0_i32_0 = arith.constant 0 : i32
    %c0_i32_1 = arith.constant 0 : i32
    return %c0_i32, %c0_i32_0 : i32, i32
  }
  func.func @transform_4(%arg0: i32) -> (i32, i32) {
    %c0_i32 = arith.constant 0 : i32
    %c0_i32_0 = arith.constant 0 : i32
    %c0_i32_1 = arith.constant 0 : i32
    return %c0_i32, %c0_i32_0 : i32, i32
  }
  func.func @transform_5(%arg0: i32) -> (i32, i32) {
    %c0_i32 = arith.constant 0 : i32
    %c0_i32_0 = arith.constant 0 : i32
    %c0_i32_1 = arith.constant 0 : i32
    return %c0_i32, %c0_i32_0 : i32, i32
  }
  func.func @transform_6(%arg0: i32) -> (i32, i32) {
    %c0_i32 = arith.constant 0 : i32
    %c0_i32_0 = arith.constant 0 : i32
    %c0_i32_1 = arith.constant 0 : i32
    return %c0_i32, %c0_i32_0 : i32, i32
  }
  func.func @transform_7(%arg0: i32) -> (i32, i32) {
    %c0_i32 = arith.constant 0 : i32
    %c0_i32_0 = arith.constant 0 : i32
    %c0_i32_1 = arith.constant 0 : i32
    return %c0_i32, %c0_i32_0 : i32, i32
  }
  func.func @transform_8(%arg0: i32) -> (i32, i32) {
    %c0_i32 = arith.constant 0 : i32
    %c0_i32_0 = arith.constant 0 : i32
    %c0_i32_1 = arith.constant 0 : i32
    return %c0_i32, %c0_i32_0 : i32, i32
  }
  func.func @transform_9(%arg0: i32) -> (i32, i32) {
    %c0_i32 = arith.constant 0 : i32
    %c0_i32_0 = arith.constant 0 : i32
    %c0_i32_1 = arith.constant 0 : i32
    return %c0_i32, %c0_i32_0 : i32, i32
  }
  func.func @transform_10(%arg0: i32) -> (i32, i32) {
    %c0_i32 = arith.constant 0 : i32
    %c0_i32_0 = arith.constant 0 : i32
    %c0_i32_1 = arith.constant 0 : i32
    return %c0_i32, %c0_i32_0 : i32, i32
  }
  func.func @transform_11(%arg0: i32) -> (i32, i32, i32) {
    %c0_i32 = arith.constant 0 : i32
    %c0_i32_0 = arith.constant 0 : i32
    %c0_i32_1 = arith.constant 0 : i32
    return %arg0, %c0_i32, %c0_i32_0 : i32, i32, i32
  }
}

module attributes {stable_mosaic.version = 11 : i64} {
  func.func @kernel(%arg0: i32, %arg1: memref<1x16x64xbf16, #tpu.memory_space<vmem>>, %arg2: memref<64x64xbf16, #tpu.memory_space<vmem>>, %arg3: memref<1x64xf32, #tpu.memory_space<vmem>>, %arg4: memref<1x64xf32, #tpu.memory_space<vmem>>, %arg5: memref<64x64xf32, #tpu.memory_space<vmem>>, %arg6: memref<64x64xbf16, #tpu.memory_space<vmem>>, %arg7: memref<1x64xf32, #tpu.memory_space<vmem>>, %arg8: memref<1x64xf32, #tpu.memory_space<vmem>>, %arg9: memref<64x64xf32, #tpu.memory_space<vmem>>, %arg10: memref<64x64xbf16, #tpu.memory_space<vmem>>, %arg11: memref<1x64xf32, #tpu.memory_space<vmem>>, %arg12: memref<1x64xf32, #tpu.memory_space<vmem>>, %arg13: memref<64x64xf32, #tpu.memory_space<vmem>>, %arg14: memref<64x65xbf16, #tpu.memory_space<vmem>>, %arg15: memref<1x65xf32, #tpu.memory_space<vmem>>, %arg16: memref<1x16x65xf32, #tpu.memory_space<vmem>>) attributes {dimension_semantics = [#tpu.dimension_semantics<parallel>], iteration_bounds = array<i64: 2>, scalar_prefetch = 0 : i64, scratch_operands = 0 : i64, tpu.core_type = #tpu.core_type<tc>, window_params = [{transform_indices = @transform_0, window_bounds = array<i64: 1, 16, 64>}, {pipeline_mode = #tpu.pipeline_mode<synchronous>, transform_indices = @transform_1, window_bounds = array<i64: 64, 64>}, {pipeline_mode = #tpu.pipeline_mode<synchronous>, transform_indices = @transform_2, window_bounds = array<i64: 1, 64>}, {pipeline_mode = #tpu.pipeline_mode<synchronous>, transform_indices = @transform_3, window_bounds = array<i64: 1, 64>}, {pipeline_mode = #tpu.pipeline_mode<synchronous>, transform_indices = @transform_4, window_bounds = array<i64: 64, 64>}, {pipeline_mode = #tpu.pipeline_mode<synchronous>, transform_indices = @transform_5, window_bounds = array<i64: 64, 64>}, {pipeline_mode = #tpu.pipeline_mode<synchronous>, transform_indices = @transform_6, window_bounds = array<i64: 1, 64>}, {pipeline_mode = #tpu.pipeline_mode<synchronous>, transform_indices = @transform_7, window_bounds = array<i64: 1, 64>}, {pipeline_mode = #tpu.pipeline_mode<synchronous>, transform_indices = @transform_8, window_bounds = array<i64: 64, 64>}, {pipeline_mode = #tpu.pipeline_mode<synchronous>, transform_indices = @transform_9, window_bounds = array<i64: 64, 64>}, {pipeline_mode = #tpu.pipeline_mode<synchronous>, transform_indices = @transform_10, window_bounds = array<i64: 1, 64>}, {pipeline_mode = #tpu.pipeline_mode<synchronous>, transform_indices = @transform_11, window_bounds = array<i64: 1, 64>}, {pipeline_mode = #tpu.pipeline_mode<synchronous>, transform_indices = @transform_12, window_bounds = array<i64: 64, 64>}, {pipeline_mode = #tpu.pipeline_mode<synchronous>, transform_indices = @transform_13, window_bounds = array<i64: 64, 65>}, {pipeline_mode = #tpu.pipeline_mode<synchronous>, transform_indices = @transform_14, window_bounds = array<i64: 1, 65>}, {transform_indices = @transform_15, window_bounds = array<i64: 1, 16, 65>}]} {
    %c0 = arith.constant 0 : index
    %c0_0 = arith.constant 0 : index
    %c0_1 = arith.constant 0 : index
    %0 = vector.load %arg1[%c0, %c0_0, %c0_1] : memref<1x16x64xbf16, #tpu.memory_space<vmem>>, vector<1x16x64xbf16>
    %1 = vector.shape_cast %0 : vector<1x16x64xbf16> to vector<16x64xbf16>
    %c0_2 = arith.constant 0 : index
    %c0_3 = arith.constant 0 : index
    %2 = vector.load %arg2[%c0_2, %c0_3] : memref<64x64xbf16, #tpu.memory_space<vmem>>, vector<64x64xbf16>
    %c0_4 = arith.constant 0 : index
    %c0_5 = arith.constant 0 : index
    %3 = vector.load %arg3[%c0_4, %c0_5] : memref<1x64xf32, #tpu.memory_space<vmem>>, vector<1x64xf32>
    %c0_6 = arith.constant 0 : index
    %c0_7 = arith.constant 0 : index
    %4 = vector.load %arg4[%c0_6, %c0_7] : memref<1x64xf32, #tpu.memory_space<vmem>>, vector<1x64xf32>
    %c0_8 = arith.constant 0 : index
    %c0_9 = arith.constant 0 : index
    %5 = vector.load %arg5[%c0_8, %c0_9] : memref<64x64xf32, #tpu.memory_space<vmem>>, vector<64x64xf32>
    %cst = arith.constant dense<0.000000e+00> : vector<16x64xf32>
    %6 = tpu.matmul %1, %2, %cst {dimension_numbers = #tpu.dot_dimension_numbers<[1], [0], [0], [1], [0, 0, 1, 1], [], []>} : vector<16x64xbf16>, vector<64x64xbf16>, vector<16x64xf32> -> vector<16x64xf32>
    %cst_10 = arith.constant dense<0.000000e+00> : vector<64xf32>
    %7 = vector.multi_reduction <add>, %6, %cst_10 [0] : vector<16x64xf32> to vector<64xf32>
    %8 = vector.shape_cast %7 : vector<64xf32> to vector<1x64xf32>
    %9 = arith.mulf %6, %6 : vector<16x64xf32>
    %cst_11 = arith.constant dense<0.000000e+00> : vector<64xf32>
    %10 = vector.multi_reduction <add>, %9, %cst_11 [0] : vector<16x64xf32> to vector<64xf32>
    %11 = vector.shape_cast %10 : vector<64xf32> to vector<1x64xf32>
    %cst_12 = arith.constant dense<0.000000e+00> : vector<1x64xf32>
    %12 = tpu.matmul %8, %5, %cst_12 {dimension_numbers = #tpu.dot_dimension_numbers<[1], [0], [0], [1], [0, 0, 1, 1], [], []>} : vector<1x64xf32>, vector<64x64xf32>, vector<1x64xf32> -> vector<1x64xf32>
    %cst_13 = arith.constant 3.906250e-03 : f32
    %13 = vector.broadcast %cst_13 : f32 to vector<1x64xf32>
    %14 = arith.mulf %12, %13 : vector<1x64xf32>
    %cst_14 = arith.constant dense<0.000000e+00> : vector<1x64xf32>
    %15 = tpu.matmul %11, %5, %cst_14 {dimension_numbers = #tpu.dot_dimension_numbers<[1], [0], [0], [1], [0, 0, 1, 1], [], []>} : vector<1x64xf32>, vector<64x64xf32>, vector<1x64xf32> -> vector<1x64xf32>
    %cst_15 = arith.constant 3.906250e-03 : f32
    %16 = vector.broadcast %cst_15 : f32 to vector<1x64xf32>
    %17 = arith.mulf %15, %16 : vector<1x64xf32>
    %18 = arith.mulf %14, %14 : vector<1x64xf32>
    %19 = arith.subf %17, %18 : vector<1x64xf32>
    %20 = vector.broadcast %14 : vector<1x64xf32> to vector<16x64xf32>
    %21 = arith.subf %6, %20 : vector<16x64xf32>
    %cst_16 = arith.constant 9.99999974E-6 : f32
    %22 = vector.broadcast %cst_16 : f32 to vector<1x64xf32>
    %23 = arith.addf %19, %22 : vector<1x64xf32>
    %24 = math.rsqrt %23 : vector<1x64xf32>
    %25 = vector.broadcast %24 : vector<1x64xf32> to vector<16x64xf32>
    %26 = arith.mulf %21, %25 : vector<16x64xf32>
    %27 = vector.broadcast %3 : vector<1x64xf32> to vector<16x64xf32>
    %28 = arith.mulf %26, %27 : vector<16x64xf32>
    %29 = vector.broadcast %4 : vector<1x64xf32> to vector<16x64xf32>
    %30 = arith.addf %28, %29 : vector<16x64xf32>
    %cst_17 = arith.constant 0.000000e+00 : f32
    %31 = vector.broadcast %cst_17 : f32 to vector<16x64xf32>
    %32 = arith.maximumf %30, %31 : vector<16x64xf32>
    %33 = arith.truncf %32 : vector<16x64xf32> to vector<16x64xbf16>
    %c0_18 = arith.constant 0 : index
    %c0_19 = arith.constant 0 : index
    %34 = vector.load %arg6[%c0_18, %c0_19] : memref<64x64xbf16, #tpu.memory_space<vmem>>, vector<64x64xbf16>
    %c0_20 = arith.constant 0 : index
    %c0_21 = arith.constant 0 : index
    %35 = vector.load %arg7[%c0_20, %c0_21] : memref<1x64xf32, #tpu.memory_space<vmem>>, vector<1x64xf32>
    %c0_22 = arith.constant 0 : index
    %c0_23 = arith.constant 0 : index
    %36 = vector.load %arg8[%c0_22, %c0_23] : memref<1x64xf32, #tpu.memory_space<vmem>>, vector<1x64xf32>
    %c0_24 = arith.constant 0 : index
    %c0_25 = arith.constant 0 : index
    %37 = vector.load %arg9[%c0_24, %c0_25] : memref<64x64xf32, #tpu.memory_space<vmem>>, vector<64x64xf32>
    %cst_26 = arith.constant dense<0.000000e+00> : vector<16x64xf32>
    %38 = tpu.matmul %33, %34, %cst_26 {dimension_numbers = #tpu.dot_dimension_numbers<[1], [0], [0], [1], [0, 0, 1, 1], [], []>} : vector<16x64xbf16>, vector<64x64xbf16>, vector<16x64xf32> -> vector<16x64xf32>
    %cst_27 = arith.constant dense<0.000000e+00> : vector<64xf32>
    %39 = vector.multi_reduction <add>, %38, %cst_27 [0] : vector<16x64xf32> to vector<64xf32>
    %40 = vector.shape_cast %39 : vector<64xf32> to vector<1x64xf32>
    %41 = arith.mulf %38, %38 : vector<16x64xf32>
    %cst_28 = arith.constant dense<0.000000e+00> : vector<64xf32>
    %42 = vector.multi_reduction <add>, %41, %cst_28 [0] : vector<16x64xf32> to vector<64xf32>
    %43 = vector.shape_cast %42 : vector<64xf32> to vector<1x64xf32>
    %cst_29 = arith.constant dense<0.000000e+00> : vector<1x64xf32>
    %44 = tpu.matmul %40, %37, %cst_29 {dimension_numbers = #tpu.dot_dimension_numbers<[1], [0], [0], [1], [0, 0, 1, 1], [], []>} : vector<1x64xf32>, vector<64x64xf32>, vector<1x64xf32> -> vector<1x64xf32>
    %cst_30 = arith.constant 3.906250e-03 : f32
    %45 = vector.broadcast %cst_30 : f32 to vector<1x64xf32>
    %46 = arith.mulf %44, %45 : vector<1x64xf32>
    %cst_31 = arith.constant dense<0.000000e+00> : vector<1x64xf32>
    %47 = tpu.matmul %43, %37, %cst_31 {dimension_numbers = #tpu.dot_dimension_numbers<[1], [0], [0], [1], [0, 0, 1, 1], [], []>} : vector<1x64xf32>, vector<64x64xf32>, vector<1x64xf32> -> vector<1x64xf32>
    %cst_32 = arith.constant 3.906250e-03 : f32
    %48 = vector.broadcast %cst_32 : f32 to vector<1x64xf32>
    %49 = arith.mulf %47, %48 : vector<1x64xf32>
    %50 = arith.mulf %46, %46 : vector<1x64xf32>
    %51 = arith.subf %49, %50 : vector<1x64xf32>
    %52 = vector.broadcast %46 : vector<1x64xf32> to vector<16x64xf32>
    %53 = arith.subf %38, %52 : vector<16x64xf32>
    %cst_33 = arith.constant 9.99999974E-6 : f32
    %54 = vector.broadcast %cst_33 : f32 to vector<1x64xf32>
    %55 = arith.addf %51, %54 : vector<1x64xf32>
    %56 = math.rsqrt %55 : vector<1x64xf32>
    %57 = vector.broadcast %56 : vector<1x64xf32> to vector<16x64xf32>
    %58 = arith.mulf %53, %57 : vector<16x64xf32>
    %59 = vector.broadcast %35 : vector<1x64xf32> to vector<16x64xf32>
    %60 = arith.mulf %58, %59 : vector<16x64xf32>
    %61 = vector.broadcast %36 : vector<1x64xf32> to vector<16x64xf32>
    %62 = arith.addf %60, %61 : vector<16x64xf32>
    %cst_34 = arith.constant 0.000000e+00 : f32
    %63 = vector.broadcast %cst_34 : f32 to vector<16x64xf32>
    %64 = arith.maximumf %62, %63 : vector<16x64xf32>
    %65 = arith.truncf %64 : vector<16x64xf32> to vector<16x64xbf16>
    %c0_35 = arith.constant 0 : index
    %c0_36 = arith.constant 0 : index
    %66 = vector.load %arg10[%c0_35, %c0_36] : memref<64x64xbf16, #tpu.memory_space<vmem>>, vector<64x64xbf16>
    %c0_37 = arith.constant 0 : index
    %c0_38 = arith.constant 0 : index
    %67 = vector.load %arg11[%c0_37, %c0_38] : memref<1x64xf32, #tpu.memory_space<vmem>>, vector<1x64xf32>
    %c0_39 = arith.constant 0 : index
    %c0_40 = arith.constant 0 : index
    %68 = vector.load %arg12[%c0_39, %c0_40] : memref<1x64xf32, #tpu.memory_space<vmem>>, vector<1x64xf32>
    %c0_41 = arith.constant 0 : index
    %c0_42 = arith.constant 0 : index
    %69 = vector.load %arg13[%c0_41, %c0_42] : memref<64x64xf32, #tpu.memory_space<vmem>>, vector<64x64xf32>
    %cst_43 = arith.constant dense<0.000000e+00> : vector<16x64xf32>
    %70 = tpu.matmul %65, %66, %cst_43 {dimension_numbers = #tpu.dot_dimension_numbers<[1], [0], [0], [1], [0, 0, 1, 1], [], []>} : vector<16x64xbf16>, vector<64x64xbf16>, vector<16x64xf32> -> vector<16x64xf32>
    %cst_44 = arith.constant dense<0.000000e+00> : vector<64xf32>
    %71 = vector.multi_reduction <add>, %70, %cst_44 [0] : vector<16x64xf32> to vector<64xf32>
    %72 = vector.shape_cast %71 : vector<64xf32> to vector<1x64xf32>
    %73 = arith.mulf %70, %70 : vector<16x64xf32>
    %cst_45 = arith.constant dense<0.000000e+00> : vector<64xf32>
    %74 = vector.multi_reduction <add>, %73, %cst_45 [0] : vector<16x64xf32> to vector<64xf32>
    %75 = vector.shape_cast %74 : vector<64xf32> to vector<1x64xf32>
    %cst_46 = arith.constant dense<0.000000e+00> : vector<1x64xf32>
    %76 = tpu.matmul %72, %69, %cst_46 {dimension_numbers = #tpu.dot_dimension_numbers<[1], [0], [0], [1], [0, 0, 1, 1], [], []>} : vector<1x64xf32>, vector<64x64xf32>, vector<1x64xf32> -> vector<1x64xf32>
    %cst_47 = arith.constant 3.906250e-03 : f32
    %77 = vector.broadcast %cst_47 : f32 to vector<1x64xf32>
    %78 = arith.mulf %76, %77 : vector<1x64xf32>
    %cst_48 = arith.constant dense<0.000000e+00> : vector<1x64xf32>
    %79 = tpu.matmul %75, %69, %cst_48 {dimension_numbers = #tpu.dot_dimension_numbers<[1], [0], [0], [1], [0, 0, 1, 1], [], []>} : vector<1x64xf32>, vector<64x64xf32>, vector<1x64xf32> -> vector<1x64xf32>
    %cst_49 = arith.constant 3.906250e-03 : f32
    %80 = vector.broadcast %cst_49 : f32 to vector<1x64xf32>
    %81 = arith.mulf %79, %80 : vector<1x64xf32>
    %82 = arith.mulf %78, %78 : vector<1x64xf32>
    %83 = arith.subf %81, %82 : vector<1x64xf32>
    %84 = vector.broadcast %78 : vector<1x64xf32> to vector<16x64xf32>
    %85 = arith.subf %70, %84 : vector<16x64xf32>
    %cst_50 = arith.constant 9.99999974E-6 : f32
    %86 = vector.broadcast %cst_50 : f32 to vector<1x64xf32>
    %87 = arith.addf %83, %86 : vector<1x64xf32>
    %88 = math.rsqrt %87 : vector<1x64xf32>
    %89 = vector.broadcast %88 : vector<1x64xf32> to vector<16x64xf32>
    %90 = arith.mulf %85, %89 : vector<16x64xf32>
    %91 = vector.broadcast %67 : vector<1x64xf32> to vector<16x64xf32>
    %92 = arith.mulf %90, %91 : vector<16x64xf32>
    %93 = vector.broadcast %68 : vector<1x64xf32> to vector<16x64xf32>
    %94 = arith.addf %92, %93 : vector<16x64xf32>
    %cst_51 = arith.constant 0.000000e+00 : f32
    %95 = vector.broadcast %cst_51 : f32 to vector<16x64xf32>
    %96 = arith.maximumf %94, %95 : vector<16x64xf32>
    %97 = arith.truncf %96 : vector<16x64xf32> to vector<16x64xbf16>
    %c0_52 = arith.constant 0 : index
    %c0_53 = arith.constant 0 : index
    %98 = vector.load %arg14[%c0_52, %c0_53] : memref<64x65xbf16, #tpu.memory_space<vmem>>, vector<64x65xbf16>
    %c0_54 = arith.constant 0 : index
    %c0_55 = arith.constant 0 : index
    %99 = vector.load %arg15[%c0_54, %c0_55] : memref<1x65xf32, #tpu.memory_space<vmem>>, vector<1x65xf32>
    %cst_56 = arith.constant dense<0.000000e+00> : vector<16x65xf32>
    %100 = tpu.matmul %97, %98, %cst_56 {dimension_numbers = #tpu.dot_dimension_numbers<[1], [0], [0], [1], [0, 0, 1, 1], [], []>} : vector<16x64xbf16>, vector<64x65xbf16>, vector<16x65xf32> -> vector<16x65xf32>
    %101 = vector.broadcast %99 : vector<1x65xf32> to vector<16x65xf32>
    %102 = arith.addf %100, %101 : vector<16x65xf32>
    %c0_57 = arith.constant 0 : index
    %c0_58 = arith.constant 0 : index
    %c0_59 = arith.constant 0 : index
    %103 = vector.load %arg16[%c0_57, %c0_58, %c0_59] : memref<1x16x65xf32, #tpu.memory_space<vmem>>, vector<1x16x65xf32>
    %104 = vector.shape_cast %103 : vector<1x16x65xf32> to vector<16x65xf32>
    %105 = vector.shape_cast %102 : vector<16x65xf32> to vector<1x16x65xf32>
    tpu.vector_store %arg16[%c0_57, %c0_58, %c0_59], %105 {strides = array<i32>} : memref<1x16x65xf32, #tpu.memory_space<vmem>>, vector<1x16x65xf32>,
    return
  }
  func.func @transform_0(%arg0: i32) -> (i32, i32, i32) {
    %c0_i32 = arith.constant 0 : i32
    %c0_i32_0 = arith.constant 0 : i32
    %c0_i32_1 = arith.constant 0 : i32
    return %arg0, %c0_i32, %c0_i32_0 : i32, i32, i32
  }
  func.func @transform_1(%arg0: i32) -> (i32, i32) {
    %c0_i32 = arith.constant 0 : i32
    %c0_i32_0 = arith.constant 0 : i32
    %c0_i32_1 = arith.constant 0 : i32
    return %c0_i32, %c0_i32_0 : i32, i32
  }
  func.func @transform_2(%arg0: i32) -> (i32, i32) {
    %c0_i32 = arith.constant 0 : i32
    %c0_i32_0 = arith.constant 0 : i32
    %c0_i32_1 = arith.constant 0 : i32
    return %c0_i32, %c0_i32_0 : i32, i32
  }
  func.func @transform_3(%arg0: i32) -> (i32, i32) {
    %c0_i32 = arith.constant 0 : i32
    %c0_i32_0 = arith.constant 0 : i32
    %c0_i32_1 = arith.constant 0 : i32
    return %c0_i32, %c0_i32_0 : i32, i32
  }
  func.func @transform_4(%arg0: i32) -> (i32, i32) {
    %c0_i32 = arith.constant 0 : i32
    %c0_i32_0 = arith.constant 0 : i32
    %c0_i32_1 = arith.constant 0 : i32
    return %c0_i32, %c0_i32_0 : i32, i32
  }
  func.func @transform_5(%arg0: i32) -> (i32, i32) {
    %c0_i32 = arith.constant 0 : i32
    %c0_i32_0 = arith.constant 0 : i32
    %c0_i32_1 = arith.constant 0 : i32
    return %c0_i32, %c0_i32_0 : i32, i32
  }
  func.func @transform_6(%arg0: i32) -> (i32, i32) {
    %c0_i32 = arith.constant 0 : i32
    %c0_i32_0 = arith.constant 0 : i32
    %c0_i32_1 = arith.constant 0 : i32
    return %c0_i32, %c0_i32_0 : i32, i32
  }
  func.func @transform_7(%arg0: i32) -> (i32, i32) {
    %c0_i32 = arith.constant 0 : i32
    %c0_i32_0 = arith.constant 0 : i32
    %c0_i32_1 = arith.constant 0 : i32
    return %c0_i32, %c0_i32_0 : i32, i32
  }
  func.func @transform_8(%arg0: i32) -> (i32, i32) {
    %c0_i32 = arith.constant 0 : i32
    %c0_i32_0 = arith.constant 0 : i32
    %c0_i32_1 = arith.constant 0 : i32
    return %c0_i32, %c0_i32_0 : i32, i32
  }
  func.func @transform_9(%arg0: i32) -> (i32, i32) {
    %c0_i32 = arith.constant 0 : i32
    %c0_i32_0 = arith.constant 0 : i32
    %c0_i32_1 = arith.constant 0 : i32
    return %c0_i32, %c0_i32_0 : i32, i32
  }
  func.func @transform_10(%arg0: i32) -> (i32, i32) {
    %c0_i32 = arith.constant 0 : i32
    %c0_i32_0 = arith.constant 0 : i32
    %c0_i32_1 = arith.constant 0 : i32
    return %c0_i32, %c0_i32_0 : i32, i32
  }
  func.func @transform_11(%arg0: i32) -> (i32, i32) {
    %c0_i32 = arith.constant 0 : i32
    %c0_i32_0 = arith.constant 0 : i32
    %c0_i32_1 = arith.constant 0 : i32
    return %c0_i32, %c0_i32_0 : i32, i32
  }
  func.func @transform_12(%arg0: i32) -> (i32, i32) {
    %c0_i32 = arith.constant 0 : i32
    %c0_i32_0 = arith.constant 0 : i32
    %c0_i32_1 = arith.constant 0 : i32
    return %c0_i32, %c0_i32_0 : i32, i32
  }
  func.func @transform_13(%arg0: i32) -> (i32, i32) {
    %c0_i32 = arith.constant 0 : i32
    %c0_i32_0 = arith.constant 0 : i32
    %c0_i32_1 = arith.constant 0 : i32
    return %c0_i32, %c0_i32_0 : i32, i32
  }
  func.func @transform_14(%arg0: i32) -> (i32, i32) {
    %c0_i32 = arith.constant 0 : i32
    %c0_i32_0 = arith.constant 0 : i32
    %c0_i32_1 = arith.constant 0 : i32
    return %c0_i32, %c0_i32_0 : i32, i32
  }
  func.func @transform_15(%arg0: i32) -> (i32, i32, i32) {
    %c0_i32 = arith.constant 0 : i32
    %c0_i32_0 = arith.constant 0 : i32
    %c0_i32_1 = arith.constant 0 : i32
    return %arg0, %c0_i32, %c0_i32_0 : i32, i32, i32
  }
}

</mosaic_0001>

<bundles_post_ra>
// kernel: reverse
= control target key start
LH: loop header
LB: loop body
LE: loop exit
PB: predicated region body
PF: predicated region fallthrough
CT: control target
= control target key end

     0   :  { %s872_s0 = inlined_call_operand.vmem [shape: bf16[3,3,64,64], index: 0, kind: input, shape index: {}]   ;;  %s873_s1 = inlined_call_operand.vmem [shape: bf16[3,3,64,64], index: 1, kind: output, shape index: {}]  }
   0x1   :  { %v504_v0 = vld [vmem:[%s872_s0 + $0x100] sm:$0xff]   ;;  %v538_v9 = vld [vmem:[%s872_s0 + $0x108] sm:$0xff]   ;;  %v574_v18 = vld [vmem:[%s872_s0 + $0x110] sm:$0xff]  }
   0x2   :  { %v505_v1 = vld [vmem:[%s872_s0 + $0xa0] sm:$0xff]   ;;  %7 = vst [vmem:[%s873_s1] sm:$0xff] %v504_v0   ;;  %v540_v10 = vld [vmem:[%s872_s0 + $0xa8] sm:$0xff]   ;;  %539 = vst [vmem:[%s873_s1 + $0x8] sm:$0xff] %v538_v9  }
   0x3   :  { %v507_v2 = vld [vmem:[%s872_s0 + $0x40] sm:$0xff]   ;;  %506 = vst [vmem:[%s873_s1 + $0x60] sm:$0xff] %v505_v1   ;;  %v542_v11 = vld [vmem:[%s872_s0 + $0x48] sm:$0xff]   ;;  %541 = vst [vmem:[%s873_s1 + $0x68] sm:$0xff] %v540_v10  }
   0x4   :  { %508 = vst [vmem:[%s873_s1 + $0xc0] sm:$0xff] %v507_v2   ;;  %v509_v3 = vld [vmem:[%s872_s0 + $0xe0] sm:$0xff]   ;;  %543 = vst [vmem:[%s873_s1 + $0xc8] sm:$0xff] %v542_v11   ;;  %v544_v12 = vld [vmem:[%s872_s0 + $0xe8] sm:$0xff]  }
   0x5   :  { %v511_v4 = vld [vmem:[%s872_s0 + $0x80] sm:$0xff]   ;;  %510 = vst [vmem:[%s873_s1 + $0x20] sm:$0xff] %v509_v3   ;;  %v546_v13 = vld [vmem:[%s872_s0 + $0x88] sm:$0xff]   ;;  %545 = vst [vmem:[%s873_s1 + $0x28] sm:$0xff] %v544_v12  }
   0x6   :  { %v513_v5 = vld [vmem:[%s872_s0 + $0x20] sm:$0xff]   ;;  %512 = vst [vmem:[%s873_s1 + $0x80] sm:$0xff] %v511_v4   ;;  %v548_v14 = vld [vmem:[%s872_s0 + $0x28] sm:$0xff]   ;;  %547 = vst [vmem:[%s873_s1 + $0x88] sm:$0xff] %v546_v13  }
   0x7   :  { %514 = vst [vmem:[%s873_s1 + $0xe0] sm:$0xff] %v513_v5   ;;  %v515_v6 = vld [vmem:[%s872_s0 + $0xc0] sm:$0xff]   ;;  %549 = vst [vmem:[%s873_s1 + $0xe8] sm:$0xff] %v548_v14   ;;  %v550_v15 = vld [vmem:[%s872_s0 + $0xc8] sm:$0xff]  }
   0x8   :  { %v517_v7 = vld [vmem:[%s872_s0 + $0x60] sm:$0xff]   ;;  %516 = vst [vmem:[%s873_s1 + $0x40] sm:$0xff] %v515_v6   ;;  %v552_v16 = vld [vmem:[%s872_s0 + $0x68] sm:$0xff]   ;;  %551 = vst [vmem:[%s873_s1 + $0x48] sm:$0xff] %v550_v15  }
   0x9   :  { %v57_v8 = vld [vmem:[%s872_s0] sm:$0xff]   ;;  %518 = vst [vmem:[%s873_s1 + $0xa0] sm:$0xff] %v517_v7   ;;  %v554_v17 = vld [vmem:[%s872_s0 + $0x8] sm:$0xff]   ;;  %553 = vst [vmem:[%s873_s1 + $0xa8] sm:$0xff] %v552_v16  }
   0xa   :  { %519 = vst [vmem:[%s873_s1 + $0x100] sm:$0xff] %v57_v8   ;;  %555 = vst [vmem:[%s873_s1 + $0x108] sm:$0xff] %v554_v17   ;;  %v576_v19 = vld [vmem:[%s872_s0 + $0xb0] sm:$0xff]   ;;  %v610_v27 = vld [vmem:[%s872_s0 + $0x118] sm:$0xff]  }
   0xb   :  { %v578_v20 = vld [vmem:[%s872_s0 + $0x50] sm:$0xff]   ;;  %575 = vst [vmem:[%s873_s1 + $0x10] sm:$0xff] %v574_v18   ;;  %577 = vst [vmem:[%s873_s1 + $0x70] sm:$0xff] %v576_v19   ;;  %v612_v28 = vld [vmem:[%s872_s0 + $0xb8] sm:$0xff]  }
   0xc   :  { %579 = vst [vmem:[%s873_s1 + $0xd0] sm:$0xff] %v578_v20   ;;  %v580_v21 = vld [vmem:[%s872_s0 + $0xf0] sm:$0xff]   ;;  %v614_v29 = vld [vmem:[%s872_s0 + $0x58] sm:$0xff]   ;;  %611 = vst [vmem:[%s873_s1 + $0x18] sm:$0xff] %v610_v27  }
   0xd   :  { %v582_v22 = vld [vmem:[%s872_s0 + $0x90] sm:$0xff]   ;;  %581 = vst [vmem:[%s873_s1 + $0x30] sm:$0xff] %v580_v21   ;;  %613 = vst [vmem:[%s873_s1 + $0x78] sm:$0xff] %v612_v28   ;;  %v616_v30 = vld [vmem:[%s872_s0 + $0xf8] sm:$0xff]  }
   0xe   :  { %v584_v23 = vld [vmem:[%s872_s0 + $0x30] sm:$0xff]   ;;  %583 = vst [vmem:[%s873_s1 + $0x90] sm:$0xff] %v582_v22   ;;  %615 = vst [vmem:[%s873_s1 + $0xd8] sm:$0xff] %v614_v29   ;;  %v618_v31 = vld [vmem:[%s872_s0 + $0x98] sm:$0xff]  }
   0xf   :  { %585 = vst [vmem:[%s873_s1 + $0xf0] sm:$0xff] %v584_v23   ;;  %v586_v24 = vld [vmem:[%s872_s0 + $0xd0] sm:$0xff]   ;;  %v620_v32 = vld [vmem:[%s872_s0 + $0x38] sm:$0xff]   ;;  %617 = vst [vmem:[%s873_s1 + $0x38] sm:$0xff] %v616_v30  }
  0x10   :  { %v588_v25 = vld [vmem:[%s872_s0 + $0x70] sm:$0xff]   ;;  %587 = vst [vmem:[%s873_s1 + $0x50] sm:$0xff] %v586_v24   ;;  %619 = vst [vmem:[%s873_s1 + $0x98] sm:$0xff] %v618_v31   ;;  %v622_v33 = vld [vmem:[%s872_s0 + $0xd8] sm:$0xff]  }
  0x11   :  { %v590_v26 = vld [vmem:[%s872_s0 + $0x10] sm:$0xff]   ;;  %589 = vst [vmem:[%s873_s1 + $0xb0] sm:$0xff] %v588_v25   ;;  %621 = vst [vmem:[%s873_s1 + $0xf8] sm:$0xff] %v620_v32   ;;  %v624_v34 = vld [vmem:[%s872_s0 + $0x78] sm:$0xff]  }
  0x12   :  { %591 = vst [vmem:[%s873_s1 + $0x110] sm:$0xff] %v590_v26   ;;  %v626_v35 = vld [vmem:[%s872_s0 + $0x18] sm:$0xff]   ;;  %623 = vst [vmem:[%s873_s1 + $0x58] sm:$0xff] %v622_v33  }
  0x13   :  { %625 = vst [vmem:[%s873_s1 + $0xb8] sm:$0xff] %v624_v34   ;;  %627 = vst [vmem:[%s873_s1 + $0x118] sm:$0xff] %v626_v35  }

// kernel: reverse.2
= control target key start
LH: loop header
LB: loop body
LE: loop exit
PB: predicated region body
PF: predicated region fallthrough
CT: control target
= control target key end

     0   :  { %s872_s0 = inlined_call_operand.vmem [shape: bf16[3,3,64,128], index: 0, kind: input, shape index: {}]   ;;  %s873_s1 = inlined_call_operand.vmem [shape: bf16[3,3,64,128], index: 1, kind: output, shape index: {}]  }
   0x1   :  { %v504_v0 = vld [vmem:[%s872_s0 + $0x100] sm:$0xff]   ;;  %v538_v9 = vld [vmem:[%s872_s0 + $0x108] sm:$0xff]   ;;  %v574_v18 = vld [vmem:[%s872_s0 + $0x110] sm:$0xff]  }
   0x2   :  { %v505_v1 = vld [vmem:[%s872_s0 + $0xa0] sm:$0xff]   ;;  %7 = vst [vmem:[%s873_s1] sm:$0xff] %v504_v0   ;;  %v540_v10 = vld [vmem:[%s872_s0 + $0xa8] sm:$0xff]   ;;  %539 = vst [vmem:[%s873_s1 + $0x8] sm:$0xff] %v538_v9  }
   0x3   :  { %v507_v2 = vld [vmem:[%s872_s0 + $0x40] sm:$0xff]   ;;  %506 = vst [vmem:[%s873_s1 + $0x60] sm:$0xff] %v505_v1   ;;  %v542_v11 = vld [vmem:[%s872_s0 + $0x48] sm:$0xff]   ;;  %541 = vst [vmem:[%s873_s1 + $0x68] sm:$0xff] %v540_v10  }
   0x4   :  { %508 = vst [vmem:[%s873_s1 + $0xc0] sm:$0xff] %v507_v2   ;;  %v509_v3 = vld [vmem:[%s872_s0 + $0xe0] sm:$0xff]   ;;  %543 = vst [vmem:[%s873_s1 + $0xc8] sm:$0xff] %v542_v11   ;;  %v544_v12 = vld [vmem:[%s872_s0 + $0xe8] sm:$0xff]  }
   0x5   :  { %v511_v4 = vld [vmem:[%s872_s0 + $0x80] sm:$0xff]   ;;  %510 = vst [vmem:[%s873_s1 + $0x20] sm:$0xff] %v509_v3   ;;  %v546_v13 = vld [vmem:[%s872_s0 + $0x88] sm:$0xff]   ;;  %545 = vst [vmem:[%s873_s1 + $0x28] sm:$0xff] %v544_v12  }
   0x6   :  { %v513_v5 = vld [vmem:[%s872_s0 + $0x20] sm:$0xff]   ;;  %512 = vst [vmem:[%s873_s1 + $0x80] sm:$0xff] %v511_v4   ;;  %v548_v14 = vld [vmem:[%s872_s0 + $0x28] sm:$0xff]   ;;  %547 = vst [vmem:[%s873_s1 + $0x88] sm:$0xff] %v546_v13  }
   0x7   :  { %514 = vst [vmem:[%s873_s1 + $0xe0] sm:$0xff] %v513_v5   ;;  %v515_v6 = vld [vmem:[%s872_s0 + $0xc0] sm:$0xff]   ;;  %549 = vst [vmem:[%s873_s1 + $0xe8] sm:$0xff] %v548_v14   ;;  %v550_v15 = vld [vmem:[%s872_s0 + $0xc8] sm:$0xff]  }
   0x8   :  { %v517_v7 = vld [vmem:[%s872_s0 + $0x60] sm:$0xff]   ;;  %516 = vst [vmem:[%s873_s1 + $0x40] sm:$0xff] %v515_v6   ;;  %v552_v16 = vld [vmem:[%s872_s0 + $0x68] sm:$0xff]   ;;  %551 = vst [vmem:[%s873_s1 + $0x48] sm:$0xff] %v550_v15  }
   0x9   :  { %v57_v8 = vld [vmem:[%s872_s0] sm:$0xff]   ;;  %518 = vst [vmem:[%s873_s1 + $0xa0] sm:$0xff] %v517_v7   ;;  %v554_v17 = vld [vmem:[%s872_s0 + $0x8] sm:$0xff]   ;;  %553 = vst [vmem:[%s873_s1 + $0xa8] sm:$0xff] %v552_v16  }
   0xa   :  { %519 = vst [vmem:[%s873_s1 + $0x100] sm:$0xff] %v57_v8   ;;  %555 = vst [vmem:[%s873_s1 + $0x108] sm:$0xff] %v554_v17   ;;  %v576_v19 = vld [vmem:[%s872_s0 + $0xb0] sm:$0xff]   ;;  %v610_v27 = vld [vmem:[%s872_s0 + $0x118] sm:$0xff]  }
   0xb   :  { %v578_v20 = vld [vmem:[%s872_s0 + $0x50] sm:$0xff]   ;;  %575 = vst [vmem:[%s873_s1 + $0x10] sm:$0xff] %v574_v18   ;;  %577 = vst [vmem:[%s873_s1 + $0x70] sm:$0xff] %v576_v19   ;;  %v612_v28 = vld [vmem:[%s872_s0 + $0xb8] sm:$0xff]  }
   0xc   :  { %579 = vst [vmem:[%s873_s1 + $0xd0] sm:$0xff] %v578_v20   ;;  %v580_v21 = vld [vmem:[%s872_s0 + $0xf0] sm:$0xff]   ;;  %v614_v29 = vld [vmem:[%s872_s0 + $0x58] sm:$0xff]   ;;  %611 = vst [vmem:[%s873_s1 + $0x18] sm:$0xff] %v610_v27  }
   0xd   :  { %v582_v22 = vld [vmem:[%s872_s0 + $0x90] sm:$0xff]   ;;  %581 = vst [vmem:[%s873_s1 + $0x30] sm:$0xff] %v580_v21   ;;  %613 = vst [vmem:[%s873_s1 + $0x78] sm:$0xff] %v612_v28   ;;  %v616_v30 = vld [vmem:[%s872_s0 + $0xf8] sm:$0xff]  }
   0xe   :  { %v584_v23 = vld [vmem:[%s872_s0 + $0x30] sm:$0xff]   ;;  %583 = vst [vmem:[%s873_s1 + $0x90] sm:$0xff] %v582_v22   ;;  %615 = vst [vmem:[%s873_s1 + $0xd8] sm:$0xff] %v614_v29   ;;  %v618_v31 = vld [vmem:[%s872_s0 + $0x98] sm:$0xff]  }
   0xf   :  { %585 = vst [vmem:[%s873_s1 + $0xf0] sm:$0xff] %v584_v23   ;;  %v586_v24 = vld [vmem:[%s872_s0 + $0xd0] sm:$0xff]   ;;  %v620_v32 = vld [vmem:[%s872_s0 + $0x38] sm:$0xff]   ;;  %617 = vst [vmem:[%s873_s1 + $0x38] sm:$0xff] %v616_v30  }
  0x10   :  { %v588_v25 = vld [vmem:[%s872_s0 + $0x70] sm:$0xff]   ;;  %587 = vst [vmem:[%s873_s1 + $0x50] sm:$0xff] %v586_v24   ;;  %619 = vst [vmem:[%s873_s1 + $0x98] sm:$0xff] %v618_v31   ;;  %v622_v33 = vld [vmem:[%s872_s0 + $0xd8] sm:$0xff]  }
  0x11   :  { %v590_v26 = vld [vmem:[%s872_s0 + $0x10] sm:$0xff]   ;;  %589 = vst [vmem:[%s873_s1 + $0xb0] sm:$0xff] %v588_v25   ;;  %621 = vst [vmem:[%s873_s1 + $0xf8] sm:$0xff] %v620_v32   ;;  %v624_v34 = vld [vmem:[%s872_s0 + $0x78] sm:$0xff]  }
  0x12   :  { %591 = vst [vmem:[%s873_s1 + $0x110] sm:$0xff] %v590_v26   ;;  %v626_v35 = vld [vmem:[%s872_s0 + $0x18] sm:$0xff]   ;;  %623 = vst [vmem:[%s873_s1 + $0x58] sm:$0xff] %v622_v33  }
  0x13   :  { %625 = vst [vmem:[%s873_s1 + $0xb8] sm:$0xff] %v624_v34   ;;  %627 = vst [vmem:[%s873_s1 + $0x118] sm:$0xff] %v626_v35  }

// kernel: reverse.3
= control target key start
LH: loop header
LB: loop body
LE: loop exit
PB: predicated region body
PF: predicated region fallthrough
CT: control target
= control target key end

     0   :  { %s1736_s0 = inlined_call_operand.vmem [shape: bf16[3,3,128,128], index: 0, kind: input, shape index: {}]   ;;  %s1737_s1 = inlined_call_operand.vmem [shape: bf16[3,3,128,128], index: 1, kind: output, shape index: {}]  }
   0x1   :  { %v1008_v0 = vld [vmem:[%s1736_s0 + $0x200] sm:$0xff]   ;;  %v1042_v9 = vld [vmem:[%s1736_s0 + $0x208] sm:$0xff]   ;;  %v1078_v18 = vld [vmem:[%s1736_s0 + $0x210] sm:$0xff]  }
   0x2   :  { %v1009_v1 = vld [vmem:[%s1736_s0 + $0x140] sm:$0xff]   ;;  %7 = vst [vmem:[%s1737_s1] sm:$0xff] %v1008_v0   ;;  %v1044_v10 = vld [vmem:[%s1736_s0 + $0x148] sm:$0xff]   ;;  %1043 = vst [vmem:[%s1737_s1 + $0x8] sm:$0xff] %v1042_v9  }
   0x3   :  { %v1011_v2 = vld [vmem:[%s1736_s0 + $0x80] sm:$0xff]   ;;  %1010 = vst [vmem:[%s1737_s1 + $0xc0] sm:$0xff] %v1009_v1   ;;  %v1046_v11 = vld [vmem:[%s1736_s0 + $0x88] sm:$0xff]   ;;  %1045 = vst [vmem:[%s1737_s1 + $0xc8] sm:$0xff] %v1044_v10  }
   0x4   :  { %1012 = vst [vmem:[%s1737_s1 + $0x180] sm:$0xff] %v1011_v2   ;;  %v1013_v3 = vld [vmem:[%s1736_s0 + $0x1c0] sm:$0xff]   ;;  %1047 = vst [vmem:[%s1737_s1 + $0x188] sm:$0xff] %v1046_v11   ;;  %v1048_v12 = vld [vmem:[%s1736_s0 + $0x1c8] sm:$0xff]  }
   0x5   :  { %v1015_v4 = vld [vmem:[%s1736_s0 + $0x100] sm:$0xff]   ;;  %1014 = vst [vmem:[%s1737_s1 + $0x40] sm:$0xff] %v1013_v3   ;;  %v1050_v13 = vld [vmem:[%s1736_s0 + $0x108] sm:$0xff]   ;;  %1049 = vst [vmem:[%s1737_s1 + $0x48] sm:$0xff] %v1048_v12  }
   0x6   :  { %v1017_v5 = vld [vmem:[%s1736_s0 + $0x40] sm:$0xff]   ;;  %1016 = vst [vmem:[%s1737_s1 + $0x100] sm:$0xff] %v1015_v4   ;;  %v1052_v14 = vld [vmem:[%s1736_s0 + $0x48] sm:$0xff]   ;;  %1051 = vst [vmem:[%s1737_s1 + $0x108] sm:$0xff] %v1050_v13  }
   0x7   :  { %1018 = vst [vmem:[%s1737_s1 + $0x1c0] sm:$0xff] %v1017_v5   ;;  %v1019_v6 = vld [vmem:[%s1736_s0 + $0x180] sm:$0xff]   ;;  %1053 = vst [vmem:[%s1737_s1 + $0x1c8] sm:$0xff] %v1052_v14   ;;  %v1054_v15 = vld [vmem:[%s1736_s0 + $0x188] sm:$0xff]  }
   0x8   :  { %v1021_v7 = vld [vmem:[%s1736_s0 + $0xc0] sm:$0xff]   ;;  %1020 = vst [vmem:[%s1737_s1 + $0x80] sm:$0xff] %v1019_v6   ;;  %v1056_v16 = vld [vmem:[%s1736_s0 + $0xc8] sm:$0xff]   ;;  %1055 = vst [vmem:[%s1737_s1 + $0x88] sm:$0xff] %v1054_v15  }
   0x9   :  { %v57_v8 = vld [vmem:[%s1736_s0] sm:$0xff]   ;;  %1022 = vst [vmem:[%s1737_s1 + $0x140] sm:$0xff] %v1021_v7   ;;  %v1058_v17 = vld [vmem:[%s1736_s0 + $0x8] sm:$0xff]   ;;  %1057 = vst [vmem:[%s1737_s1 + $0x148] sm:$0xff] %v1056_v16  }
   0xa   :  { %1023 = vst [vmem:[%s1737_s1 + $0x200] sm:$0xff] %v57_v8   ;;  %1059 = vst [vmem:[%s1737_s1 + $0x208] sm:$0xff] %v1058_v17   ;;  %v1080_v19 = vld [vmem:[%s1736_s0 + $0x150] sm:$0xff]   ;;  %v1114_v27 = vld [vmem:[%s1736_s0 + $0x218] sm:$0xff]  }
   0xb   :  { %v1082_v20 = vld [vmem:[%s1736_s0 + $0x90] sm:$0xff]   ;;  %1079 = vst [vmem:[%s1737_s1 + $0x10] sm:$0xff] %v1078_v18   ;;  %1081 = vst [vmem:[%s1737_s1 + $0xd0] sm:$0xff] %v1080_v19   ;;  %v1116_v28 = vld [vmem:[%s1736_s0 + $0x158] sm:$0xff]  }
   0xc   :  { %1083 = vst [vmem:[%s1737_s1 + $0x190] sm:$0xff] %v1082_v20   ;;  %v1084_v21 = vld [vmem:[%s1736_s0 + $0x1d0] sm:$0xff]   ;;  %v1118_v29 = vld [vmem:[%s1736_s0 + $0x98] sm:$0xff]   ;;  %1115 = vst [vmem:[%s1737_s1 + $0x18] sm:$0xff] %v1114_v27  }
   0xd   :  { %v1086_v22 = vld [vmem:[%s1736_s0 + $0x110] sm:$0xff]   ;;  %1085 = vst [vmem:[%s1737_s1 + $0x50] sm:$0xff] %v1084_v21   ;;  %1117 = vst [vmem:[%s1737_s1 + $0xd8] sm:$0xff] %v1116_v28   ;;  %v1120_v30 = vld [vmem:[%s1736_s0 + $0x1d8] sm:$0xff]  }
   0xe   :  { %v1088_v23 = vld [vmem:[%s1736_s0 + $0x50] sm:$0xff]   ;;  %1087 = vst [vmem:[%s1737_s1 + $0x110] sm:$0xff] %v1086_v22   ;;  %1119 = vst [vmem:[%s1737_s1 + $0x198] sm:$0xff] %v1118_v29   ;;  %v1122_v31 = vld [vmem:[%s1736_s0 + $0x118] sm:$0xff]  }
   0xf   :  { %1089 = vst [vmem:[%s1737_s1 + $0x1d0] sm:$0xff] %v1088_v23   ;;  %v1090_v24 = vld [vmem:[%s1736_s0 + $0x190] sm:$0xff]   ;;  %v1124_v32 = vld [vmem:[%s1736_s0 + $0x58] sm:$0xff]   ;;  %1121 = vst [vmem:[%s1737_s1 + $0x58] sm:$0xff] %v1120_v30  }
  0x10   :  { %v1092_v25 = vld [vmem:[%s1736_s0 + $0xd0] sm:$0xff]   ;;  %1091 = vst [vmem:[%s1737_s1 + $0x90] sm:$0xff] %v1090_v24   ;;  %1123 = vst [vmem:[%s1737_s1 + $0x118] sm:$0xff] %v1122_v31   ;;  %v1126_v33 = vld [vmem:[%s1736_s0 + $0x198] sm:$0xff]  }
  0x11   :  { %v1094_v26 = vld [vmem:[%s1736_s0 + $0x10] sm:$0xff]   ;;  %1093 = vst [vmem:[%s1737_s1 + $0x150] sm:$0xff] %v1092_v25   ;;  %1125 = vst [vmem:[%s1737_s1 + $0x1d8] sm:$0xff] %v1124_v32   ;;  %v1128_v34 = vld [vmem:[%s1736_s0 + $0xd8] sm:$0xff]  }
  0x12   :  { %1095 = vst [vmem:[%s1737_s1 + $0x210] sm:$0xff] %v1094_v26   ;;  %v1130_v35 = vld [vmem:[%s1736_s0 + $0x18] sm:$0xff]   ;;  %1127 = vst [vmem:[%s1737_s1 + $0x98] sm:$0xff] %v1126_v33   ;;  %v1150_v36 = vld [vmem:[%s1736_s0 + $0x220] sm:$0xff]  }
  0x13   :  { %1129 = vst [vmem:[%s1737_s1 + $0x158] sm:$0xff] %v1128_v34   ;;  %1131 = vst [vmem:[%s1737_s1 + $0x218] sm:$0xff] %v1130_v35   ;;  %v1152_v37 = vld [vmem:[%s1736_s0 + $0x160] sm:$0xff]   ;;  %v1186_v45 = vld [vmem:[%s1736_s0 + $0x228] sm:$0xff]  }
  0x14   :  { %v1154_v38 = vld [vmem:[%s1736_s0 + $0xa0] sm:$0xff]   ;;  %1151 = vst [vmem:[%s1737_s1 + $0x20] sm:$0xff] %v1150_v36   ;;  %1153 = vst [vmem:[%s1737_s1 + $0xe0] sm:$0xff] %v1152_v37   ;;  %v1188_v46 = vld [vmem:[%s1736_s0 + $0x168] sm:$0xff]  }
  0x15   :  { %1155 = vst [vmem:[%s1737_s1 + $0x1a0] sm:$0xff] %v1154_v38   ;;  %v1156_v39 = vld [vmem:[%s1736_s0 + $0x1e0] sm:$0xff]   ;;  %v1190_v47 = vld [vmem:[%s1736_s0 + $0xa8] sm:$0xff]   ;;  %1187 = vst [vmem:[%s1737_s1 + $0x28] sm:$0xff] %v1186_v45  }
  0x16   :  { %v1158_v40 = vld [vmem:[%s1736_s0 + $0x120] sm:$0xff]   ;;  %1157 = vst [vmem:[%s1737_s1 + $0x60] sm:$0xff] %v1156_v39   ;;  %1189 = vst [vmem:[%s1737_s1 + $0xe8] sm:$0xff] %v1188_v46   ;;  %v1192_v48 = vld [vmem:[%s1736_s0 + $0x1e8] sm:$0xff]  }
  0x17   :  { %v1160_v41 = vld [vmem:[%s1736_s0 + $0x60] sm:$0xff]   ;;  %1159 = vst [vmem:[%s1737_s1 + $0x120] sm:$0xff] %v1158_v40   ;;  %1191 = vst [vmem:[%s1737_s1 + $0x1a8] sm:$0xff] %v1190_v47   ;;  %v1194_v49 = vld [vmem:[%s1736_s0 + $0x128] sm:$0xff]  }
  0x18   :  { %1161 = vst [vmem:[%s1737_s1 + $0x1e0] sm:$0xff] %v1160_v41   ;;  %v1162_v42 = vld [vmem:[%s1736_s0 + $0x1a0] sm:$0xff]   ;;  %v1196_v50 = vld [vmem:[%s1736_s0 + $0x68] sm:$0xff]   ;;  %1193 = vst [vmem:[%s1737_s1 + $0x68] sm:$0xff] %v1192_v48  }
  0x19   :  { %v1164_v43 = vld [vmem:[%s1736_s0 + $0xe0] sm:$0xff]   ;;  %1163 = vst [vmem:[%s1737_s1 + $0xa0] sm:$0xff] %v1162_v42   ;;  %1195 = vst [vmem:[%s1737_s1 + $0x128] sm:$0xff] %v1194_v49   ;;  %v1198_v51 = vld [vmem:[%s1736_s0 + $0x1a8] sm:$0xff]  }
  0x1a   :  { %v1166_v44 = vld [vmem:[%s1736_s0 + $0x20] sm:$0xff]   ;;  %1165 = vst [vmem:[%s1737_s1 + $0x160] sm:$0xff] %v1164_v43   ;;  %1197 = vst [vmem:[%s1737_s1 + $0x1e8] sm:$0xff] %v1196_v50   ;;  %v1200_v52 = vld [vmem:[%s1736_s0 + $0xe8] sm:$0xff]  }
  0x1b   :  { %1167 = vst [vmem:[%s1737_s1 + $0x220] sm:$0xff] %v1166_v44   ;;  %v1202_v53 = vld [vmem:[%s1736_s0 + $0x28] sm:$0xff]   ;;  %1199 = vst [vmem:[%s1737_s1 + $0xa8] sm:$0xff] %v1198_v51   ;;  %v1222_v54 = vld [vmem:[%s1736_s0 + $0x230] sm:$0xff]  }
  0x1c   :  { %1201 = vst [vmem:[%s1737_s1 + $0x168] sm:$0xff] %v1200_v52   ;;  %1203 = vst [vmem:[%s1737_s1 + $0x228] sm:$0xff] %v1202_v53   ;;  %v1224_v55 = vld [vmem:[%s1736_s0 + $0x170] sm:$0xff]   ;;  %v1258_v63 = vld [vmem:[%s1736_s0 + $0x238] sm:$0xff]  }
  0x1d   :  { %v1226_v56 = vld [vmem:[%s1736_s0 + $0xb0] sm:$0xff]   ;;  %1223 = vst [vmem:[%s1737_s1 + $0x30] sm:$0xff] %v1222_v54   ;;  %1225 = vst [vmem:[%s1737_s1 + $0xf0] sm:$0xff] %v1224_v55   ;;  %v1260_v0 = vld [vmem:[%s1736_s0 + $0x178] sm:$0xff]  }
  0x1e   :  { %1227 = vst [vmem:[%s1737_s1 + $0x1b0] sm:$0xff] %v1226_v56   ;;  %v1228_v57 = vld [vmem:[%s1736_s0 + $0x1f0] sm:$0xff]   ;;  %v1262_v1 = vld [vmem:[%s1736_s0 + $0xb8] sm:$0xff]   ;;  %1259 = vst [vmem:[%s1737_s1 + $0x38] sm:$0xff] %v1258_v63  }
  0x1f   :  { %v1230_v58 = vld [vmem:[%s1736_s0 + $0x130] sm:$0xff]   ;;  %1229 = vst [vmem:[%s1737_s1 + $0x70] sm:$0xff] %v1228_v57   ;;  %1261 = vst [vmem:[%s1737_s1 + $0xf8] sm:$0xff] %v1260_v0   ;;  %v1264_v2 = vld [vmem:[%s1736_s0 + $0x1f8] sm:$0xff]  }
  0x20   :  { %v1232_v59 = vld [vmem:[%s1736_s0 + $0x70] sm:$0xff]   ;;  %1231 = vst [vmem:[%s1737_s1 + $0x130] sm:$0xff] %v1230_v58   ;;  %1263 = vst [vmem:[%s1737_s1 + $0x1b8] sm:$0xff] %v1262_v1   ;;  %v1266_v3 = vld [vmem:[%s1736_s0 + $0x138] sm:$0xff]  }
  0x21   :  { %1233 = vst [vmem:[%s1737_s1 + $0x1f0] sm:$0xff] %v1232_v59   ;;  %v1234_v60 = vld [vmem:[%s1736_s0 + $0x1b0] sm:$0xff]   ;;  %v1268_v4 = vld [vmem:[%s1736_s0 + $0x78] sm:$0xff]   ;;  %1265 = vst [vmem:[%s1737_s1 + $0x78] sm:$0xff] %v1264_v2  }
  0x22   :  { %v1236_v61 = vld [vmem:[%s1736_s0 + $0xf0] sm:$0xff]   ;;  %1235 = vst [vmem:[%s1737_s1 + $0xb0] sm:$0xff] %v1234_v60   ;;  %1267 = vst [vmem:[%s1737_s1 + $0x138] sm:$0xff] %v1266_v3   ;;  %v1270_v5 = vld [vmem:[%s1736_s0 + $0x1b8] sm:$0xff]  }
  0x23   :  { %v1238_v62 = vld [vmem:[%s1736_s0 + $0x30] sm:$0xff]   ;;  %1237 = vst [vmem:[%s1737_s1 + $0x170] sm:$0xff] %v1236_v61   ;;  %1269 = vst [vmem:[%s1737_s1 + $0x1f8] sm:$0xff] %v1268_v4   ;;  %v1272_v6 = vld [vmem:[%s1736_s0 + $0xf8] sm:$0xff]  }
  0x24   :  { %1239 = vst [vmem:[%s1737_s1 + $0x230] sm:$0xff] %v1238_v62   ;;  %v1274_v7 = vld [vmem:[%s1736_s0 + $0x38] sm:$0xff]   ;;  %1271 = vst [vmem:[%s1737_s1 + $0xb8] sm:$0xff] %v1270_v5  }
  0x25   :  { %1273 = vst [vmem:[%s1737_s1 + $0x178] sm:$0xff] %v1272_v6   ;;  %1275 = vst [vmem:[%s1737_s1 + $0x238] sm:$0xff] %v1274_v7  }

// kernel: xfeat_forward.5
= control target key start
LH: loop header
LB: loop body
LE: loop exit
PB: predicated region body
PF: predicated region fallthrough
CT: control target
= control target key end

     0   :  { %s771_s18 = smov 0   ;;  %s847_s0 = inlined_call_operand.vmem [shape: bf16[2,16,64], index: 0, kind: input, shape index: {}]   ;;  %s848_s1 = inlined_call_operand.vmem [shape: bf16[64,64], index: 1, kind: input, shape index: {}]   ;;  %s849_s2 = inlined_call_operand.vmem [shape: f32[1,64], index: 2, kind: input, shape index: {}]   ;;  %s850_s3 = inlined_call_operand.vmem [shape: f32[1,64], index: 3, kind: input, shape index: {}]   ;;  %s851_s4 = inlined_call_operand.vmem [shape: f32[64,64], index: 4, kind: input, shape index: {}]   ;;  %s852_s5 = inlined_call_operand.vmem [shape: bf16[2,16,64], index: 5, kind: output, shape index: {}]  }
   0x1 LB: > { %s588_s19 = sadd.s32 4294967295, %s736_s18   ;;  %p592_p0 = scmp.ge.s32.totalorder %s736_s18, 1  ;;  %s736_s18 = sphi %s771_s18, %s15_s18  }
   0x2   : > { %p187_p1 = scmp.lt.s32.totalorder %s736_s18, 3 }
   0x4   : > { %p188_p2 = pnand %p592_p0, %p187_p1 }
   0x5   : > { %v723_v0 = vld [vmem:[%s848_s1] sm:$0xff] (!%p188_p2)   ;;  %v738_v1 = vmov (!%p188_p2), 0.0   ;;  %v724_v2 = vld [vmem:[%s848_s1 + $0x8] sm:$0xff] (!%p188_p2)   ;;  %vm739_vm0 = vmmov (!%p188_p2), 0   ;;  %p215_p3 = scmp.lt.s32.totalorder (!%p188_p2), %s588_s19, 1  ;;  %v725_v3 = vld [vmem:[%s848_s1 + $0x10] sm:$0xff] (!%p188_p2)   ;;  %v490_v43 = vlaneseq (!%p188_p2) }
   0x6   : > { %191 = sbr.rel (%p188_p2) target bundleno = 495 (0x1ef), region = 40  ;;  %638 = vmatprep.subr.bf16.mxu0 (!%p188_p2), %v738_v1  ;;  %646 = vmatprep.mubr.msk.bf16.mxu0 (!%p188_p2), %vm739_vm0, %v738_v1  ;;  %v726_v4 = vld [vmem:[%s848_s1 + $0x18] sm:$0xff] (!%p188_p2)   ;;  %vm275_vm1 = vcmask (!%p188_p2), 523264   ;;  %v238_v6 = vld [vmem:[%s851_s4] sm:$0xff] (!%p188_p2)  ;;  %v239_v7 = vld [vmem:[%s851_s4 + $0x8] sm:$0xff] (!%p188_p2)  ;;  %v740_v9 = vmov (!%p188_p2), 0.0|0.0  }
   0x7   : > { %639 = vmatpush3.bf16.msra.mxu0 (!%p188_p2), %v723_v0  ;;  %666 = vmatprep.mubr.msk.f32.mxu1 (!%p188_p2), %vm739_vm0, %v738_v1  ;;  %v689_v8 = vpack.c.bf16 (!%p188_p2), %v239_v7, %v238_v6  ;;  %v240_v10 = vld [vmem:[%s851_s4 + $0x10] sm:$0xff] (!%p188_p2)  ;;  %v241_v11 = vld [vmem:[%s851_s4 + $0x18] sm:$0xff] (!%p188_p2)  ;;  %v242_v13 = vld [vmem:[%s851_s4 + $0x20] sm:$0xff] (!%p188_p2)  ;;  %v491_v44 = vshrl.u32 (!%p188_p2), %v490_v43, 7  ;;  %vm530_vm2 = vcmask (!%p188_p2), 519168  }
   0x8   : > { %640 = vmatprep.subr.bf16.mxu0 (!%p188_p2), %v738_v1  ;;  %688 = vmatprep.subr.bf16.mxu1 (!%p188_p2), %v740_v9  ;;  %v692_v12 = vpack.c.bf16 (!%p188_p2), %v241_v11, %v240_v10  ;;  %v243_v14 = vld [vmem:[%s851_s4 + $0x28] sm:$0xff] (!%p188_p2)  ;;  %v244_v16 = vld [vmem:[%s851_s4 + $0x30] sm:$0xff] (!%p188_p2)  ;;  %v245_v17 = vld [vmem:[%s851_s4 + $0x38] sm:$0xff] (!%p188_p2) }
   0x9   : > { %690 = vmatpush3.bf16.msra.mxu1 (!%p188_p2), %v689_v8  ;;  %v695_v15 = vpack.c.bf16 (!%p188_p2), %v243_v14, %v242_v13  ;;  %v698_v18 = vpack.c.bf16 (!%p188_p2), %v245_v17, %v244_v16  ;;  %v492_v45 = vsub.s32 (!%p188_p2), 0, %v491_v44  ;;  %v605_v60 = vld [vmem:[%s849_s2] ss:$0 sm:$0xff] (!%p188_p2) }
   0xa   : > { %691 = vmatprep.subr.bf16.mxu1 (!%p188_p2), %v740_v9  ;;  %v606_v63 = vld [vmem:[%s850_s3] ss:$0 sm:$0xff] (!%p188_p2) }
   0xb   : > { %641 = vmatpush3.bf16.msra.mxu0 (!%p188_p2), %v724_v2 }
   0xc   : > { %642 = vmatprep.subr.bf16.mxu0 (!%p188_p2), %v738_v1 }
   0xd   : > { %s854_s19 = smov (!%p215_p3, %s588_s19), 1  ;;  %693 = vmatpush3.bf16.msra.mxu1 %v692_v12 }
   0xe   : > { %s611_s26 = sshll.u32 %s854_s19, 3  ;;  %694 = vmatprep.subr.bf16.mxu1 %v740_v9 }
   0xf   : > { %s219_s29 = scalar_lea.vmem %s847_s0, %s611_s26  ;;  %643 = vmatpush3.bf16.msra.mxu0 %v725_v3  ;;  %s224_s7 = scalar_lea.vmem %s852_s5, %s611_s26 }
  0x10   : > { %644 = vmatprep.subr.bf16.mxu0 %v738_v1  ;;  %v727_v5 = vld [vmem:[%s219_s29] sm:$0xff]  }
  0x11   : > { %696 = vmatpush3.bf16.msra.mxu1 %v695_v15 }
  0x12   : > { %697 = vmatprep.subr.bf16.mxu1 %v740_v9 }
  0x13   : > { %645 = vmatpush3.bf16.msra.mxu0 %v726_v4 }
  0x14   : > { %700 = vmatprep.subr.bf16.mxu0 %v740_v9 }
  0x15   : > { %699 = vmatpush3.bf16.msra.mxu1 %v698_v18 }
  0x16   : > { %647 = vmatmul.mubr.msk.bf16.vlgmr.msra.gmra.mrb[0].mxu0 %vm275_vm1, %v727_v5 }
  0x17   : > { %685 = vmatprep.mubr.msk.f32.mxu0 %vm739_vm0, %v738_v1  ;;  %702 = vmatpush3.bf16.msra.mxu0 %v689_v8 }
  0x18   : > { %703 = vmatprep.subr.bf16.mxu0 %v740_v9 }
  0x1b   : > { %705 = vmatpush3.bf16.msra.mxu0 %v692_v12 }
  0x1c   : > { %706 = vmatprep.subr.bf16.mxu0 %v740_v9 }
  0x1f   : > { %708 = vmatpush3.bf16.msra.mxu0 %v695_v15 }
  0x20   : > { %709 = vmatprep.subr.bf16.mxu0 %v740_v9 }
  0x23   : > { %711 = vmatpush3.bf16.msra.mxu0 %v698_v18 }
  0xe9   : > { %v313_v19 = vpop.f32.mrb[0].mxu0 }
  0xea   : > { %v329_v20 = vmul.f32 %v313_v19, %v313_v19  ;;  %v648_v21 = vpop.f32.mrb[1].mxu0  ;;  %v320_v23 = vsel %vm275_vm1, %v313_v19, 0.0 }
  0xeb   : > { %v316_v22 = vpop.f32.mrb[2].mxu0 }
  0xec   : > { %v321_v24 = vsel %vm275_vm1, %v316_v22, 0.0  ;;  %v330_v25 = vmul.f32 %v316_v22, %v316_v22  ;;  %v649_v26 = vpop.f32.mrb[3].mxu0  ;;  %v331_v28 = vsel %vm275_vm1, %v329_v20, 0.0 }
  0xed   : > { %v322_v27 = vadd.f32 %v321_v24, %v320_v23 }
  0xee   : > { %v332_v29 = vsel %vm275_vm1, %v330_v25, 0.0 }
  0xef   : > { %v323_v30 = vrot.slane %v322_v27, 4  ;;  %v333_v31 = vadd.f32 %v332_v29, %v331_v28 }
  0xf1   : > { %v324_v32 = vadd.f32 %v323_v30, %v322_v27  ;;  %v334_v33 = vrot.slane %v333_v31, 4 }
  0xf3   : > { %v325_v34 = vrot.slane %v324_v32, 2  ;;  %v335_v35 = vadd.f32 %v334_v33, %v333_v31 }
  0xf5   : > { %v326_v36 = vadd.f32 %v325_v34, %v324_v32  ;;  %v336_v37 = vrot.slane %v335_v35, 2 }
  0xf7   : > { %v337_v38 = vadd.f32 %v336_v37, %v335_v35  ;;  %v327_v39 = vrot.slane %v326_v36, 1 }
  0xf9   : > { %v338_v40 = vrot.slane %v337_v38, 1  ;;  %v328_v41 = vadd.f32 %v327_v39, %v326_v36 }
  0xfb   : > { %667 = vmatmul.mubr.msk.f32.vlgmr.msra.gmra.mrb[0].mxu1 %vm275_vm1, %v328_v41  ;;  %v339_v42 = vadd.f32 %v338_v40, %v337_v38 }
  0xfd   : > { %686 = vmatmul.mubr.msk.f32.vlgmr.msra.gmra.mrb[4].mxu0 %vm275_vm1, %v339_v42 }
 0x1ce   : > { %v409_v46 = vpop.f32.mrb[0].mxu1 }
 0x1cf   : > { %v413_v47 = vmul.f32 0.00390625, %v409_v46  ;;  %v668_v48 = vpop.f32.mrb[1].mxu1 }
 0x1d0   : > { %v483_v49 = vpop.f32.mrb[4].mxu0 }
 0x1d1   : > { %v488_v50 = vmul.f32 %v413_v47, %v413_v47  ;;  %v493_v51 = vrot.slane %v413_v47, %v492_v45  ;;  %v487_v52 = vmul.f32 0.00390625, %v483_v49  ;;  %v687_v53 = vpop.f32.mrb[5].mxu0 }
 0x1d3   : > { %v494_v54 = vsub.f32 %v313_v19, %v493_v51  ;;  %v495_v55 = vsub.f32 %v316_v22, %v493_v51  ;;  %v489_v56 = vsub.f32 %v487_v52, %v488_v50 }
 0x1d5   : > { %v496_v57 = vadd.f32 1e-05, %v489_v56 }
 0x1d7   : > { %728 = vrsqrt.f32 %v496_v57 }
 0x1e1   : > { %v729_v58 = vpop.eup %728 }
 0x1e2   : > { %v501_v59 = vrot.slane %v729_v58, %v492_v45 }
 0x1e4   : > { %v502_v61 = vmul.f32 %v501_v59, %v494_v54  ;;  %v503_v62 = vmul.f32 %v501_v59, %v495_v55 }
 0x1e6   : > { %v510_v0 = vmul.f32 %v605_v60, %v502_v61  ;;  %v511_v1 = vmul.f32 %v605_v60, %v503_v62 }
 0x1e8   : > { %v518_v2 = vadd.f32 %v606_v63, %v510_v0  ;;  %v519_v3 = vadd.f32 %v606_v63, %v511_v1 }
 0x1ea   : > { %v520_v4 = vmax.f32 %v518_v2, 0.0  ;;  %v521_v5 = vmax.f32 %v519_v3, 0.0 }
 0x1ec   : > { %v613_v6 = vpack.c.bf16 %v520_v4, %v520_v4  ;;  %v614_v7 = vpack.c.bf16 %v521_v5, %v521_v5 }
 0x1ee   : > { %531 = vst.msk [vmem:[%s224_s7] sm:$0xf] %vm530_vm2, %v613_v6  ;;  %532 = vst.msk [vmem:[%s224_s7 + $0x4] sm:$0xf] %vm530_vm2, %v614_v7 }
 0x1ef PF: > { %s15_s18 = sadd.s32 1, %s736_s18  }
 0x1f0   : > { %p12_p4 = scmp.ge.s32.totalorder %s15_s18, 4  }
 0x1f2   :  { %14 = sbr.rel (!%p12_p4) target bundleno = 1 (0x1), region = 70 }

// kernel: xfeat_forward.6
= control target key start
LH: loop header
LB: loop body
LE: loop exit
PB: predicated region body
PF: predicated region fallthrough
CT: control target
= control target key end

     0   :  { %s731_s18 = smov 0   ;;  %s813_s0 = inlined_call_operand.vmem [shape: bf16[2,1,128], index: 0, kind: input, shape index: {}]   ;;  %s814_s1 = inlined_call_operand.vmem [shape: bf16[128,64], index: 1, kind: input, shape index: {}]   ;;  %s815_s2 = inlined_call_operand.vmem [shape: f32[1,64], index: 2, kind: input, shape index: {}]   ;;  %s816_s3 = inlined_call_operand.vmem [shape: f32[1,64], index: 3, kind: input, shape index: {}]   ;;  %s817_s4 = inlined_call_operand.vmem [shape: f32[64,64], index: 4, kind: input, shape index: {}]   ;;  %s818_s5 = inlined_call_operand.vmem [shape: bf16[2,1,64], index: 5, kind: output, shape index: {}]  }
   0x1 LB: > { %s543_s19 = sadd.s32 4294967295, %s696_s18   ;;  %p547_p0 = scmp.ge.s32.totalorder %s696_s18, 1  ;;  %s696_s18 = sphi %s731_s18, %s15_s18  }
   0x2   : > { %p185_p1 = scmp.lt.s32.totalorder %s696_s18, 3 }
   0x4   : > { %p186_p2 = pnand %p547_p0, %p185_p1 }
   0x5   : > { %v680_v0 = vld [vmem:[%s814_s1] sm:$0xff] (!%p186_p2)   ;;  %v698_v1 = vmov (!%p186_p2), 0.0   ;;  %v681_v2 = vld [vmem:[%s814_s1 + $0x8] sm:$0xff] (!%p186_p2)   ;;  %vm699_vm0 = vmmov (!%p186_p2), 0   ;;  %v700_v3 = vmov (!%p186_p2), 0.0|0.0   ;;  %v682_v4 = vld [vmem:[%s814_s1 + $0x10] sm:$0xff] (!%p186_p2)  }
   0x6   : > { %189 = sbr.rel (%p186_p2) target bundleno = 507 (0x1fb), region = 40  ;;  %587 = vmatprep.subr.bf16.mxu0 (!%p186_p2), %v698_v1  ;;  %603 = vmatprep.mubr.msk.bf16.mxu0 (!%p186_p2), %vm699_vm0, %v698_v1  ;;  %v235_v5 = vld [vmem:[%s817_s4] sm:$0xff] (!%p186_p2)  ;;  %v236_v6 = vld [vmem:[%s817_s4 + $0x8] sm:$0xff] (!%p186_p2)  ;;  %v237_v7 = vld [vmem:[%s817_s4 + $0x10] sm:$0xff] (!%p186_p2)  ;;  %p209_p3 = scmp.lt.s32.totalorder (!%p186_p2), %s543_s19, 1  ;;  %vm334_vm1 = vcmask (!%p186_p2), 523264  }
   0x7   : > { %588 = vmatpush3.bf16.msra.mxu0 (!%p186_p2), %v680_v0  ;;  %623 = vmatprep.mubr.msk.f32.mxu1 (!%p186_p2), %vm699_vm0, %v698_v1  ;;  %v238_v8 = vld [vmem:[%s817_s4 + $0x18] sm:$0xff] (!%p186_p2)  ;;  %v646_v10 = vpack.c.bf16 (!%p186_p2), %v236_v6, %v235_v5  ;;  %v239_v12 = vld [vmem:[%s817_s4 + $0x20] sm:$0xff] (!%p186_p2)  ;;  %v240_v13 = vld [vmem:[%s817_s4 + $0x28] sm:$0xff] (!%p186_p2)  ;;  %vm493_vm2 = vcmask (!%p186_p2), 516096   ;;  %vm494_vm3 = vsmask.f32 (!%p186_p2), 256 }
   0x8   : > { %589 = vmatprep.subr.bf16.mxu0 (!%p186_p2), %v698_v1  ;;  %645 = vmatprep.subr.bf16.mxu1 (!%p186_p2), %v700_v3  ;;  %v683_v9 = vld [vmem:[%s814_s1 + $0x18] sm:$0xff] (!%p186_p2)   ;;  %v649_v11 = vpack.c.bf16 (!%p186_p2), %v238_v8, %v237_v7  ;;  %v684_v14 = vld [vmem:[%s814_s1 + $0x20] sm:$0xff] (!%p186_p2)   ;;  %v652_v15 = vpack.c.bf16 (!%p186_p2), %v240_v13, %v239_v12  ;;  %v241_v16 = vld [vmem:[%s817_s4 + $0x30] sm:$0xff] (!%p186_p2) }
   0x9   : > { %647 = vmatpush3.bf16.msra.mxu1 (!%p186_p2), %v646_v10  ;;  %v242_v17 = vld [vmem:[%s817_s4 + $0x38] sm:$0xff] (!%p186_p2)  ;;  %v685_v18 = vld [vmem:[%s814_s1 + $0x28] sm:$0xff] (!%p186_p2)   ;;  %v686_v20 = vld [vmem:[%s814_s1 + $0x30] sm:$0xff] (!%p186_p2)  }
   0xa   : > { %648 = vmatprep.subr.bf16.mxu1 (!%p186_p2), %v700_v3  ;;  %v655_v19 = vpack.c.bf16 (!%p186_p2), %v242_v17, %v241_v16  ;;  %v687_v21 = vld [vmem:[%s814_s1 + $0x38] sm:$0xff] (!%p186_p2)   ;;  %v233_v39 = vld [vmem:[%s815_s2] sm:$0x1] (!%p186_p2)  ;;  %vm495_vm4 = vmand (!%p186_p2), %vm493_vm2, %vm494_vm3 }
   0xb   : > { %590 = vmatpush3.bf16.msra.mxu0 (!%p186_p2), %v681_v2  ;;  %v234_v41 = vld [vmem:[%s816_s3] sm:$0x1] (!%p186_p2) }
   0xc   : > { %591 = vmatprep.subr.bf16.mxu0 (!%p186_p2), %v698_v1 }
   0xd   : > { %650 = vmatpush3.bf16.msra.mxu1 %v649_v11  ;;  %s820_s19 = smov (!%p209_p3, %s543_s19), 1 }
   0xe   : > { %651 = vmatprep.subr.bf16.mxu1 %v700_v3  ;;  %s211_s6 = scalar_lea.vmem %s813_s0, %s820_s19  ;;  %s214_s13 = scalar_lea.vmem %s818_s5, %s820_s19 }
   0xf   : > { %592 = vmatpush3.bf16.msra.mxu0 %v682_v4  ;;  %v216_v22 = vld [vmem:[%s211_s6] sm:$0x1] }
  0x10   : > { %593 = vmatprep.subr.bf16.mxu0 %v698_v1  ;;  %v496_v45 = vld [vmem:[%s214_s13] sm:$0x1] }
  0x11   : > { %653 = vmatpush3.bf16.msra.mxu1 %v652_v15 }
  0x12   : > { %654 = vmatprep.subr.bf16.mxu1 %v700_v3 }
  0x13   : > { %594 = vmatpush3.bf16.msra.mxu0 %v683_v9 }
  0x14   : > { %595 = vmatprep.subr.bf16.mxu0 %v698_v1 }
  0x15   : > { %656 = vmatpush3.bf16.msra.mxu1 %v655_v19 }
  0x16   : > { %657 = vmatprep.subr.bf16.mxu1 %v700_v3 }
  0x17   : > { %596 = vmatpush3.bf16.msra.mxu0 %v684_v14 }
  0x18   : > { %597 = vmatprep.subr.bf16.mxu0 %v698_v1 }
  0x1b   : > { %598 = vmatpush3.bf16.msra.mxu0 %v685_v18 }
  0x1c   : > { %599 = vmatprep.subr.bf16.mxu0 %v698_v1 }
  0x1f   : > { %600 = vmatpush3.bf16.msra.mxu0 %v686_v20 }
  0x20   : > { %601 = vmatprep.subr.bf16.mxu0 %v698_v1 }
  0x23   : > { %602 = vmatpush3.bf16.msra.mxu0 %v687_v21 }
  0x26   : > { %604 = vmatmul.mubr.bf16.vlgmr.msra.gmra.mrb[0].mxu0 %v216_v22 }
  0xf9   : > { %v325_v23 = vpop.f32.mrb[0].mxu0 }
  0xfa   : > { %v605_v24 = vpop.f32.mrb[1].mxu0  ;;  %624 = vmatmul.mubr.msk.f32.vlgmr.msra.gmra.mrb[0].mxu1 %vm334_vm1, %v325_v23  ;;  %v332_v27 = vmul.f32 %v325_v23, %v325_v23 }
  0xfb   : > { %659 = vmatpush3.bf16.msra.mxu1 %v646_v10  ;;  %v328_v25 = vpop.f32.mrb[2].mxu0  ;;  %642 = vmatprep.mubr.msk.f32.mxu1 %vm699_vm0, %v698_v1 }
  0xfc   : > { %v606_v26 = vpop.f32.mrb[3].mxu0  ;;  %660 = vmatprep.subr.bf16.mxu1 %v700_v3 }
  0xff   : > { %662 = vmatpush3.bf16.msra.mxu1 %v649_v11 }
 0x100   : > { %663 = vmatprep.subr.bf16.mxu1 %v700_v3 }
 0x103   : > { %665 = vmatpush3.bf16.msra.mxu1 %v652_v15 }
 0x104   : > { %666 = vmatprep.subr.bf16.mxu1 %v700_v3 }
 0x107   : > { %668 = vmatpush3.bf16.msra.mxu1 %v655_v19 }
 0x10a   : > { %643 = vmatmul.mubr.msk.f32.vlgmr.msra.gmra.mrb[2].mxu1 %vm334_vm1, %v332_v27 }
 0x1cd   : > { %v404_v28 = vpop.f32.mrb[0].mxu1 }
 0x1ce   : > { %v408_v29 = vmul.f32 0.0625, %v404_v28  ;;  %v625_v30 = vpop.f32.mrb[1].mxu1 }
 0x1d0   : > { %v485_v31 = vsub.f32 %v325_v23, %v408_v29  ;;  %v483_v33 = vmul.f32 %v408_v29, %v408_v29 }
 0x1dd   : > { %v478_v32 = vpop.f32.mrb[2].mxu1 }
 0x1de   : > { %v482_v34 = vmul.f32 0.0625, %v478_v32  ;;  %v644_v35 = vpop.f32.mrb[3].mxu1 }
 0x1e0   : > { %v484_v36 = vsub.f32 %v482_v34, %v483_v33 }
 0x1e2   : > { %v486_v37 = vadd.f32 1e-05, %v484_v36 }
 0x1e4   : > { %688 = vrsqrt.f32 %v486_v37 }
 0x1ee   : > { %v689_v38 = vpop.eup %688 }
 0x1ef   : > { %v488_v40 = vmul.f32 %v689_v38, %v485_v31 }
 0x1f1   : > { %v489_v42 = vmul.f32 %v488_v40, %v233_v39 }
 0x1f3   : > { %v490_v43 = vadd.f32 %v489_v42, %v234_v41 }
 0x1f5   : > { %v491_v44 = vmax.f32 %v490_v43, 0.0 }
 0x1f7   : > { %v492_v46 = vpack.c.bf16 %v491_v44, %v491_v44 }
 0x1f9   : > { %v497_v47 = vsel %vm495_vm4, %v492_v46, %v496_v45 }
 0x1fa   : > { %498 = vst [vmem:[%s214_s13] sm:$0x1] %v497_v47 }
 0x1fb PF: > { %s15_s18 = sadd.s32 1, %s696_s18  }
 0x1fc   : > { %p12_p4 = scmp.ge.s32.totalorder %s15_s18, 4  }
 0x1fe   :  { %14 = sbr.rel (!%p12_p4) target bundleno = 1 (0x1), region = 70 }

// kernel: reverse.5
= control target key start
LH: loop header
LB: loop body
LE: loop exit
PB: predicated region body
PF: predicated region fallthrough
CT: control target
= control target key end

     0   :  { %v2_v0 = vlaneseq  ;;  %s304_s0 = inlined_call_operand.vmem [shape: bf16[7,7,2,1], index: 0, kind: input, shape index: {}]   ;;  %s305_s1 = inlined_call_operand.vmem [shape: bf16[7,7,2,1], index: 1, kind: output, shape index: {}]  }
   0x2   :  { %v3_v1 = vsub.s32 6, %v2_v0 }
   0x4   :  { %4 = vset.pattern.permute.xlu0 %v3_v1 }
   0x5   :  { %286 = vset.pattern.permute.xlu1 %v3_v1  ;;  %v20_v2 = vld [vmem:[%s304_s0] sm:$0x7f]  ;;  %v287_v32 = vmov 0.0  }
   0x6   :  { %21 = vst [vmem:[#allocation1] sm:$0x7f] %v20_v2 }
   0xd   :  { %v82_v3 = vld [vmem:[#allocation1 + $0x4] sm:$0x1]  ;;  %v50_v4 = vld [vmem:[#allocation1 + $0x6] sm:$0x1]  ;;  %v98_v5 = vld [vmem:[#allocation1 + $0x3] sm:$0x1] }
   0xe   :  { %v83_v6 = vunpack.c.l.bf16 %v82_v3  ;;  %v51_v7 = vunpack.c.l.bf16 %v50_v4  ;;  %v99_v8 = vunpack.c.l.bf16 %v98_v5  ;;  %v66_v9 = vld [vmem:[#allocation1 + $0x5] sm:$0x1]  ;;  %v129_v10 = vld [vmem:[#allocation1 + $0x1] sm:$0x1]  ;;  %v114_v11 = vld [vmem:[#allocation1 + $0x2] sm:$0x1] }
   0xf   :  { %v67_v12 = vunpack.c.l.bf16 %v66_v9  ;;  %v130_v13 = vunpack.c.l.bf16 %v129_v10  ;;  %v115_v14 = vunpack.c.l.bf16 %v114_v11  ;;  %v143_v15 = vld [vmem:[#allocation1] sm:$0x1] }
  0x10   :  { %86 = vst [vmem:[#allocation0 + $0x20] sm:$0x3] %v83_v6  ;;  %54 = vst [vmem:[#allocation0 + $0x30] sm:$0x3] %v51_v7  ;;  %v144_v16 = vunpack.c.l.bf16 %v143_v15 }
  0x11   :  { %102 = vst [vmem:[#allocation0 + $0x18] sm:$0x3] %v99_v8  ;;  %70 = vst [vmem:[#allocation0 + $0x28] sm:$0x3] %v67_v12 }
  0x12   :  { %133 = vst [vmem:[#allocation0 + $0x8] sm:$0x3] %v130_v13  ;;  %118 = vst [vmem:[#allocation0 + $0x10] sm:$0x3] %v115_v14 }
  0x13   :  { %146 = vst [vmem:[#allocation0] sm:$0x3] %v144_v16 }
  0x17   :  { %v160_v17 = vld [vmem:[#allocation0 + $0x20] sm:$0xff]  ;;  %v148_v18 = vld [vmem:[#allocation0 + $0x30] sm:$0xff] }
  0x18   :  { %161 = vperm.xlu1 %286, %v160_v17   ;;  %149 = vperm.xlu0 %4, %v148_v18   ;;  %v166_v19 = vld [vmem:[#allocation0 + $0x18] sm:$0xff]  ;;  %v154_v20 = vld [vmem:[#allocation0 + $0x28] sm:$0xff] }
  0x19   :  { %v178_v21 = vld [vmem:[#allocation0 + $0x8] sm:$0xff]  ;;  %v172_v22 = vld [vmem:[#allocation0 + $0x10] sm:$0xff] }
  0x1a   :  { %v183_v23 = vld [vmem:[#allocation0] sm:$0xff] }
  0x1c   :  { %167 = vperm.xlu1 %286, %v166_v19   ;;  %155 = vperm.xlu0 %4, %v154_v20  }
  0x20   :  { %179 = vperm.xlu1 %286, %v178_v21   ;;  %173 = vperm.xlu0 %4, %v172_v22  }
  0x24   :  { %184 = vperm.xlu0 %4, %v183_v23  }
  0x97   :  { %v162_v24 = vpop.permute.xlu1 %161  ;;  %v150_v25 = vpop.permute.xlu0 %149 }
  0x98   :  { %163 = vst [vmem:[#allocation2 + $0x10] sm:$0xff] %v162_v24  ;;  %151 = vst [vmem:[#allocation2] sm:$0xff] %v150_v25 }
  0x9b   :  { %v168_v26 = vpop.permute.xlu1 %167  ;;  %v156_v27 = vpop.permute.xlu0 %155 }
  0x9c   :  { %169 = vst [vmem:[#allocation2 + $0x18] sm:$0xff] %v168_v26  ;;  %157 = vst [vmem:[#allocation2 + $0x8] sm:$0xff] %v156_v27 }
  0x9f   :  { %v202_v28 = vld [vmem:[#allocation2 + $0x10] sm:$0x3]  ;;  %v191_v29 = vld [vmem:[#allocation2] sm:$0x3]  ;;  %v180_v30 = vpop.permute.xlu1 %179  ;;  %v174_v31 = vpop.permute.xlu0 %173 }
  0xa0   :  { %v203_v33 = vpack.c.bf16 %v287_v32, %v202_v28  ;;  %v192_v34 = vpack.c.bf16 %v287_v32, %v191_v29  ;;  %181 = vst [vmem:[#allocation2 + $0x28] sm:$0xff] %v180_v30  ;;  %175 = vst [vmem:[#allocation2 + $0x20] sm:$0xff] %v174_v31 }
  0xa2   :  { %207 = vst [vmem:[#allocation3 + $0x2] sm:$0x1] %v203_v33  ;;  %194 = vst [vmem:[#allocation3] sm:$0x1] %v192_v34 }
  0xa3   :  { %v209_v35 = vld [vmem:[#allocation2 + $0x18] sm:$0x3]  ;;  %v196_v36 = vld [vmem:[#allocation2 + $0x8] sm:$0x3]  ;;  %v185_v37 = vpop.permute.xlu0 %184 }
  0xa4   :  { %v210_v38 = vpack.c.bf16 %v287_v32, %v209_v35  ;;  %v197_v39 = vpack.c.bf16 %v287_v32, %v196_v36  ;;  %186 = vst [vmem:[#allocation2 + $0x30] sm:$0xff] %v185_v37 }
  0xa6   :  { %214 = vst [vmem:[#allocation3 + $0x3] sm:$0x1] %v210_v38  ;;  %200 = vst [vmem:[#allocation3 + $0x1] sm:$0x1] %v197_v39 }
  0xa7   :  { %v223_v40 = vld [vmem:[#allocation2 + $0x28] sm:$0x3]  ;;  %v216_v41 = vld [vmem:[#allocation2 + $0x20] sm:$0x3] }
  0xa8   :  { %v224_v42 = vpack.c.bf16 %v287_v32, %v223_v40  ;;  %v217_v43 = vpack.c.bf16 %v287_v32, %v216_v41 }
  0xaa   :  { %228 = vst [vmem:[#allocation3 + $0x5] sm:$0x1] %v224_v42  ;;  %221 = vst [vmem:[#allocation3 + $0x4] sm:$0x1] %v217_v43 }
  0xab   :  { %v230_v44 = vld [vmem:[#allocation2 + $0x30] sm:$0x3] }
  0xac   :  { %v231_v45 = vpack.c.bf16 %v287_v32, %v230_v44 }
  0xae   :  { %235 = vst [vmem:[#allocation3 + $0x6] sm:$0x1] %v231_v45 }
  0xb5   :  { %v251_v46 = vld [vmem:[#allocation3] sm:$0x7f] }
  0xb6   :  { %252 = vst [vmem:[%s305_s1] sm:$0x7f] %v251_v46 }

// kernel: xfeat_forward.7
= control target key start
LH: loop header
LB: loop body
LE: loop exit
PB: predicated region body
PF: predicated region fallthrough
CT: control target
= control target key end

     0   :  { %s402_s12 = smov 0   ;;  %s434_s0 = inlined_call_operand.vmem [shape: bf16[2,16,64], index: 0, kind: input, shape index: {}]   ;;  %s435_s1 = inlined_call_operand.vmem [shape: bf16[64,64], index: 1, kind: input, shape index: {}]   ;;  %s436_s2 = inlined_call_operand.vmem [shape: f32[1,64], index: 2, kind: input, shape index: {}]   ;;  %s437_s3 = inlined_call_operand.vmem [shape: f32[2,16,64], index: 3, kind: output, shape index: {}]  }
   0x1 LB: > { %s320_s13 = sadd.s32 4294967295, %s378_s12   ;;  %p324_p0 = scmp.ge.s32.totalorder %s378_s12, 1  ;;  %s378_s12 = sphi %s402_s12, %s13_s12  }
   0x2   : > { %p137_p1 = scmp.lt.s32.totalorder %s378_s12, 3 }
   0x4   : > { %p138_p2 = pnand %p324_p0, %p137_p1 }
   0x5   : > { %v367_v0 = vld [vmem:[%s435_s1] sm:$0xff] (!%p138_p2)   ;;  %v380_v1 = vmov (!%p138_p2), 0.0   ;;  %v368_v2 = vld [vmem:[%s435_s1 + $0x8] sm:$0xff] (!%p138_p2)   ;;  %vm381_vm0 = vmmov (!%p138_p2), 0   ;;  %p161_p3 = scmp.lt.s32.totalorder (!%p138_p2), %s320_s13, 1  ;;  %v369_v3 = vld [vmem:[%s435_s1 + $0x10] sm:$0xff] (!%p138_p2)  }
   0x6   : > { %141 = sbr.rel (%p138_p2) target bundleno = 239 (0xef), region = 32  ;;  %345 = vmatprep.subr.bf16.mxu0 (!%p138_p2), %v380_v1  ;;  %353 = vmatprep.mubr.msk.bf16.mxu0 (!%p138_p2), %vm381_vm0, %v380_v1  ;;  %v370_v4 = vld [vmem:[%s435_s1 + $0x18] sm:$0xff] (!%p138_p2)   ;;  %vm218_vm1 = vcmask (!%p138_p2), 523264   ;;  %v329_v6 = vld [vmem:[%s436_s2] ss:$0 sm:$0xff] (!%p138_p2) }
   0x7   : > { %346 = vmatpush3.bf16.msra.mxu0 (!%p138_p2), %v367_v0 }
   0x8   : > { %347 = vmatprep.subr.bf16.mxu0 (!%p138_p2), %v380_v1 }
   0xb   : > { %348 = vmatpush3.bf16.msra.mxu0 (!%p138_p2), %v368_v2 }
   0xc   : > { %349 = vmatprep.subr.bf16.mxu0 (!%p138_p2), %v380_v1 }
   0xd   : > { %s439_s13 = smov (!%p161_p3, %s320_s13), 1 }
   0xe   : > { %s338_s20 = sshll.u32 %s439_s13, 3  ;;  %s339_s26 = sshll.u32 %s439_s13, 4 }
   0xf   : > { %s165_s23 = scalar_lea.vmem %s434_s0, %s338_s20  ;;  %350 = vmatpush3.bf16.msra.mxu0 %v369_v3  ;;  %s170_s4 = scalar_lea.vmem %s437_s3, %s339_s26 }
  0x10   : > { %351 = vmatprep.subr.bf16.mxu0 %v380_v1  ;;  %v371_v5 = vld [vmem:[%s165_s23] sm:$0xff]  }
  0x13   : > { %352 = vmatpush3.bf16.msra.mxu0 %v370_v4 }
  0x16   : > { %354 = vmatmul.mubr.msk.bf16.vlgmr.msra.gmra.mrb[0].mxu0 %vm218_vm1, %v371_v5 }
  0xe9   : > { %v256_v7 = vpop.f32.mrb[0].mxu0 }
  0xea   : > { %v257_v8 = vadd.f32 %v329_v6, %v256_v7  ;;  %v355_v9 = vpop.f32.mrb[1].mxu0 }
  0xeb   : > { %v259_v10 = vpop.f32.mrb[2].mxu0 }
  0xec   : > { %263 = vst.msk [vmem:[%s170_s4] sm:$0xff] %vm218_vm1, %v257_v8  ;;  %v260_v11 = vadd.f32 %v329_v6, %v259_v10  ;;  %v356_v12 = vpop.f32.mrb[3].mxu0 }
  0xee   : > { %264 = vst.msk [vmem:[%s170_s4 + $0x8] sm:$0xff] %vm218_vm1, %v260_v11 }
  0xef PF: > { %s13_s12 = sadd.s32 1, %s378_s12  }
  0xf0   : > { %p10_p4 = scmp.ge.s32.totalorder %s13_s12, 4  }
  0xf2   :  { %12 = sbr.rel (!%p10_p4) target bundleno = 1 (0x1), region = 62 }

// kernel: xfeat_forward.8
= control target key start
LH: loop header
LB: loop body
LE: loop exit
PB: predicated region body
PF: predicated region fallthrough
CT: control target
= control target key end

     0   :  { %s1488_s19 = smov 0   ;;  %s1668_s0 = inlined_call_operand.vmem [shape: bf16[2,16,64], index: 0, kind: input, shape index: {}]   ;;  %s1669_s1 = inlined_call_operand.vmem [shape: bf16[64,64], index: 1, kind: input, shape index: {}]   ;;  %s1670_s2 = inlined_call_operand.vmem [shape: f32[1,64], index: 2, kind: input, shape index: {}]   ;;  %s1671_s3 = inlined_call_operand.vmem [shape: f32[1,64], index: 3, kind: input, shape index: {}]   ;;  %s1672_s4 = inlined_call_operand.vmem [shape: f32[64,64], index: 4, kind: input, shape index: {}, may-alias: {4,8}]   ;;  %s1673_s5 = inlined_call_operand.vmem [shape: bf16[64,64], index: 5, kind: input, shape index: {}]   ;;  %s1674_s6 = inlined_call_operand.vmem [shape: f32[1,64], index: 6, kind: input, shape index: {}]   ;;  %s1675_s7 = inlined_call_operand.vmem [shape: f32[1,64], index: 7, kind: input, shape index: {}]   ;;  %s1676_s8 = inlined_call_operand.vmem [shape: f32[64,64], index: 8, kind: input, shape index: {}, may-alias: {4,8}]   ;;  %s1677_s9 = inlined_call_operand.vmem [shape: bf16[64,1], index: 9, kind: input, shape index: {}]   ;;  %s1678_s10 = inlined_call_operand.<no memory space> [shape: f32[1,1], index: 10, kind: input, shape index: {}]   ;;  %s1679_s11 = inlined_call_operand.vmem [shape: f32[2,16,1], index: 11, kind: output, shape index: {}]  }
   0x1   :  { %v16_v0 = vstv %s1678_s10 }
   0x2   :  { %17 = vst [vmem:[#allocation2] sm:$0x1] %v16_v0 }
   0x3 LB: > { %s1129_s20 = sadd.s32 4294967295, %s1420_s19   ;;  %p1133_p0 = scmp.ge.s32.totalorder %s1420_s19, 1  ;;  %s1420_s19 = sphi %s1488_s19, %s23_s19  }
   0x4   : > { %p339_p1 = scmp.lt.s32.totalorder %s1420_s19, 3 }
   0x6   : > { %p340_p2 = pnand %p1133_p0, %p339_p1 }
   0x7   : > { %v1389_v1 = vld [vmem:[%s1669_s1] sm:$0xff] (!%p340_p2)   ;;  %v1422_v2 = vmov (!%p340_p2), 0.0   ;;  %v1390_v3 = vld [vmem:[%s1669_s1 + $0x8] sm:$0xff] (!%p340_p2)   ;;  %vm1423_vm0 = vmmov (!%p340_p2), 0   ;;  %p379_p3 = scmp.lt.s32.totalorder (!%p340_p2), %s1129_s20, 1  ;;  %v1391_v4 = vld [vmem:[%s1669_s1 + $0x10] sm:$0xff] (!%p340_p2)   ;;  %v654_v48 = vlaneseq (!%p340_p2) }
   0x8   : > { %343 = sbr.rel (%p340_p2) target bundleno = 1213 (0x4bd), region = 64  ;;  %1218 = vmatprep.subr.bf16.mxu1 (!%p340_p2), %v1422_v2  ;;  %1226 = vmatprep.mubr.msk.bf16.mxu1 (!%p340_p2), %vm1423_vm0, %v1422_v2  ;;  %v1392_v5 = vld [vmem:[%s1669_s1 + $0x18] sm:$0xff] (!%p340_p2)   ;;  %vm439_vm1 = vcmask (!%p340_p2), 523264   ;;  %v402_v7 = vld [vmem:[%s1672_s4] sm:$0xff] (!%p340_p2)  ;;  %v403_v8 = vld [vmem:[%s1672_s4 + $0x8] sm:$0xff] (!%p340_p2)  ;;  %v1424_v10 = vmov (!%p340_p2), 0.0|0.0  }
   0x9   : > { %1219 = vmatpush3.bf16.msra.mxu1 (!%p340_p2), %v1389_v1  ;;  %1265 = vmatprep.mubr.msk.f32.mxu0 (!%p340_p2), %vm1423_vm0, %v1422_v2  ;;  %v1331_v9 = vpack.c.bf16 (!%p340_p2), %v403_v8, %v402_v7  ;;  %v404_v11 = vld [vmem:[%s1672_s4 + $0x10] sm:$0xff] (!%p340_p2)  ;;  %v405_v12 = vld [vmem:[%s1672_s4 + $0x18] sm:$0xff] (!%p340_p2)  ;;  %v406_v14 = vld [vmem:[%s1672_s4 + $0x20] sm:$0xff] (!%p340_p2)  ;;  %v655_v49 = vshrl.u32 (!%p340_p2), %v654_v48, 7  ;;  %vm1071_vm2 = vcmask (!%p340_p2), 7168  }
   0xa   : > { %1220 = vmatprep.subr.bf16.mxu1 (!%p340_p2), %v1422_v2  ;;  %1342 = vmatprep.subr.bf16.mxu0 (!%p340_p2), %v1424_v10  ;;  %v1334_v13 = vpack.c.bf16 (!%p340_p2), %v405_v12, %v404_v11  ;;  %v407_v15 = vld [vmem:[%s1672_s4 + $0x28] sm:$0xff] (!%p340_p2)  ;;  %v408_v17 = vld [vmem:[%s1672_s4 + $0x30] sm:$0xff] (!%p340_p2)  ;;  %v409_v18 = vld [vmem:[%s1672_s4 + $0x38] sm:$0xff] (!%p340_p2) }
   0xb   : > { %1344 = vmatpush3.bf16.msra.mxu0 (!%p340_p2), %v1331_v9  ;;  %v1337_v16 = vpack.c.bf16 (!%p340_p2), %v407_v15, %v406_v14  ;;  %v1340_v19 = vpack.c.bf16 (!%p340_p2), %v409_v18, %v408_v17  ;;  %v1394_v44 = vld [vmem:[%s1673_s5] sm:$0xff] (!%p340_p2)   ;;  %v1395_v45 = vld [vmem:[%s1673_s5 + $0x8] sm:$0xff] (!%p340_p2)   ;;  %v1396_v46 = vld [vmem:[%s1673_s5 + $0x10] sm:$0xff] (!%p340_p2)   ;;  %v1585_v50 = vsub.s32 (!%p340_p2), 0, %v655_v49 }
   0xc   : > { %1345 = vmatprep.subr.bf16.mxu0 (!%p340_p2), %v1424_v10  ;;  %v1397_v47 = vld [vmem:[%s1673_s5 + $0x18] sm:$0xff] (!%p340_p2)   ;;  %v1146_v1 = vld [vmem:[%s1670_s2] ss:$0 sm:$0xff] (!%p340_p2)  ;;  %v698_v15 = vld [vmem:[%s1676_s8 + $0x8] sm:$0xff] (!%p340_p2) }
   0xd   : > { %1221 = vmatpush3.bf16.msra.mxu1 (!%p340_p2), %v1390_v3  ;;  %v697_v14 = vld [vmem:[%s1676_s8] sm:$0xff] (!%p340_p2)  ;;  %v699_v17 = vld [vmem:[%s1676_s8 + $0x10] sm:$0xff] (!%p340_p2)  ;;  %v700_v18 = vld [vmem:[%s1676_s8 + $0x18] sm:$0xff] (!%p340_p2) }
   0xe   : > { %1222 = vmatprep.subr.bf16.mxu1 (!%p340_p2), %v1422_v2  ;;  %v1398_v49 = vld [vmem:[%s1677_s9] sm:$0xff] (!%p340_p2)  }
   0xf   : > { %s1681_s20 = smov (!%p379_p3, %s1129_s20), 1  ;;  %1347 = vmatpush3.bf16.msra.mxu0 %v1334_v13 }
  0x10   : > { %s1165_s26 = sshll.u32 %s1681_s20, 3  ;;  %1348 = vmatprep.subr.bf16.mxu0 %v1424_v10  ;;  %s1166_s15 = sshll.u32 %s1681_s20, 4 }
  0x11   : > { %s383_s29 = scalar_lea.vmem %s1668_s0, %s1165_s26  ;;  %1223 = vmatpush3.bf16.msra.mxu1 %v1391_v4  ;;  %s388_s18 = scalar_lea.vmem %s1679_s11, %s1166_s15 }
  0x12   : > { %1224 = vmatprep.subr.bf16.mxu1 %v1422_v2  ;;  %v1393_v6 = vld [vmem:[%s383_s29] sm:$0xff]  }
  0x13   : > { %1350 = vmatpush3.bf16.msra.mxu0 %v1337_v16 }
  0x14   : > { %1351 = vmatprep.subr.bf16.mxu0 %v1424_v10 }
  0x15   : > { %1225 = vmatpush3.bf16.msra.mxu1 %v1392_v5  ;;  %v1147_v5 = vld [vmem:[%s1671_s3] ss:$0 sm:$0xff] }
  0x16   : > { %1330 = vmatprep.subr.bf16.mxu1 %v1424_v10 }
  0x17   : > { %1353 = vmatpush3.bf16.msra.mxu0 %v1340_v19 }
  0x18   : > { %1227 = vmatmul.mubr.msk.bf16.vlgmr.msra.gmra.mrb[0].mxu1 %vm439_vm1, %v1393_v6  ;;  %1354 = vmatprep.subr.bf16.mxu0 %v1424_v10 }
  0x19   : > { %1246 = vmatprep.mubr.msk.f32.mxu1 %vm1423_vm0, %v1422_v2  ;;  %1332 = vmatpush3.bf16.msra.mxu1 %v1331_v9 }
  0x1a   : > { %1333 = vmatprep.subr.bf16.mxu1 %v1424_v10 }
  0x1d   : > { %1335 = vmatpush3.bf16.msra.mxu1 %v1334_v13 }
  0x1e   : > { %1336 = vmatprep.subr.bf16.mxu1 %v1424_v10 }
  0x21   : > { %1338 = vmatpush3.bf16.msra.mxu1 %v1337_v16  ;;  %v1355_v16 = vpack.c.bf16 %v698_v15, %v697_v14 }
  0x22   : > { %1339 = vmatprep.subr.bf16.mxu1 %v1424_v10 }
  0x25   : > { %1341 = vmatpush3.bf16.msra.mxu1 %v1340_v19  ;;  %v1358_v19 = vpack.c.bf16 %v700_v18, %v699_v17 }
  0x26   : > { %1268 = vmatprep.subr.bf16.mxu1 %v1422_v2 }
  0xeb   : > { %v477_v20 = vpop.f32.mrb[0].mxu1 }
  0xec   : > { %v493_v21 = vmul.f32 %v477_v20, %v477_v20  ;;  %v1228_v22 = vpop.f32.mrb[1].mxu1  ;;  %v484_v24 = vsel %vm439_vm1, %v477_v20, 0.0 }
  0xed   : > { %v480_v23 = vpop.f32.mrb[2].mxu1 }
  0xee   : > { %v485_v25 = vsel %vm439_vm1, %v480_v23, 0.0  ;;  %v494_v26 = vmul.f32 %v480_v23, %v480_v23  ;;  %v1229_v27 = vpop.f32.mrb[3].mxu1  ;;  %v495_v29 = vsel %vm439_vm1, %v493_v21, 0.0  ;;  %v702_v21 = vld [vmem:[%s1676_s8 + $0x28] sm:$0xff] }
  0xef   : > { %v486_v28 = vadd.f32 %v485_v25, %v484_v24  ;;  %v704_v24 = vld [vmem:[%s1676_s8 + $0x38] sm:$0xff] }
  0xf0   : > { %v496_v30 = vsel %vm439_vm1, %v494_v26, 0.0 }
  0xf1   : > { %v487_v31 = vrot.slane %v486_v28, 4  ;;  %v497_v32 = vadd.f32 %v496_v30, %v495_v29 }
  0xf3   : > { %v488_v33 = vadd.f32 %v487_v31, %v486_v28  ;;  %v498_v34 = vrot.slane %v497_v32, 4 }
  0xf5   : > { %v489_v35 = vrot.slane %v488_v33, 2  ;;  %v499_v36 = vadd.f32 %v498_v34, %v497_v32 }
  0xf7   : > { %v490_v37 = vadd.f32 %v489_v35, %v488_v33  ;;  %v500_v38 = vrot.slane %v499_v36, 2 }
  0xf9   : > { %v491_v39 = vrot.slane %v490_v37, 1  ;;  %v501_v40 = vadd.f32 %v500_v38, %v499_v36 }
  0xfb   : > { %v492_v41 = vadd.f32 %v491_v39, %v490_v37  ;;  %v502_v42 = vrot.slane %v501_v40, 1 }
  0xfd   : > { %1247 = vmatmul.mubr.msk.f32.vlgmr.msra.gmra.mrb[4].mxu1 %vm439_vm1, %v492_v41  ;;  %v503_v43 = vadd.f32 %v502_v42, %v501_v40 }
  0xfe   : > { %1276 = vmatprep.mubr.msk.bf16.mxu1 %vm1423_vm0, %v1422_v2  ;;  %1269 = vmatpush3.bf16.msra.mxu1 %v1394_v44 }
  0xff   : > { %1266 = vmatmul.mubr.msk.f32.vlgmr.msra.gmra.mrb[0].mxu0 %vm439_vm1, %v503_v43  ;;  %1270 = vmatprep.subr.bf16.mxu1 %v1422_v2 }
 0x100   : > { %1296 = vmatprep.mubr.msk.f32.mxu0 %vm1423_vm0, %v1422_v2  ;;  %1356 = vmatpush3.bf16.msra.mxu0 %v1355_v16 }
 0x101   : > { %1357 = vmatprep.subr.bf16.mxu0 %v1424_v10 }
 0x102   : > { %1271 = vmatpush3.bf16.msra.mxu1 %v1395_v45 }
 0x103   : > { %1272 = vmatprep.subr.bf16.mxu1 %v1422_v2 }
 0x104   : > { %1359 = vmatpush3.bf16.msra.mxu0 %v1358_v19 }
 0x105   : > { %1360 = vmatprep.subr.bf16.mxu0 %v1424_v10 }
 0x106   : > { %1273 = vmatpush3.bf16.msra.mxu1 %v1396_v46 }
 0x107   : > { %1274 = vmatprep.subr.bf16.mxu1 %v1422_v2 }
 0x10a   : > { %1275 = vmatpush3.bf16.msra.mxu1 %v1397_v47 }
 0x10b   : > { %1366 = vmatprep.subr.bf16.mxu1 %v1424_v10 }
 0x1d0   : > { %v573_v51 = vpop.f32.mrb[4].mxu1 }
 0x1d1   : > { %v577_v52 = vmul.f32 0.00390625, %v573_v51  ;;  %v1248_v53 = vpop.f32.mrb[5].mxu1  ;;  %v1399_v51 = vld [vmem:[%s1677_s9 + $0x8] sm:$0xff]  }
 0x1d2   : > { %v647_v54 = vpop.f32.mrb[0].mxu0  ;;  %v1401_v53 = vld [vmem:[%s1677_s9 + $0x18] sm:$0xff]  }
 0x1d3   : > { %v652_v55 = vmul.f32 %v577_v52, %v577_v52  ;;  %v657_v56 = vrot.slane %v577_v52, %v1585_v50  ;;  %v651_v57 = vmul.f32 0.00390625, %v647_v54  ;;  %v1267_v58 = vpop.f32.mrb[1].mxu0  ;;  %v1400_v52 = vld [vmem:[%s1677_s9 + $0x10] sm:$0xff]  }
 0x1d5   : > { %v658_v59 = vsub.f32 %v477_v20, %v657_v56  ;;  %v659_v60 = vsub.f32 %v480_v23, %v657_v56  ;;  %v653_v61 = vsub.f32 %v651_v57, %v652_v55  ;;  %v701_v20 = vld [vmem:[%s1676_s8 + $0x20] sm:$0xff]  ;;  %v703_v23 = vld [vmem:[%s1676_s8 + $0x30] sm:$0xff] }
 0x1d6   : > { %v1361_v22 = vpack.c.bf16 %v702_v21, %v701_v20  ;;  %v1364_v25 = vpack.c.bf16 %v704_v24, %v703_v23 }
 0x1d7   : > { %v660_v62 = vadd.f32 1e-05, %v653_v61 }
 0x1d8   : > { %1362 = vmatpush3.bf16.msra.mxu0 %v1361_v22 }
 0x1d9   : > { %1402 = vrsqrt.f32 %v660_v62  ;;  %1363 = vmatprep.subr.bf16.mxu0 %v1424_v10 }
 0x1dc   : > { %1365 = vmatpush3.bf16.msra.mxu0 %v1364_v25 }
 0x1dd   : > { %1318 = vmatprep.subr.bf16.mxu0 %v1422_v2 }
 0x1e3   : > { %v1403_v63 = vpop.eup %1402 }
 0x1e4   : > { %v665_v0 = vrot.slane %v1403_v63, %v1585_v50 }
 0x1e6   : > { %v666_v3 = vmul.f32 %v665_v0, %v658_v59  ;;  %v667_v4 = vmul.f32 %v665_v0, %v659_v60 }
 0x1e8   : > { %v674_v6 = vmul.f32 %v1146_v1, %v666_v3  ;;  %v675_v7 = vmul.f32 %v1146_v1, %v667_v4 }
 0x1ea   : > { %v682_v8 = vadd.f32 %v1147_v5, %v674_v6  ;;  %v683_v9 = vadd.f32 %v1147_v5, %v675_v7  ;;  %v1156_v7 = vld [vmem:[%s1675_s7] ss:$0 sm:$0xff] }
 0x1ec   : > { %v684_v11 = vmax.f32 %v682_v8, 0.0  ;;  %v685_v12 = vmax.f32 %v683_v9, 0.0 }
 0x1ee   : > { %v686_v13 = vpack.c.bf16 %v685_v12, %v684_v11 }
 0x1f0   : > { %1277 = vmatmul.mubr.msk.bf16.vlgmr.msra.gmra.mrb[8].mxu1 %vm439_vm1, %v686_v13 }
 0x1f1   : > { %1315 = vmatprep.mubr.msk.f32.mxu1 %vm1423_vm0, %v1422_v2  ;;  %1368 = vmatpush3.bf16.msra.mxu1 %v1355_v16 }
 0x1f2   : > { %1369 = vmatprep.subr.bf16.mxu1 %v1424_v10 }
 0x1f5   : > { %1371 = vmatpush3.bf16.msra.mxu1 %v1358_v19 }
 0x1f6   : > { %1372 = vmatprep.subr.bf16.mxu1 %v1424_v10 }
 0x1f9   : > { %1374 = vmatpush3.bf16.msra.mxu1 %v1361_v22 }
 0x1fa   : > { %1375 = vmatprep.subr.bf16.mxu1 %v1424_v10 }
 0x1fd   : > { %1377 = vmatpush3.bf16.msra.mxu1 %v1364_v25 }
 0x2c3   : > { %v766_v26 = vpop.f32.mrb[8].mxu1 }
 0x2c4   : > { %v782_v27 = vmul.f32 %v766_v26, %v766_v26  ;;  %v1278_v28 = vpop.f32.mrb[9].mxu1  ;;  %v773_v30 = vsel %vm439_vm1, %v766_v26, 0.0 }
 0x2c5   : > { %v769_v29 = vpop.f32.mrb[10].mxu1 }
 0x2c6   : > { %v774_v31 = vsel %vm439_vm1, %v769_v29, 0.0  ;;  %v783_v32 = vmul.f32 %v769_v29, %v769_v29  ;;  %v1279_v33 = vpop.f32.mrb[11].mxu1  ;;  %v784_v35 = vsel %vm439_vm1, %v782_v27, 0.0 }
 0x2c7   : > { %v775_v34 = vadd.f32 %v774_v31, %v773_v30 }
 0x2c8   : > { %v785_v10 = vsel %vm439_vm1, %v783_v32, 0.0 }
 0x2c9   : > { %v776_v36 = vrot.slane %v775_v34, 4  ;;  %v786_v37 = vadd.f32 %v785_v10, %v784_v35 }
 0x2cb   : > { %v777_v38 = vadd.f32 %v776_v36, %v775_v34  ;;  %v787_v39 = vrot.slane %v786_v37, 4 }
 0x2cd   : > { %v778_v40 = vrot.slane %v777_v38, 2  ;;  %v788_v41 = vadd.f32 %v787_v39, %v786_v37 }
 0x2cf   : > { %v779_v42 = vadd.f32 %v778_v40, %v777_v38  ;;  %v789_v43 = vrot.slane %v788_v41, 2 }
 0x2d1   : > { %v780_v44 = vrot.slane %v779_v42, 1  ;;  %v790_v45 = vadd.f32 %v789_v43, %v788_v41 }
 0x2d3   : > { %v781_v46 = vadd.f32 %v780_v44, %v779_v42  ;;  %v791_v47 = vrot.slane %v790_v45, 1 }
 0x2d5   : > { %1297 = vmatmul.mubr.msk.f32.vlgmr.msra.gmra.mrb[2].mxu0 %vm439_vm1, %v781_v46  ;;  %v792_v48 = vadd.f32 %v791_v47, %v790_v45 }
 0x2d6   : > { %1326 = vmatprep.mubr.msk.bf16.mxu0 %vm1423_vm0, %v1422_v2  ;;  %1319 = vmatpush3.bf16.msra.mxu0 %v1398_v49 }
 0x2d7   : > { %1316 = vmatmul.mubr.msk.f32.vlgmr.msra.gmra.mrb[6].mxu1 %vm439_vm1, %v792_v48  ;;  %1320 = vmatprep.subr.bf16.mxu0 %v1422_v2 }
 0x2da   : > { %1321 = vmatpush3.bf16.msra.mxu0 %v1399_v51 }
 0x2db   : > { %1322 = vmatprep.subr.bf16.mxu0 %v1422_v2 }
 0x2de   : > { %1323 = vmatpush3.bf16.msra.mxu0 %v1400_v52 }
 0x2df   : > { %1324 = vmatprep.subr.bf16.mxu0 %v1422_v2  ;;  %v1155_v2 = vld [vmem:[%s1674_s6] ss:$0 sm:$0xff] }
 0x2e2   : > { %1325 = vmatpush3.bf16.msra.mxu0 %v1401_v53 }
 0x3a8   : > { %v862_v54 = vpop.f32.mrb[2].mxu0 }
 0x3a9   : > { %v866_v55 = vmul.f32 0.00390625, %v862_v54  ;;  %v1298_v56 = vpop.f32.mrb[3].mxu0 }
 0x3aa   : > { %v936_v57 = vpop.f32.mrb[6].mxu1 }
 0x3ab   : > { %v941_v58 = vmul.f32 %v866_v55, %v866_v55  ;;  %v946_v59 = vrot.slane %v866_v55, %v1585_v50  ;;  %v940_v60 = vmul.f32 0.00390625, %v936_v57  ;;  %v1317_v61 = vpop.f32.mrb[7].mxu1 }
 0x3ad   : > { %v947_v62 = vsub.f32 %v766_v26, %v946_v59  ;;  %v948_v63 = vsub.f32 %v769_v29, %v946_v59  ;;  %v942_v0 = vsub.f32 %v940_v60, %v941_v58 }
 0x3af   : > { %v949_v1 = vadd.f32 1e-05, %v942_v0 }
 0x3b1   : > { %1404 = vrsqrt.f32 %v949_v1 }
 0x3bb   : > { %v1405_v3 = vpop.eup %1404 }
 0x3bc   : > { %v954_v4 = vrot.slane %v1405_v3, %v1585_v50  ;;  %v1157_v50 = vld [vmem:[#allocation2] ss:$0 sm:$0xff] }
 0x3be   : > { %v955_v5 = vmul.f32 %v954_v4, %v947_v62  ;;  %v956_v6 = vmul.f32 %v954_v4, %v948_v63 }
 0x3c0   : > { %v963_v8 = vmul.f32 %v1155_v2, %v955_v5  ;;  %v964_v9 = vmul.f32 %v1155_v2, %v956_v6 }
 0x3c2   : > { %v971_v11 = vadd.f32 %v1156_v7, %v963_v8  ;;  %v972_v12 = vadd.f32 %v1156_v7, %v964_v9 }
 0x3c4   : > { %v973_v13 = vmax.f32 %v971_v11, 0.0  ;;  %v974_v14 = vmax.f32 %v972_v12, 0.0 }
 0x3c6   : > { %v975_v15 = vpack.c.bf16 %v974_v14, %v973_v13 }
 0x3c8   : > { %1327 = vmatmul.mubr.msk.bf16.vlgmr.msra.gmra.mrb[4].mxu0 %vm439_vm1, %v975_v15 }
 0x49b   : > { %v1052_v16 = vpop.f32.mrb[4].mxu0 }
 0x49c   : > { %v1053_v17 = vadd.f32 %v1157_v50, %v1052_v16  ;;  %v1328_v18 = vpop.f32.mrb[5].mxu0 }
 0x49d   : > { %v1055_v19 = vpop.f32.mrb[6].mxu0 }
 0x49e   : > { %v1059_v20 = vsub.f32 0.0, %v1053_v17  ;;  %v1056_v21 = vadd.f32 %v1157_v50, %v1055_v19  ;;  %v1329_v22 = vpop.f32.mrb[7].mxu0 }
 0x4a0   : > { %v1061_v23 = vmul.f32 1.442695, %v1059_v20  ;;  %v1060_v24 = vsub.f32 0.0, %v1056_v21 }
 0x4a2   : > { %1406 = vpow2.f32 %v1061_v23  ;;  %v1063_v25 = vmul.f32 1.442695, %v1060_v24 }
 0x4a4   : > { %1408 = vpow2.f32 %v1063_v25 }
 0x4ac   : > { %v1407_v26 = vpop.eup %1406 }
 0x4ad   : > { %v1065_v27 = vadd.f32 1.0, %v1407_v26 }
 0x4ae   : > { %v1409_v28 = vpop.eup %1408 }
 0x4af   : > { %1410 = vrcp.f32 %v1065_v27  ;;  %v1066_v29 = vadd.f32 1.0, %v1409_v28 }
 0x4b1   : > { %1412 = vrcp.f32 %v1066_v29 }
 0x4b9   : > { %v1411_v30 = vpop.eup %1410 }
 0x4ba   : > { %1072 = vst.msk [vmem:[%s388_s18] sm:$0xff] %vm1071_vm2, %v1411_v30 }
 0x4bb   : > { %v1413_v31 = vpop.eup %1412 }
 0x4bc   : > { %1073 = vst.msk [vmem:[%s388_s18 + $0x8] sm:$0xff] %vm1071_vm2, %v1413_v31 }
 0x4bd PF: > { %s23_s19 = sadd.s32 1, %s1420_s19  }
 0x4be   : > { %p20_p4 = scmp.ge.s32.totalorder %s23_s19, 4  }
 0x4c0   :  { %22 = sbr.rel (!%p20_p4) target bundleno = 3 (0x3), region = 94 }

// kernel: xfeat_forward.9
= control target key start
LH: loop header
LB: loop body
LE: loop exit
PB: predicated region body
PF: predicated region fallthrough
CT: control target
= control target key end

     0   :  { %s2438_s0 = inlined_call_operand.vmem [shape: bf16[2,16,64], index: 0, kind: input, shape index: {}]   ;;  %s2439_s1 = inlined_call_operand.vmem [shape: bf16[64,64], index: 1, kind: input, shape index: {}]   ;;  %s2440_s2 = inlined_call_operand.vmem [shape: f32[1,64], index: 2, kind: input, shape index: {}]   ;;  %s2441_s3 = inlined_call_operand.vmem [shape: f32[1,64], index: 3, kind: input, shape index: {}]   ;;  %s2442_s4 = inlined_call_operand.vmem [shape: f32[64,64], index: 4, kind: input, shape index: {}, may-alias: {4,8,12}]   ;;  %s2443_s5 = inlined_call_operand.vmem [shape: bf16[64,64], index: 5, kind: input, shape index: {}]   ;;  %s2444_s6 = inlined_call_operand.vmem [shape: f32[1,64], index: 6, kind: input, shape index: {}]   ;;  %s2445_s7 = inlined_call_operand.vmem [shape: f32[1,64], index: 7, kind: input, shape index: {}]   ;;  %s2446_s8 = inlined_call_operand.vmem [shape: f32[64,64], index: 8, kind: input, shape index: {}, may-alias: {4,8,12}]   ;;  %s2447_s9 = inlined_call_operand.vmem [shape: bf16[64,64], index: 9, kind: input, shape index: {}]   ;;  %s2448_s10 = inlined_call_operand.vmem [shape: f32[1,64], index: 10, kind: input, shape index: {}]   ;;  %s2449_s11 = inlined_call_operand.vmem [shape: f32[1,64], index: 11, kind: input, shape index: {}]   ;;  %s2450_s12 = inlined_call_operand.vmem [shape: f32[64,64], index: 12, kind: input, shape index: {}, may-alias: {4,8,12}]   ;;  %s2451_s13 = inlined_call_operand.vmem [shape: bf16[64,65], index: 13, kind: input, shape index: {}]   ;;  %s2452_s14 = inlined_call_operand.vmem [shape: f32[1,65], index: 14, kind: input, shape index: {}]   ;;  %s2453_s15 = inlined_call_operand.hbm [shape: f32[2,16,65], index: 15, kind: output, shape index: {}]  }
   0x1   :  { %2457 = sst [smem:[#allocation8_spill]] %s2438_s0 }
   0x2   :  { %2458 = sst [smem:[#allocation9_spill]] %s2439_s1 }
   0x3   :  { %20 = vsyncpa [#allocation3], 0 }
   0x4   :  { %22 = vsyncpa [#allocation3 + $0x1], 0  ;;  %s2104_s18 = smov 0   ;;  %s2106_s19 = smov 0  }
   0x5   :  { %s2108_s20 = smov 0   ;;  %s2110_s21 = smov 0  }
   0x6 LB: > { %2459 = sst [smem:[#allocation5_spill]] %s2012_s20  ;;  %s2125_s22 = sadd.s32 4294967295, %s2016_s21   ;;  %s2016_s21 = sphi %s2110_s21, %s2466_s21   ;;  %s2012_s20 = sphi %s2108_s20, %s2468_s20   ;;  %s2008_s19 = sphi %s2106_s19, %s2470_s19   ;;  %s2004_s18 = sphi %s2104_s18, %s2469_s18  }
   0x7   : > { %s1531_s23 = sadd.s32 4294967294, %s2016_s21   ;;  %s2129_s24 = sadd.s32 1, %s2016_s21  }
   0x8   : > { %2460 = sst [smem:[#allocation6_spill]] %s2129_s24  ;;  %s355_s25 = sadd.s32 1, %s2012_s20 }
   0x9   : > { %s352_s26 = ssub.s32 %s2016_s21, %s2129_s24  ;;  %p365_p0 = scmp.ne.s32.totalorder %s2012_s20, %s2008_s19 }
   0xa   : > { %p353_p1 = scmp.eq.s32.totalorder %s352_s26, 0  ;;  %p366_p2 = scmp.eq.s32.totalorder %s2125_s22, 1 }
   0xb   : > { %p371_p3 = scmp.ne.s32.totalorder %s2008_s19, %s2004_s18  ;;  %p372_p4 = scmp.eq.s32.totalorder %s1531_s23, 1 }
   0xc   : > { %s2140_s27 = scalar_select %p353_p1, %s2012_s20, %s355_s25  }
   0xd   : > { %p2142_p5 = por %p366_p2, %p365_p0  ;;  %p2146_p6 = por %p372_p4, %p371_p3 }
   0xe   : > { %2461 = sst [smem:[#allocation7_spill]] %s2140_s27  ;;  %p1534_p7 = scmp.ge.s32.totalorder %s2016_s21, 1 }
   0xf   : > { %p440_p8 = scmp.lt.s32.totalorder %s2016_s21, 3 }
  0x11   : > { %p441_p9 = pnand %p1534_p7, %p440_p8 }
  0x12   : > { %s2464_s1 = sld [smem:[#allocation9_spill]] (!%p441_p9)  ;;  %v2018_v1 = vmov (!%p441_p9), 0.0   ;;  %vm2019_vm0 = vmmov (!%p441_p9), 0   ;;  %p488_p10 = scmp.lt.s32.totalorder (!%p441_p9), %s2125_s22, 1  ;;  %vm543_vm1 = vcmask (!%p441_p9), 523264   ;;  %v506_v6 = vld [vmem:[%s2442_s4] sm:$0xff] (!%p441_p9)  ;;  %v758_v47 = vlaneseq (!%p441_p9) }
  0x13   : > { %444 = sbr.rel (%p441_p9) target bundleno = 1687 (0x697), region = 80  ;;  %1653 = vmatprep.subr.bf16.mxu0 (!%p441_p9), %v2018_v1  ;;  %1661 = vmatprep.mubr.msk.bf16.mxu0 (!%p441_p9), %vm2019_vm0, %v2018_v1  ;;  %s2465_s0 = sld [smem:[#allocation8_spill]] (!%p441_p9)  ;;  %v507_v7 = vld [vmem:[%s2442_s4 + $0x8] sm:$0xff] (!%p441_p9)  ;;  %v2020_v9 = vmov (!%p441_p9), 0.0|0.0   ;;  %v508_v10 = vld [vmem:[%s2442_s4 + $0x10] sm:$0xff] (!%p441_p9)  ;;  %v509_v11 = vld [vmem:[%s2442_s4 + $0x18] sm:$0xff] (!%p441_p9) }
  0x14   : > { %1681 = vmatprep.mubr.msk.f32.mxu1 (!%p441_p9), %vm2019_vm0, %v2018_v1  ;;  %v1816_v8 = vpack.c.bf16 (!%p441_p9), %v507_v7, %v506_v6  ;;  %1815 = vmatprep.subr.bf16.mxu1 (!%p441_p9), %v2020_v9  ;;  %v1819_v12 = vpack.c.bf16 (!%p441_p9), %v509_v11, %v508_v10  ;;  %v510_v13 = vld [vmem:[%s2442_s4 + $0x20] sm:$0xff] (!%p441_p9)  ;;  %v511_v14 = vld [vmem:[%s2442_s4 + $0x28] sm:$0xff] (!%p441_p9)  ;;  %v512_v16 = vld [vmem:[%s2442_s4 + $0x30] sm:$0xff] (!%p441_p9)  ;;  %v759_v48 = vshrl.u32 (!%p441_p9), %v758_v47, 7  ;;  %vm1452_vm2 = vcmask (!%p441_p9), 531456   ;;  %s2021_s24 = smov (!%p441_p9), [#allocation2]  }
  0x15   : > { %v1822_v15 = vpack.c.bf16 (!%p441_p9), %v511_v14, %v510_v13  ;;  %v513_v17 = vld [vmem:[%s2442_s4 + $0x38] sm:$0xff] (!%p441_p9)  ;;  %v1936_v43 = vld [vmem:[%s2443_s5] sm:$0xff] (!%p441_p9)   ;;  %v1937_v44 = vld [vmem:[%s2443_s5 + $0x8] sm:$0xff] (!%p441_p9)  }
  0x16   : > { %1817 = vmatpush3.bf16.msra.mxu1 (!%p441_p9), %v1816_v8  ;;  %v1825_v18 = vpack.c.bf16 (!%p441_p9), %v513_v17, %v512_v16  ;;  %v1938_v45 = vld [vmem:[%s2443_s5 + $0x10] sm:$0xff] (!%p441_p9)   ;;  %v1939_v46 = vld [vmem:[%s2443_s5 + $0x18] sm:$0xff] (!%p441_p9)   ;;  %v2240_v49 = vsub.s32 (!%p441_p9), 0, %v759_v48  ;;  %v801_v13 = vld [vmem:[%s2446_s8] sm:$0xff] (!%p441_p9) }
  0x17   : > { %1818 = vmatprep.subr.bf16.mxu1 (!%p441_p9), %v2020_v9  ;;  %v802_v14 = vld [vmem:[%s2446_s8 + $0x8] sm:$0xff] (!%p441_p9)  ;;  %v803_v16 = vld [vmem:[%s2446_s8 + $0x10] sm:$0xff] (!%p441_p9)  ;;  %v804_v17 = vld [vmem:[%s2446_s8 + $0x18] sm:$0xff] (!%p441_p9) }
  0x18   : > { %v1931_v0 = vld [vmem:[%s2464_s1] sm:$0xff] (!%p441_p9)   ;;  %v1932_v2 = vld [vmem:[%s2464_s1 + $0x8] sm:$0xff] (!%p441_p9)   ;;  %v1933_v3 = vld [vmem:[%s2464_s1 + $0x10] sm:$0xff] (!%p441_p9)  }
  0x19   : > { %1654 = vmatpush3.bf16.msra.mxu0 (!%p441_p9), %v1931_v0  ;;  %v1934_v4 = vld [vmem:[%s2464_s1 + $0x18] sm:$0xff] (!%p441_p9)   ;;  %v1546_v0 = vld [vmem:[%s2440_s2] ss:$0 sm:$0xff] (!%p441_p9) }
  0x1a   : > { %1655 = vmatprep.subr.bf16.mxu0 %v2018_v1  ;;  %s489_s25 = scalar_select %p488_p10, %s2125_s22, 1  ;;  %1820 = vmatpush3.bf16.msra.mxu1 %v1819_v12 }
  0x1b   : > { %1821 = vmatprep.subr.bf16.mxu1 %v2020_v9 }
  0x1c   : > { %s1577_s16 = sshll.u32 %s489_s25, 3  ;;  %s1578_s25 = sshll.u32 %s2125_s22, 8 }
  0x1d   : > { %1656 = vmatpush3.bf16.msra.mxu0 %v1932_v2  ;;  %s492_s27 = scalar_lea.vmem %s2465_s0, %s1577_s16  ;;  %s485_s16 = sand.u32 1, %s2008_s19  }
  0x1e   : > { %1657 = vmatprep.subr.bf16.mxu0 %v2018_v1  ;;  %v1935_v5 = vld [vmem:[%s492_s27] sm:$0xff]   ;;  %1823 = vmatpush3.bf16.msra.mxu1 %v1822_v15  ;;  %s1535_s20 = sshll.u32 %s485_s16, 4  ;;  %s2395_s0 = scalar_lea.hbm %s2453_s15, %s1578_s25 }
  0x1f   : > { %1824 = vmatprep.subr.bf16.mxu1 %v2020_v9  ;;  %s487_s17 = scalar_lea.vmem [#allocation2], %s1535_s20  ;;  %s2397_s22 = scalar_lea.sflag [#allocation3], %s485_s16 }
  0x20   : > { %s1469_s23 = sshll.u32 %s487_s17, 4  ;;  %s1958_s27 = sshll.u32 %s2021_s24, 4  ;;  %s2390_s23 = int_to_ptr.vmem [resolvable:$true] %s1469_s23  ;;  %s1959_s27 = int_to_ptr.vmem [resolvable:$false] %s1958_s27 }
  0x21   : > { %1658 = vmatpush3.bf16.msra.mxu0 %v1933_v3  ;;  %s1954_s20 = scalar_lea.vmem %s2390_s23, 256  ;;  %s1960_s1 = scalar_lea.vmem %s1959_s27, 512 }
  0x22   : > { %1659 = vmatprep.subr.bf16.mxu0 %v2018_v1  ;;  %1826 = vmatpush3.bf16.msra.mxu1 %v1825_v18  ;;  %p1955_p11 = scmp.ne.s32.totalorder %s2390_s23, %s1954_s20  ;;  %p1961_p0 = scmp.lt.s32.totalorder %s2390_s23, %s1959_s27 }
  0x23   : > { %1703 = vmatprep.subr.bf16.mxu1 %v2018_v1  ;;  %p1962_p1 = scmp.lt.s32.totalorder %s1960_s1, %s1954_s20 }
  0x24   : > { %p1956_p12 = pnand %p1955_p11, %p2142_p5 }
  0x25   : > { %1660 = vmatpush3.bf16.msra.mxu0 %v1934_v4  ;;  %v1547_v4 = vld [vmem:[%s2441_s3] ss:$0 sm:$0xff]  ;;  %p1963_p2 = por %p1962_p1, %p1961_p0 }
  0x26   : > { %1827 = vmatprep.subr.bf16.mxu0 %v2020_v9  ;;  %p1957_p13 = pneg %p1956_p12 }
  0x28   : > { %1662 = vmatmul.mubr.msk.bf16.vlgmr.msra.gmra.mrb[0].mxu0 %vm543_vm1, %v1935_v5  ;;  %p1964_p3 = pnand %p1963_p2, %p1957_p13 }
  0x29   : > { %1700 = vmatprep.mubr.msk.f32.mxu0 %vm2019_vm0, %v2018_v1  ;;  %1829 = vmatpush3.bf16.msra.mxu0 %v1816_v8 }
  0x2a   : > { %1830 = vmatprep.subr.bf16.mxu0 %v2020_v9 }
  0x2d   : > { %1832 = vmatpush3.bf16.msra.mxu0 %v1819_v12 }
  0x2e   : > { %1833 = vmatprep.subr.bf16.mxu0 %v2020_v9 }
  0x31   : > { %1835 = vmatpush3.bf16.msra.mxu0 %v1822_v15  ;;  %v1840_v15 = vpack.c.bf16 %v802_v14, %v801_v13 }
  0x32   : > { %1836 = vmatprep.subr.bf16.mxu0 %v2020_v9 }
  0x35   : > { %1838 = vmatpush3.bf16.msra.mxu0 %v1825_v18  ;;  %v1843_v18 = vpack.c.bf16 %v804_v17, %v803_v16  ;;  %v1090_v17 = vld [vmem:[%s2450_s12] sm:$0xff] }
  0x36   : > { %1839 = vmatprep.subr.bf16.mxu0 %v2020_v9 }
  0xfb   : > { %v581_v19 = vpop.f32.mrb[0].mxu0 }
  0xfc   : > { %v597_v20 = vmul.f32 %v581_v19, %v581_v19  ;;  %v1663_v21 = vpop.f32.mrb[1].mxu0  ;;  %v588_v23 = vsel %vm543_vm1, %v581_v19, 0.0 }
  0xfd   : > { %v584_v22 = vpop.f32.mrb[2].mxu0 }
  0xfe   : > { %v589_v24 = vsel %vm543_vm1, %v584_v22, 0.0  ;;  %v598_v25 = vmul.f32 %v584_v22, %v584_v22  ;;  %v1664_v26 = vpop.f32.mrb[3].mxu0  ;;  %v599_v28 = vsel %vm543_vm1, %v597_v20, 0.0  ;;  %v806_v20 = vld [vmem:[%s2446_s8 + $0x28] sm:$0xff] }
  0xff   : > { %v590_v27 = vadd.f32 %v589_v24, %v588_v23  ;;  %v808_v23 = vld [vmem:[%s2446_s8 + $0x38] sm:$0xff] }
 0x100   : > { %v600_v29 = vsel %vm543_vm1, %v598_v25, 0.0 }
 0x101   : > { %v591_v30 = vrot.slane %v590_v27, 4  ;;  %v601_v31 = vadd.f32 %v600_v29, %v599_v28 }
 0x103   : > { %v592_v32 = vadd.f32 %v591_v30, %v590_v27  ;;  %v602_v33 = vrot.slane %v601_v31, 4 }
 0x105   : > { %v593_v34 = vrot.slane %v592_v32, 2  ;;  %v603_v35 = vadd.f32 %v602_v33, %v601_v31 }
 0x107   : > { %v594_v36 = vadd.f32 %v593_v34, %v592_v32  ;;  %v604_v37 = vrot.slane %v603_v35, 2 }
 0x109   : > { %v605_v38 = vadd.f32 %v604_v37, %v603_v35  ;;  %v595_v39 = vrot.slane %v594_v36, 1 }
 0x10b   : > { %v606_v40 = vrot.slane %v605_v38, 1  ;;  %v596_v41 = vadd.f32 %v595_v39, %v594_v36 }
 0x10d   : > { %1682 = vmatmul.mubr.msk.f32.vlgmr.msra.gmra.mrb[0].mxu1 %vm543_vm1, %v596_v41  ;;  %v607_v42 = vadd.f32 %v606_v40, %v605_v38 }
 0x10e   : > { %1711 = vmatprep.mubr.msk.bf16.mxu1 %vm2019_vm0, %v2018_v1  ;;  %1704 = vmatpush3.bf16.msra.mxu1 %v1936_v43 }
 0x10f   : > { %1701 = vmatmul.mubr.msk.f32.vlgmr.msra.gmra.mrb[4].mxu0 %vm543_vm1, %v607_v42  ;;  %1705 = vmatprep.subr.bf16.mxu1 %v2018_v1 }
 0x110   : > { %1731 = vmatprep.mubr.msk.f32.mxu0 %vm2019_vm0, %v2018_v1  ;;  %1841 = vmatpush3.bf16.msra.mxu0 %v1840_v15 }
 0x111   : > { %1842 = vmatprep.subr.bf16.mxu0 %v2020_v9 }
 0x112   : > { %1706 = vmatpush3.bf16.msra.mxu1 %v1937_v44 }
 0x113   : > { %1707 = vmatprep.subr.bf16.mxu1 %v2018_v1 }
 0x114   : > { %1844 = vmatpush3.bf16.msra.mxu0 %v1843_v18 }
 0x115   : > { %1845 = vmatprep.subr.bf16.mxu0 %v2020_v9 }
 0x116   : > { %1708 = vmatpush3.bf16.msra.mxu1 %v1938_v45 }
 0x117   : > { %1709 = vmatprep.subr.bf16.mxu1 %v2018_v1 }
 0x11a   : > { %1710 = vmatpush3.bf16.msra.mxu1 %v1939_v46 }
 0x11b   : > { %1851 = vmatprep.subr.bf16.mxu1 %v2020_v9 }
 0x1e0   : > { %v677_v50 = vpop.f32.mrb[0].mxu1 }
 0x1e1   : > { %v681_v51 = vmul.f32 0.00390625, %v677_v50  ;;  %v1683_v52 = vpop.f32.mrb[1].mxu1  ;;  %v1940_v50 = vld [vmem:[%s2447_s9] sm:$0xff]  }
 0x1e2   : > { %v751_v53 = vpop.f32.mrb[4].mxu0  ;;  %v1942_v52 = vld [vmem:[%s2447_s9 + $0x10] sm:$0xff]  }
 0x1e3   : > { %v756_v54 = vmul.f32 %v681_v51, %v681_v51  ;;  %v761_v55 = vrot.slane %v681_v51, %v2240_v49  ;;  %v755_v56 = vmul.f32 0.00390625, %v751_v53  ;;  %v1702_v57 = vpop.f32.mrb[5].mxu0  ;;  %v1941_v51 = vld [vmem:[%s2447_s9 + $0x8] sm:$0xff]   ;;  %v1943_v53 = vld [vmem:[%s2447_s9 + $0x18] sm:$0xff]  }
 0x1e5   : > { %v762_v58 = vsub.f32 %v581_v19, %v761_v55  ;;  %v763_v59 = vsub.f32 %v584_v22, %v761_v55  ;;  %v757_v60 = vsub.f32 %v755_v56, %v756_v54  ;;  %v805_v19 = vld [vmem:[%s2446_s8 + $0x20] sm:$0xff]  ;;  %v807_v22 = vld [vmem:[%s2446_s8 + $0x30] sm:$0xff] }
 0x1e6   : > { %v1846_v21 = vpack.c.bf16 %v806_v20, %v805_v19  ;;  %v1849_v24 = vpack.c.bf16 %v808_v23, %v807_v22  ;;  %v1092_v20 = vld [vmem:[%s2450_s12 + $0x10] sm:$0xff]  ;;  %v1094_v23 = vld [vmem:[%s2450_s12 + $0x20] sm:$0xff] }
 0x1e7   : > { %v764_v61 = vadd.f32 1e-05, %v757_v60 }
 0x1e8   : > { %1847 = vmatpush3.bf16.msra.mxu0 %v1846_v21 }
 0x1e9   : > { %1948 = vrsqrt.f32 %v764_v61  ;;  %1848 = vmatprep.subr.bf16.mxu0 %v2020_v9 }
 0x1ec   : > { %1850 = vmatpush3.bf16.msra.mxu0 %v1849_v24 }
 0x1ed   : > { %1753 = vmatprep.subr.bf16.mxu0 %v2018_v1 }
 0x1f3   : > { %v1949_v62 = vpop.eup %1948 }
 0x1f4   : > { %v769_v63 = vrot.slane %v1949_v62, %v2240_v49 }
 0x1f6   : > { %v770_v2 = vmul.f32 %v769_v63, %v762_v58  ;;  %v771_v3 = vmul.f32 %v769_v63, %v763_v59 }
 0x1f8   : > { %v778_v5 = vmul.f32 %v1546_v0, %v770_v2  ;;  %v779_v6 = vmul.f32 %v1546_v0, %v771_v3 }
 0x1fa   : > { %v786_v7 = vadd.f32 %v1547_v4, %v778_v5  ;;  %v787_v8 = vadd.f32 %v1547_v4, %v779_v6  ;;  %v1555_v5 = vld [vmem:[%s2444_s6] ss:$0 sm:$0xff] }
 0x1fc   : > { %v788_v10 = vmax.f32 %v786_v7, 0.0  ;;  %v789_v11 = vmax.f32 %v787_v8, 0.0  ;;  %v1556_v8 = vld [vmem:[%s2445_s7] ss:$0 sm:$0xff] }
 0x1fe   : > { %v790_v12 = vpack.c.bf16 %v789_v11, %v788_v10 }
 0x200   : > { %1712 = vmatmul.mubr.msk.bf16.vlgmr.msra.gmra.mrb[4].mxu1 %vm543_vm1, %v790_v12 }
 0x201   : > { %1750 = vmatprep.mubr.msk.f32.mxu1 %vm2019_vm0, %v2018_v1  ;;  %1853 = vmatpush3.bf16.msra.mxu1 %v1840_v15 }
 0x202   : > { %1854 = vmatprep.subr.bf16.mxu1 %v2020_v9 }
 0x205   : > { %1856 = vmatpush3.bf16.msra.mxu1 %v1843_v18  ;;  %v1091_v18 = vld [vmem:[%s2450_s12 + $0x8] sm:$0xff] }
 0x206   : > { %1857 = vmatprep.subr.bf16.mxu1 %v2020_v9  ;;  %v1864_v19 = vpack.c.bf16 %v1091_v18, %v1090_v17 }
 0x209   : > { %1859 = vmatpush3.bf16.msra.mxu1 %v1846_v21  ;;  %v1093_v21 = vld [vmem:[%s2450_s12 + $0x18] sm:$0xff] }
 0x20a   : > { %1860 = vmatprep.subr.bf16.mxu1 %v2020_v9  ;;  %v1867_v22 = vpack.c.bf16 %v1093_v21, %v1092_v20 }
 0x20d   : > { %1862 = vmatpush3.bf16.msra.mxu1 %v1849_v24  ;;  %v1095_v24 = vld [vmem:[%s2450_s12 + $0x28] sm:$0xff] }
 0x20e   : > { %1863 = vmatprep.subr.bf16.mxu1 %v2020_v9 }
 0x2d3   : > { %v870_v25 = vpop.f32.mrb[4].mxu1 }
 0x2d4   : > { %v886_v26 = vmul.f32 %v870_v25, %v870_v25  ;;  %v1713_v27 = vpop.f32.mrb[5].mxu1  ;;  %v877_v29 = vsel %vm543_vm1, %v870_v25, 0.0 }
 0x2d5   : > { %v873_v28 = vpop.f32.mrb[6].mxu1  ;;  %v1097_v27 = vld [vmem:[%s2450_s12 + $0x38] sm:$0xff] }
 0x2d6   : > { %v878_v30 = vsel %vm543_vm1, %v873_v28, 0.0  ;;  %v887_v31 = vmul.f32 %v873_v28, %v873_v28  ;;  %v1714_v32 = vpop.f32.mrb[7].mxu1  ;;  %v888_v34 = vsel %vm543_vm1, %v886_v26, 0.0  ;;  %v1096_v26 = vld [vmem:[%s2450_s12 + $0x30] sm:$0xff] }
 0x2d7   : > { %v879_v33 = vadd.f32 %v878_v30, %v877_v29 }
 0x2d8   : > { %v889_v35 = vsel %vm543_vm1, %v887_v31, 0.0 }
 0x2d9   : > { %v880_v36 = vrot.slane %v879_v33, 4  ;;  %v890_v37 = vadd.f32 %v889_v35, %v888_v34 }
 0x2db   : > { %v881_v38 = vadd.f32 %v880_v36, %v879_v33  ;;  %v891_v39 = vrot.slane %v890_v37, 4 }
 0x2dd   : > { %v882_v40 = vrot.slane %v881_v38, 2  ;;  %v892_v41 = vadd.f32 %v891_v39, %v890_v37 }
 0x2df   : > { %v883_v42 = vadd.f32 %v882_v40, %v881_v38  ;;  %v893_v43 = vrot.slane %v892_v41, 2 }
 0x2e1   : > { %v884_v44 = vrot.slane %v883_v42, 1  ;;  %v894_v45 = vadd.f32 %v893_v43, %v892_v41 }
 0x2e3   : > { %v885_v46 = vadd.f32 %v884_v44, %v883_v42  ;;  %v895_v47 = vrot.slane %v894_v45, 1 }
 0x2e5   : > { %1732 = vmatmul.mubr.msk.f32.vlgmr.msra.gmra.mrb[6].mxu0 %vm543_vm1, %v885_v46  ;;  %v896_v48 = vadd.f32 %v895_v47, %v894_v45 }
 0x2e6   : > { %1761 = vmatprep.mubr.msk.bf16.mxu0 %vm2019_vm0, %v2018_v1  ;;  %1754 = vmatpush3.bf16.msra.mxu0 %v1940_v50 }
 0x2e7   : > { %1751 = vmatmul.mubr.msk.f32.vlgmr.msra.gmra.mrb[2].mxu1 %vm543_vm1, %v896_v48  ;;  %1755 = vmatprep.subr.bf16.mxu0 %v2018_v1 }
 0x2e8   : > { %1781 = vmatprep.mubr.msk.f32.mxu1 %vm2019_vm0, %v2018_v1  ;;  %1865 = vmatpush3.bf16.msra.mxu1 %v1864_v19 }
 0x2e9   : > { %1866 = vmatprep.subr.bf16.mxu1 %v2020_v9 }
 0x2ea   : > { %1756 = vmatpush3.bf16.msra.mxu0 %v1941_v51 }
 0x2eb   : > { %1757 = vmatprep.subr.bf16.mxu0 %v2018_v1 }
 0x2ec   : > { %1868 = vmatpush3.bf16.msra.mxu1 %v1867_v22 }
 0x2ed   : > { %1869 = vmatprep.subr.bf16.mxu1 %v2020_v9 }
 0x2ee   : > { %1758 = vmatpush3.bf16.msra.mxu0 %v1942_v52 }
 0x2ef   : > { %1759 = vmatprep.subr.bf16.mxu0 %v2018_v1 }
 0x2f2   : > { %1760 = vmatpush3.bf16.msra.mxu0 %v1943_v53  ;;  %v1944_v53 = vld [vmem:[%s2451_s13] sm:$0xff]  }
 0x2f3   : > { %1875 = vmatprep.subr.bf16.mxu0 %v2020_v9 }
 0x3b8   : > { %v966_v54 = vpop.f32.mrb[6].mxu0 }
 0x3b9   : > { %v970_v55 = vmul.f32 0.00390625, %v966_v54  ;;  %v1733_v56 = vpop.f32.mrb[7].mxu0  ;;  %v1945_v54 = vld [vmem:[%s2451_s13 + $0x8] sm:$0xff]  }
 0x3ba   : > { %v1040_v57 = vpop.f32.mrb[2].mxu1  ;;  %v1947_v56 = vld [vmem:[%s2451_s13 + $0x18] sm:$0xff]  }
 0x3bb   : > { %v1045_v58 = vmul.f32 %v970_v55, %v970_v55  ;;  %v1050_v59 = vrot.slane %v970_v55, %v2240_v49  ;;  %v1044_v60 = vmul.f32 0.00390625, %v1040_v57  ;;  %v1752_v61 = vpop.f32.mrb[3].mxu1  ;;  %v1946_v55 = vld [vmem:[%s2451_s13 + $0x10] sm:$0xff]  }
 0x3bd   : > { %v1051_v62 = vsub.f32 %v870_v25, %v1050_v59  ;;  %v1052_v63 = vsub.f32 %v873_v28, %v1050_v59  ;;  %v1046_v0 = vsub.f32 %v1044_v60, %v1045_v58  ;;  %v1870_v25 = vpack.c.bf16 %v1095_v24, %v1094_v23 }
 0x3be   : > { %v1873_v28 = vpack.c.bf16 %v1097_v27, %v1096_v26 }
 0x3bf   : > { %v1053_v2 = vadd.f32 1e-05, %v1046_v0  ;;  %1871 = vmatpush3.bf16.msra.mxu1 %v1870_v25 }
 0x3c0   : > { %1872 = vmatprep.subr.bf16.mxu1 %v2020_v9 }
 0x3c1   : > { %1950 = vrsqrt.f32 %v1053_v2 }
 0x3c3   : > { %1874 = vmatpush3.bf16.msra.mxu1 %v1873_v28 }
 0x3c4   : > { %1803 = vmatprep.subr.bf16.mxu1 %v2018_v1 }
 0x3cb   : > { %v1951_v3 = vpop.eup %1950 }
 0x3cc   : > { %v1058_v4 = vrot.slane %v1951_v3, %v2240_v49 }
 0x3ce   : > { %v1059_v6 = vmul.f32 %v1058_v4, %v1051_v62  ;;  %v1060_v7 = vmul.f32 %v1058_v4, %v1052_v63 }
 0x3d0   : > { %v1067_v10 = vmul.f32 %v1555_v5, %v1059_v6  ;;  %v1068_v11 = vmul.f32 %v1555_v5, %v1060_v7 }
 0x3d2   : > { %v1075_v12 = vadd.f32 %v1556_v8, %v1067_v10  ;;  %v1076_v13 = vadd.f32 %v1556_v8, %v1068_v11  ;;  %v1565_v11 = vld [vmem:[%s2449_s11] ss:$0 sm:$0xff] }
 0x3d4   : > { %v1077_v14 = vmax.f32 %v1075_v12, 0.0  ;;  %v1078_v15 = vmax.f32 %v1076_v13, 0.0 }
 0x3d6   : > { %v1079_v16 = vpack.c.bf16 %v1078_v15, %v1077_v14 }
 0x3d8   : > { %1762 = vmatmul.mubr.msk.bf16.vlgmr.msra.gmra.mrb[8].mxu0 %vm543_vm1, %v1079_v16 }
 0x3d9   : > { %1800 = vmatprep.mubr.msk.f32.mxu0 %vm2019_vm0, %v2018_v1  ;;  %1877 = vmatpush3.bf16.msra.mxu0 %v1864_v19 }
 0x3da   : > { %1878 = vmatprep.subr.bf16.mxu0 %v2020_v9 }
 0x3dd   : > { %1880 = vmatpush3.bf16.msra.mxu0 %v1867_v22 }
 0x3de   : > { %1881 = vmatprep.subr.bf16.mxu0 %v2020_v9 }
 0x3e1   : > { %1883 = vmatpush3.bf16.msra.mxu0 %v1870_v25 }
 0x3e2   : > { %1884 = vmatprep.subr.bf16.mxu0 %v2020_v9 }
 0x3e5   : > { %1886 = vmatpush3.bf16.msra.mxu0 %v1873_v28 }
 0x4ab   : > { %v1159_v29 = vpop.f32.mrb[8].mxu0 }
 0x4ac   : > { %v1175_v30 = vmul.f32 %v1159_v29, %v1159_v29  ;;  %v1763_v31 = vpop.f32.mrb[9].mxu0  ;;  %v1166_v33 = vsel %vm543_vm1, %v1159_v29, 0.0 }
 0x4ad   : > { %v1162_v32 = vpop.f32.mrb[10].mxu0 }
 0x4ae   : > { %v1167_v34 = vsel %vm543_vm1, %v1162_v32, 0.0  ;;  %v1176_v35 = vmul.f32 %v1162_v32, %v1162_v32  ;;  %v1764_v36 = vpop.f32.mrb[11].mxu0  ;;  %v1177_v38 = vsel %vm543_vm1, %v1175_v30, 0.0 }
 0x4af   : > { %v1168_v37 = vadd.f32 %v1167_v34, %v1166_v33 }
 0x4b0   : > { %v1178_v9 = vsel %vm543_vm1, %v1176_v35, 0.0 }
 0x4b1   : > { %v1169_v39 = vrot.slane %v1168_v37, 4  ;;  %v1179_v40 = vadd.f32 %v1178_v9, %v1177_v38 }
 0x4b3   : > { %v1170_v41 = vadd.f32 %v1169_v39, %v1168_v37  ;;  %v1180_v42 = vrot.slane %v1179_v40, 4 }
 0x4b5   : > { %v1171_v43 = vrot.slane %v1170_v41, 2  ;;  %v1181_v44 = vadd.f32 %v1180_v42, %v1179_v40 }
 0x4b7   : > { %v1172_v45 = vadd.f32 %v1171_v43, %v1170_v41  ;;  %v1182_v46 = vrot.slane %v1181_v44, 2 }
 0x4b9   : > { %v1173_v47 = vrot.slane %v1172_v45, 1  ;;  %v1183_v48 = vadd.f32 %v1182_v46, %v1181_v44 }
 0x4bb   : > { %v1174_v50 = vadd.f32 %v1173_v47, %v1172_v45  ;;  %v1184_v51 = vrot.slane %v1183_v48, 1 }
 0x4bd   : > { %1782 = vmatmul.mubr.msk.f32.vlgmr.msra.gmra.mrb[8].mxu1 %vm543_vm1, %v1174_v50  ;;  %v1185_v52 = vadd.f32 %v1184_v51, %v1183_v48 }
 0x4be   : > { %1811 = vmatprep.mubr.msk.bf16.mxu1 %vm2019_vm0, %v2018_v1  ;;  %1804 = vmatpush3.bf16.msra.mxu1 %v1944_v53 }
 0x4bf   : > { %1801 = vmatmul.mubr.msk.f32.vlgmr.msra.gmra.mrb[12].mxu0 %vm543_vm1, %v1185_v52  ;;  %1805 = vmatprep.subr.bf16.mxu1 %v2018_v1 }
 0x4c2   : > { %1806 = vmatpush3.bf16.msra.mxu1 %v1945_v54 }
 0x4c3   : > { %1807 = vmatprep.subr.bf16.mxu1 %v2018_v1 }
 0x4c6   : > { %1808 = vmatpush3.bf16.msra.mxu1 %v1946_v55 }
 0x4c7   : > { %1809 = vmatprep.subr.bf16.mxu1 %v2018_v1  ;;  %v1564_v1 = vld [vmem:[%s2448_s10] ss:$0 sm:$0xff] }
 0x4ca   : > { %1810 = vmatpush3.bf16.msra.mxu1 %v1947_v56 }
 0x590   : > { %v1255_v57 = vpop.f32.mrb[8].mxu1 }
 0x591   : > { %v1259_v58 = vmul.f32 0.00390625, %v1255_v57  ;;  %v1783_v59 = vpop.f32.mrb[9].mxu1 }
 0x592   : > { %v1329_v60 = vpop.f32.mrb[12].mxu0 }
 0x593   : > { %v1334_v61 = vmul.f32 %v1259_v58, %v1259_v58  ;;  %v1339_v62 = vrot.slane %v1259_v58, %v2240_v49  ;;  %v1333_v63 = vmul.f32 0.00390625, %v1329_v60  ;;  %v1802_v0 = vpop.f32.mrb[13].mxu0 }
 0x595   : > { %v1340_v2 = vsub.f32 %v1159_v29, %v1339_v62  ;;  %v1341_v3 = vsub.f32 %v1162_v32, %v1339_v62  ;;  %v1335_v4 = vsub.f32 %v1333_v63, %v1334_v61 }
 0x597   : > { %v1342_v5 = vadd.f32 1e-05, %v1335_v4 }
 0x599   : > { %1952 = vrsqrt.f32 %v1342_v5 }
 0x5a3   : > { %v1953_v6 = vpop.eup %1952 }
 0x5a4   : > { %v1347_v7 = vrot.slane %v1953_v6, %v2240_v49  ;;  %v1566_v49 = vld [vmem:[%s2452_s14] ss:$0 sm:$0xff] }
 0x5a6   : > { %v1348_v8 = vmul.f32 %v1347_v7, %v1340_v2  ;;  %v1349_v10 = vmul.f32 %v1347_v7, %v1341_v3 }
 0x5a8   : > { %v1356_v12 = vmul.f32 %v1564_v1, %v1348_v8  ;;  %v1357_v13 = vmul.f32 %v1564_v1, %v1349_v10 }
 0x5aa   : > { %v1364_v14 = vadd.f32 %v1565_v11, %v1356_v12  ;;  %v1365_v15 = vadd.f32 %v1565_v11, %v1357_v13 }
 0x5ac   : > { %v1366_v16 = vmax.f32 %v1364_v14, 0.0  ;;  %v1367_v17 = vmax.f32 %v1365_v15, 0.0 }
 0x5ae   : > { %v1368_v18 = vpack.c.bf16 %v1367_v17, %v1366_v16 }
 0x5b0   : > { %1812 = vmatmul.mubr.msk.bf16.vlgmr.msra.gmra.mrb[12].mxu1 %vm543_vm1, %v1368_v18 }
 0x683   : > { %v1445_v19 = vpop.f32.mrb[12].mxu1 }
 0x684   : > { %v1446_v20 = vadd.f32 %v1566_v49, %v1445_v19  ;;  %v1813_v21 = vpop.f32.mrb[13].mxu1 }
 0x685   : > { %v1448_v22 = vpop.f32.mrb[14].mxu1 }
 0x686   : > { %1453 = vst.msk [vmem:[%s487_s17] sm:$0xff] %vm1452_vm2, %v1446_v20  ;;  %v1449_v23 = vadd.f32 %v1566_v49, %v1448_v22  ;;  %v1814_v24 = vpop.f32.mrb[15].mxu1 }
 0x688   : > { %1454 = vst.msk [vmem:[%s487_s17 + $0x8] sm:$0xff] %vm1452_vm2, %v1449_v23 }
 0x689   : > { %1967 = shalt.err (!%p1964_p3)
}
 0x68a   : > { %s1968_s16 = scalar_lea.hbm %s2395_s0, 256  ;;  %s1972_s26 = scalar_lea.hbm %s2453_s15, 512 }
 0x68b   : > { %p1969_p4 = scmp.ne.s32.totalorder %s2395_s0, %s1968_s16  ;;  %p1973_p9 = scmp.lt.u32.totalorder %s2395_s0, %s2453_s15 }
 0x68c   : > { %p1974_p10 = scmp.lt.u32.totalorder %s1972_s26, %s1968_s16  ;;  %p1976_p12 = scmp.lt.u32.totalorder %s1968_s16, %s2395_s0 }
 0x68d   : > { %p1970_p7 = pnand %p1969_p4, %p2142_p5 }
 0x68e   : > { %p1975_p11 = por %p1974_p10, %p1973_p9 }
 0x68f   : > { %p1971_p8 = pneg %p1970_p7 }
 0x690   : > { %p1977_p13 = por %p1976_p12, %p1975_p11 }
 0x692   : > { %p1978_p0 = pnand %p1977_p13, %p1971_p8 }
 0x694   : > { %1981 = shalt.err (!%p1978_p0)
}
 0x695   : > { %s2022_s1 = smov 128   ;;  %s2023_s20 = smov 8  }
 0x696   : > { %1887 = dma.vmem_to_hbm [thread:$0]  (%p2142_p5), %s2390_s23, 256, %s2395_s0, %s2397_s22, %s2022_s1, %s2022_s1, %s2023_s20  }
 0x697 PF: > { %p1893_p1 = scmp.ge.s32.totalorder %s2016_s21, 2  ;;  %s1484_s27 = sand.u32 1, %s2004_s18  }
 0x698   : > { %s1485_s16 = scalar_lea.sflag [#allocation3], %s1484_s27 }
 0x699   : > { %p1890_p2 = pnand %p1893_p1, %p2146_p6 }
 0x69b   : > { %1999 = dma.done.wait (!%p1890_p2), %s1485_s16, 256  }
 0x69c   : > { %2001 = vsyncadd (!%p1890_p2), %s1485_s16, 4294967040  ;;  %s2466_s21 = sld [smem:[#allocation6_spill]]  ;;  %s2467_s17 = sld [smem:[#allocation5_spill]] }
 0x69d   : > { %s2468_s20 = sld [smem:[#allocation7_spill]]  ;;  %s2469_s18 = smov %s2008_s19 }
 0x6a2   : > { %p25_p3 = scmp.ge.s32.totalorder %s2466_s21, 4   ;;  %s2470_s19 = smov %s2467_s17 }
 0x6a4   :  { %27 = sbr.rel (!%p25_p3) target bundleno = 6 (0x6), region = 115 }
 0x6ab   :  { %1490 = vsyncpa [#allocation3], 1 }
 0x6ac   :  { %1492 = vsyncpa [#allocation3 + $0x1], 1 }

</bundles_post_ra>
